<compile_context>
chip_gen: v7x
topology: tpu7x:2x2x1
jax: 0.10.0
libtpu: 0.0.40
codegen_flags: <defaults>
</compile_context>

<pallas_src>
import functools

import jax
import jax.numpy as jnp
from jax import lax
from jax.experimental import pallas as pl
from jax.experimental.pallas import tpu as pltpu


def _round_up(x, m):
    return ((x + m - 1) // m) * m


# ---------------------------------------------------------------------------
# Pallas kernel: fused bilinear combine + modulation + grouped conv-as-matmul
# ---------------------------------------------------------------------------
def _fused_deform_matmul_kernel(corners_ref, gains_ref, expand_ref, w_ref, out_ref):
    # corners_ref: (G*4, TM, K)   bf16  gathered corner taps (im2col rows)
    # gains_ref:   (G*4, TM, N)   bf16  per-corner bilinear gains (mask folded in)
    # expand_ref:  (N, K)         bf16  exact 0/1 channel-broadcast matrix
    # w_ref:       (G, K, out_pg) bf16  per-group conv weights (channel-major taps)
    # out_ref:     (TM, OC_pad)   bf16  packed per-group outputs, lane-dense
    groups = w_ref.shape[0]
    out_pg = w_ref.shape[-1]
    tm = out_ref.shape[0]
    oc_pad = out_ref.shape[-1]

    expand = expand_ref[...]                                    # (N, K) bf16, 0/1

    # Make padded tail lanes write back zeros (cheap dense store, skipped if none).
    if oc_pad > groups * out_pg:
        out_ref[...] = jnp.zeros((tm, oc_pad), out_ref.dtype)

    # groups is small and static -> plain Python unroll.
    # TODO(synk): for very large K on v5e, chunk this combine along K inside a
    # lax.fori_loop(unroll=True) to bound f32 temporaries / vst pressure.
    for g in range(groups):
        xo = None
        for j in range(4):                                      # lt, rb, lb, rt
            # (TM, N) bf16 gain -> (TM, K) f32 channel-broadcast on the MXU.
            gain_b = jnp.dot(gains_ref[4 * g + j], expand,
                             preferred_element_type=jnp.float32)
            term = gain_b * corners_ref[4 * g + j].astype(jnp.float32)
            xo = term if xo is None else xo + term
        # conv-as-matmul on the MXU: bf16 operands, f32 accumulation.
        o_g = jnp.dot(xo.astype(jnp.bfloat16), w_ref[g],
                      preferred_element_type=jnp.float32)       # (TM, out_pg)
        out_ref[:, g * out_pg:(g + 1) * out_pg] = o_g.astype(out_ref.dtype)


def deform_sample_and_conv(corners, gains, expand, w_flat, oc_pad, *, tm,
                           vmem_limit_bytes):
    """corners: (G*4, Mp, K) bf16. gains: (G*4, Mp, N) bf16. expand: (N, K) bf16.
       w_flat: (G, K, out_pg) bf16. Returns (Mp, oc_pad) bf16."""
    g4, mp, k = corners.shape
    n_taps = gains.shape[-1]
    g_cnt, _, out_pg = w_flat.shape
    assert mp % tm == 0
    grid = (mp // tm,)

    return pl.pallas_call(
        _fused_deform_matmul_kernel,
        out_shape=jax.ShapeDtypeStruct((mp, oc_pad), jnp.bfloat16),
        grid_spec=pltpu.PrefetchScalarGridSpec(
            num_scalar_prefetch=0,
            grid=grid,
            in_specs=[
                pl.BlockSpec((g4, tm, k), lambda i: (0, i, 0)),
                pl.BlockSpec((g4, tm, n_taps), lambda i: (0, i, 0)),
                pl.BlockSpec((n_taps, k), lambda i: (0, 0)),        # resident
                pl.BlockSpec((g_cnt, k, out_pg), lambda i: (0, 0, 0)),  # resident
            ],
            out_specs=pl.BlockSpec((tm, oc_pad), lambda i: (i, 0))),
        compiler_params=pltpu.CompilerParams(
            dimension_semantics=("parallel",),     # M tiles split across TCs (v7x)
            vmem_limit_bytes=vmem_limit_bytes),
    )(corners, gains, expand, w_flat)


# ---------------------------------------------------------------------------
# Plain-JAX glue (offset/mask convs, coordinate math, 4-corner gather)
# ---------------------------------------------------------------------------
def _conv3x3(x, w, b, stride):
    y = lax.conv_general_dilated(
        x, w, window_strides=(stride, stride), padding=((1, 1), (1, 1)),
        dimension_numbers=("NCHW", "OIHW", "NCHW"))
    return y + b[None, :, None, None]


def _prepare_group(xg, params, ks, pad, stride):
    """Per-group offset/mask convs, coordinate math and 4-corner gather."""
    b, c, H, W = xg.shape
    N = ks * ks

    offset = _conv3x3(xg, params["p_w"], params["p_b"], stride)              # (b, 2N, h, w)
    mmod = jax.nn.sigmoid(_conv3x3(xg, params["m_w"], params["m_b"], stride))  # (b, N, h, w)
    h, w_out = offset.shape[2], offset.shape[3]

    xp = jnp.pad(xg, ((0, 0), (0, 0), (pad, pad), (pad, pad)))
    Hp, Wp = H + 2 * pad, W + 2 * pad

    # p = p_0 + p_n + offset   (matches the PyTorch reference exactly)
    a = jnp.arange(-(ks - 1) // 2, (ks - 1) // 2 + 1, dtype=jnp.float32)
    pnx, pny = jnp.meshgrid(a, a, indexing="ij")
    p_n = jnp.concatenate([pnx.ravel(), pny.ravel()])                        # (2N,)
    i0 = jnp.arange(1, h * stride + 1, stride, dtype=jnp.float32)
    j0 = jnp.arange(1, w_out * stride + 1, stride, dtype=jnp.float32)
    p0x, p0y = jnp.meshgrid(i0, j0, indexing="ij")
    p0 = jnp.concatenate([jnp.tile(p0x[None], (N, 1, 1)),
                          jnp.tile(p0y[None], (N, 1, 1))], axis=0)           # (2N, h, w)
    p = p0[None] + p_n[None, :, None, None] + offset                         # (b, 2N, h, w)
    p = jnp.transpose(p, (0, 2, 3, 1))                                       # (b, h, w, 2N)

    px, py = p[..., :N], p[..., N:]
    fx, fy = jnp.floor(px), jnp.floor(py)
    qlt_x = jnp.clip(fx, 0, Hp - 1)
    qlt_y = jnp.clip(fy, 0, Wp - 1)
    qrb_x = jnp.clip(fx + 1, 0, Hp - 1)
    qrb_y = jnp.clip(fy + 1, 0, Wp - 1)
    pxc = jnp.clip(px, 0, Hp - 1)
    pyc = jnp.clip(py, 0, Wp - 1)

    # Separable bilinear axis weights (clipping exactly as in the reference).
    wx_lt = 1 + (qlt_x - pxc)
    wx_rb = 1 - (qrb_x - pxc)
    wy_lt = 1 + (qlt_y - pyc)
    wy_rb = 1 - (qrb_y - pyc)

    M = b * h * w_out
    mm = jnp.transpose(mmod, (0, 2, 3, 1))                                   # (b, h, w, N)
    # Pre-multiplied per-corner gains with the DCNv2 modulation folded in,
    # packed in the same (lt, rb, lb, rt) order as the gathered corners.
    gains = jnp.stack([
        (mm * wx_lt * wy_lt).reshape(M, N),
        (mm * wx_rb * wy_rb).reshape(M, N),
        (mm * wx_lt * wy_rb).reshape(M, N),
        (mm * wx_rb * wy_lt).reshape(M, N)], axis=0).astype(jnp.bfloat16)

    x_flat = xp.reshape(b, c, Hp * Wp)

    # TODO(synk): fuse this 4-corner gather into the Pallas kernel (padded x per
    # group fits in VMEM) to remove the 4x im2col HBM stream — the remaining
    # bandwidth ceiling; kept host-side here for lowering robustness.
    def gather_rows(qx, qy):
        idx = (qx * Wp + qy).astype(jnp.int32).reshape(b, 1, h * w_out * N)
        idx = jnp.broadcast_to(idx, (b, c, h * w_out * N))
        vals = jnp.take_along_axis(x_flat, idx, axis=-1).reshape(b, c, h, w_out, N)
        # rows = b*h*w, cols = c*N channel-major (matches conv_w.reshape(outc, -1))
        return jnp.transpose(vals, (0, 2, 3, 1, 4)).reshape(M, c * N)

    corners = jnp.stack([gather_rows(qlt_x, qlt_y), gather_rows(qrb_x, qrb_y),
                         gather_rows(qlt_x, qrb_y), gather_rows(qrb_x, qlt_y)],
                        axis=0).astype(jnp.bfloat16)

    w_col = params["conv_w"].reshape(params["conv_w"].shape[0], -1).T        # (c*N, out_pg)
    return corners, gains, w_col, (h, w_out)


def group_deform_conv_forward(x, group_params, groups, ks, stride, pad):
    b, C, H, W = x.shape
    cpg = C // groups
    N = ks * ks
    K = cpg * N

    corners_list, gains_list, w_list = [], [], []
    h = w_out = None
    for g in range(groups):
        xg = x[:, g * cpg:(g + 1) * cpg]
        # TODO(synk): per-group cbam / compute_loss are undefined in the reference
        # source; their output only feeds the (undefined) loss, so they are skipped.
        corners, gains, w_col, (h, w_out) = _prepare_group(
            xg, group_params[g], ks, pad, stride)
        corners_list.append(corners)
        gains_list.append(gains)
        w_list.append(w_col)

    M = b * h * w_out
    out_pg = w_list[0].shape[1]
    oc_total = groups * out_pg
    oc_pad = _round_up(oc_total, 128)          # one lane-dense slab for ALL groups

    def footprint(tm):                         # per-step streaming VMEM bytes
        return (2 * (groups * 4 * tm * K * 2 + groups * 4 * tm * N * 2
                     + tm * oc_pad * 2)
                + groups * K * out_pg * 2 + N * K * 2)

    tm = 512                                   # sweepable (512-1024); mem-bound sweet spot
    while tm > 8 and footprint(tm) > (20 << 20):
        tm //= 2
    tm = max(8, min(tm, _round_up(M, 8)))
    Mp = _round_up(M, tm)
    vmem_limit = int(min(60 << 20, max(32 << 20, 2 * footprint(tm) + (8 << 20))))

    def pack(lst):                             # list of (4, M, last) -> (G*4, Mp, last)
        arr = jnp.stack(lst, axis=0).reshape(groups * 4, M, lst[0].shape[-1])
        return jnp.pad(arr, ((0, 0), (0, Mp - M), (0, 0)))

    corners = pack(corners_list)                                    # bf16 (G*4, Mp, K)
    gains = pack(gains_list)                                        # bf16 (G*4, Mp, N)
    w_flat = jnp.stack(w_list, axis=0).astype(jnp.bfloat16)         # (G, K, out_pg)
    # Exact 0/1 channel-broadcast matrix: expand[n, ci*N + n] = 1 (exact in bf16).
    expand = (jnp.arange(K)[None, :] % N == jnp.arange(N)[:, None]).astype(jnp.bfloat16)

    out_rows = deform_sample_and_conv(corners, gains, expand, w_flat, oc_pad,
                                      tm=tm, vmem_limit_bytes=vmem_limit)

    out = out_rows[:M, :oc_total].astype(jnp.float32)               # (M, groups*out_pg)
    out = out.reshape(b, h, w_out, oc_total)
    out = jnp.transpose(out, (0, 3, 1, 2))                          # (b, C_out, h, w)

    # TODO(synk): compute_loss / cbam are undefined in the reference source; the
    # loss is stubbed to 0 — it does not affect the output feature map.
    loss = jnp.float32(0.0)
    return out, loss


# ---------------------------------------------------------------------------
# Deterministic parameter init (shapes follow the PyTorch __init__)
# ---------------------------------------------------------------------------
def init_group_params(key, in_ch_pg, out_ch_pg, ks):
    N = ks * ks
    k1, k2, k3 = jax.random.split(key, 3)
    return dict(
        conv_w=jax.random.normal(k1, (out_ch_pg, in_ch_pg, ks, ks), jnp.float32) * 0.1,
        p_w=jnp.zeros((2 * N, in_ch_pg, 3, 3), jnp.float32),   # nn.init.constant_(w, 0)
        p_b=jax.random.normal(k2, (2 * N,), jnp.float32) * 0.5,
        m_w=jnp.zeros((N, in_ch_pg, 3, 3), jnp.float32),       # nn.init.constant_(w, 0)
        m_b=jax.random.normal(k3, (N,), jnp.float32) * 0.1,
    )


if __name__ == "__main__":
    key = jax.random.PRNGKey(0)
    B, C_in, C_out, H, W = 2, 4, 4, 16, 16
    groups, ks, stride, pad = 2, 3, 1, 1

    kx, kp = jax.random.split(key)
    x = jax.random.normal(kx, (B, C_in, H, W), jnp.float32)

    pkeys = jax.random.split(kp, groups)
    group_params = [init_group_params(pkeys[g], C_in // groups, C_out // groups, ks)
                    for g in range(groups)]

    fwd = jax.jit(functools.partial(group_deform_conv_forward,
                                    groups=groups, ks=ks, stride=stride, pad=pad))
    out, total_loss = fwd(x, group_params)
    out = jax.block_until_ready(out)
    total_loss = jax.block_until_ready(total_loss)

    assert out.shape == (B, C_out, H, W), out.shape
    assert bool(jnp.all(jnp.isfinite(out)))
    print("KERNEL_OK")
</pallas_src>

<mosaic_0001>
module attributes {stable_mosaic.version = 11 : i64} {
  func.func @_fused_deform_matmul_kernel(%arg0: i32, %arg1: memref<8x512x18xbf16, #tpu.memory_space<vmem>>, %arg2: memref<8x512x9xbf16, #tpu.memory_space<vmem>>, %arg3: memref<9x18xbf16, #tpu.memory_space<vmem>>, %arg4: memref<2x18x2xbf16, #tpu.memory_space<vmem>>, %arg5: memref<512x128xbf16, #tpu.memory_space<vmem>>) attributes {dimension_semantics = [#tpu.dimension_semantics<parallel>], iteration_bounds = array<i64: 1>, scalar_prefetch = 0 : i64, scratch_operands = 0 : i64, tpu.core_type = #tpu.core_type<tc>, window_params = [{transform_indices = @transform_0, window_bounds = array<i64: 8, 512, 18>}, {transform_indices = @transform_1, window_bounds = array<i64: 8, 512, 9>}, {pipeline_mode = #tpu.pipeline_mode<synchronous>, transform_indices = @transform_2, window_bounds = array<i64: 9, 18>}, {pipeline_mode = #tpu.pipeline_mode<synchronous>, transform_indices = @transform_3, window_bounds = array<i64: 2, 18, 2>}, {transform_indices = @transform_4, window_bounds = array<i64: 512, 128>}]} {
    %c0 = arith.constant 0 : index
    %c0_0 = arith.constant 0 : index
    %0 = vector.load %arg3[%c0, %c0_0] : memref<9x18xbf16, #tpu.memory_space<vmem>>, vector<9x18xbf16>
    %cst = arith.constant 0.000000e+00 : bf16
    %1 = vector.broadcast %cst : bf16 to vector<512x128xbf16>
    %c0_1 = arith.constant 0 : index
    %c0_2 = arith.constant 0 : index
    %2 = vector.load %arg5[%c0_1, %c0_2] : memref<512x128xbf16, #tpu.memory_space<vmem>>, vector<512x128xbf16>
    tpu.vector_store %arg5[%c0_1, %c0_2], %1 {strides = array<i32>} : memref<512x128xbf16, #tpu.memory_space<vmem>>, vector<512x128xbf16>,
    %c0_3 = arith.constant 0 : index
    %c0_4 = arith.constant 0 : index
    %c0_5 = arith.constant 0 : index
    %3 = vector.load %arg2[%c0_3, %c0_4, %c0_5] : memref<8x512x9xbf16, #tpu.memory_space<vmem>>, vector<1x512x9xbf16>
    %4 = vector.shape_cast %3 : vector<1x512x9xbf16> to vector<512x9xbf16>
    %cst_6 = arith.constant dense<0.000000e+00> : vector<512x18xf32>
    %5 = tpu.matmul %4, %0, %cst_6 {dimension_numbers = #tpu.dot_dimension_numbers<[1], [0], [0], [1], [0, 0, 1, 1], [], []>} : vector<512x9xbf16>, vector<9x18xbf16>, vector<512x18xf32> -> vector<512x18xf32>
    %c0_7 = arith.constant 0 : index
    %c0_8 = arith.constant 0 : index
    %c0_9 = arith.constant 0 : index
    %6 = vector.load %arg1[%c0_7, %c0_8, %c0_9] : memref<8x512x18xbf16, #tpu.memory_space<vmem>>, vector<1x512x18xbf16>
    %7 = vector.shape_cast %6 : vector<1x512x18xbf16> to vector<512x18xbf16>
    %8 = arith.extf %7 : vector<512x18xbf16> to vector<512x18xf32>
    %9 = arith.mulf %5, %8 : vector<512x18xf32>
    %c1 = arith.constant 1 : index
    %c0_10 = arith.constant 0 : index
    %c0_11 = arith.constant 0 : index
    %10 = vector.load %arg2[%c1, %c0_10, %c0_11] : memref<8x512x9xbf16, #tpu.memory_space<vmem>>, vector<1x512x9xbf16>
    %11 = vector.shape_cast %10 : vector<1x512x9xbf16> to vector<512x9xbf16>
    %cst_12 = arith.constant dense<0.000000e+00> : vector<512x18xf32>
    %12 = tpu.matmul %11, %0, %cst_12 {dimension_numbers = #tpu.dot_dimension_numbers<[1], [0], [0], [1], [0, 0, 1, 1], [], []>} : vector<512x9xbf16>, vector<9x18xbf16>, vector<512x18xf32> -> vector<512x18xf32>
    %c1_13 = arith.constant 1 : index
    %c0_14 = arith.constant 0 : index
    %c0_15 = arith.constant 0 : index
    %13 = vector.load %arg1[%c1_13, %c0_14, %c0_15] : memref<8x512x18xbf16, #tpu.memory_space<vmem>>, vector<1x512x18xbf16>
    %14 = vector.shape_cast %13 : vector<1x512x18xbf16> to vector<512x18xbf16>
    %15 = arith.extf %14 : vector<512x18xbf16> to vector<512x18xf32>
    %16 = arith.mulf %12, %15 : vector<512x18xf32>
    %17 = arith.addf %9, %16 : vector<512x18xf32>
    %c2 = arith.constant 2 : index
    %c0_16 = arith.constant 0 : index
    %c0_17 = arith.constant 0 : index
    %18 = vector.load %arg2[%c2, %c0_16, %c0_17] : memref<8x512x9xbf16, #tpu.memory_space<vmem>>, vector<1x512x9xbf16>
    %19 = vector.shape_cast %18 : vector<1x512x9xbf16> to vector<512x9xbf16>
    %cst_18 = arith.constant dense<0.000000e+00> : vector<512x18xf32>
    %20 = tpu.matmul %19, %0, %cst_18 {dimension_numbers = #tpu.dot_dimension_numbers<[1], [0], [0], [1], [0, 0, 1, 1], [], []>} : vector<512x9xbf16>, vector<9x18xbf16>, vector<512x18xf32> -> vector<512x18xf32>
    %c2_19 = arith.constant 2 : index
    %c0_20 = arith.constant 0 : index
    %c0_21 = arith.constant 0 : index
    %21 = vector.load %arg1[%c2_19, %c0_20, %c0_21] : memref<8x512x18xbf16, #tpu.memory_space<vmem>>, vector<1x512x18xbf16>
    %22 = vector.shape_cast %21 : vector<1x512x18xbf16> to vector<512x18xbf16>
    %23 = arith.extf %22 : vector<512x18xbf16> to vector<512x18xf32>
    %24 = arith.mulf %20, %23 : vector<512x18xf32>
    %25 = arith.addf %17, %24 : vector<512x18xf32>
    %c3 = arith.constant 3 : index
    %c0_22 = arith.constant 0 : index
    %c0_23 = arith.constant 0 : index
    %26 = vector.load %arg2[%c3, %c0_22, %c0_23] : memref<8x512x9xbf16, #tpu.memory_space<vmem>>, vector<1x512x9xbf16>
    %27 = vector.shape_cast %26 : vector<1x512x9xbf16> to vector<512x9xbf16>
    %cst_24 = arith.constant dense<0.000000e+00> : vector<512x18xf32>
    %28 = tpu.matmul %27, %0, %cst_24 {dimension_numbers = #tpu.dot_dimension_numbers<[1], [0], [0], [1], [0, 0, 1, 1], [], []>} : vector<512x9xbf16>, vector<9x18xbf16>, vector<512x18xf32> -> vector<512x18xf32>
    %c3_25 = arith.constant 3 : index
    %c0_26 = arith.constant 0 : index
    %c0_27 = arith.constant 0 : index
    %29 = vector.load %arg1[%c3_25, %c0_26, %c0_27] : memref<8x512x18xbf16, #tpu.memory_space<vmem>>, vector<1x512x18xbf16>
    %30 = vector.shape_cast %29 : vector<1x512x18xbf16> to vector<512x18xbf16>
    %31 = arith.extf %30 : vector<512x18xbf16> to vector<512x18xf32>
    %32 = arith.mulf %28, %31 : vector<512x18xf32>
    %33 = arith.addf %25, %32 : vector<512x18xf32>
    %34 = arith.truncf %33 : vector<512x18xf32> to vector<512x18xbf16>
    %c0_28 = arith.constant 0 : index
    %c0_29 = arith.constant 0 : index
    %c0_30 = arith.constant 0 : index
    %35 = vector.load %arg4[%c0_28, %c0_29, %c0_30] : memref<2x18x2xbf16, #tpu.memory_space<vmem>>, vector<1x18x2xbf16>
    %36 = vector.shape_cast %35 : vector<1x18x2xbf16> to vector<18x2xbf16>
    %cst_31 = arith.constant dense<0.000000e+00> : vector<512x2xf32>
    %37 = tpu.matmul %34, %36, %cst_31 {dimension_numbers = #tpu.dot_dimension_numbers<[1], [0], [0], [1], [0, 0, 1, 1], [], []>} : vector<512x18xbf16>, vector<18x2xbf16>, vector<512x2xf32> -> vector<512x2xf32>
    %38 = arith.truncf %37 : vector<512x2xf32> to vector<512x2xbf16>
    %c0_32 = arith.constant 0 : index
    %c0_33 = arith.constant 0 : index
    %39 = vector.load %arg5[%c0_32, %c0_33] : memref<512x128xbf16, #tpu.memory_space<vmem>>, vector<512x2xbf16>
    tpu.vector_store %arg5[%c0_32, %c0_33], %38 {strides = array<i32>} : memref<512x128xbf16, #tpu.memory_space<vmem>>, vector<512x2xbf16>,
    %c4 = arith.constant 4 : index
    %c0_34 = arith.constant 0 : index
    %c0_35 = arith.constant 0 : index
    %40 = vector.load %arg2[%c4, %c0_34, %c0_35] : memref<8x512x9xbf16, #tpu.memory_space<vmem>>, vector<1x512x9xbf16>
    %41 = vector.shape_cast %40 : vector<1x512x9xbf16> to vector<512x9xbf16>
    %cst_36 = arith.constant dense<0.000000e+00> : vector<512x18xf32>
    %42 = tpu.matmul %41, %0, %cst_36 {dimension_numbers = #tpu.dot_dimension_numbers<[1], [0], [0], [1], [0, 0, 1, 1], [], []>} : vector<512x9xbf16>, vector<9x18xbf16>, vector<512x18xf32> -> vector<512x18xf32>
    %c4_37 = arith.constant 4 : index
    %c0_38 = arith.constant 0 : index
    %c0_39 = arith.constant 0 : index
    %43 = vector.load %arg1[%c4_37, %c0_38, %c0_39] : memref<8x512x18xbf16, #tpu.memory_space<vmem>>, vector<1x512x18xbf16>
    %44 = vector.shape_cast %43 : vector<1x512x18xbf16> to vector<512x18xbf16>
    %45 = arith.extf %44 : vector<512x18xbf16> to vector<512x18xf32>
    %46 = arith.mulf %42, %45 : vector<512x18xf32>
    %c5 = arith.constant 5 : index
    %c0_40 = arith.constant 0 : index
    %c0_41 = arith.constant 0 : index
    %47 = vector.load %arg2[%c5, %c0_40, %c0_41] : memref<8x512x9xbf16, #tpu.memory_space<vmem>>, vector<1x512x9xbf16>
    %48 = vector.shape_cast %47 : vector<1x512x9xbf16> to vector<512x9xbf16>
    %cst_42 = arith.constant dense<0.000000e+00> : vector<512x18xf32>
    %49 = tpu.matmul %48, %0, %cst_42 {dimension_numbers = #tpu.dot_dimension_numbers<[1], [0], [0], [1], [0, 0, 1, 1], [], []>} : vector<512x9xbf16>, vector<9x18xbf16>, vector<512x18xf32> -> vector<512x18xf32>
    %c5_43 = arith.constant 5 : index
    %c0_44 = arith.constant 0 : index
    %c0_45 = arith.constant 0 : index
    %50 = vector.load %arg1[%c5_43, %c0_44, %c0_45] : memref<8x512x18xbf16, #tpu.memory_space<vmem>>, vector<1x512x18xbf16>
    %51 = vector.shape_cast %50 : vector<1x512x18xbf16> to vector<512x18xbf16>
    %52 = arith.extf %51 : vector<512x18xbf16> to vector<512x18xf32>
    %53 = arith.mulf %49, %52 : vector<512x18xf32>
    %54 = arith.addf %46, %53 : vector<512x18xf32>
    %c6 = arith.constant 6 : index
    %c0_46 = arith.constant 0 : index
    %c0_47 = arith.constant 0 : index
    %55 = vector.load %arg2[%c6, %c0_46, %c0_47] : memref<8x512x9xbf16, #tpu.memory_space<vmem>>, vector<1x512x9xbf16>
    %56 = vector.shape_cast %55 : vector<1x512x9xbf16> to vector<512x9xbf16>
    %cst_48 = arith.constant dense<0.000000e+00> : vector<512x18xf32>
    %57 = tpu.matmul %56, %0, %cst_48 {dimension_numbers = #tpu.dot_dimension_numbers<[1], [0], [0], [1], [0, 0, 1, 1], [], []>} : vector<512x9xbf16>, vector<9x18xbf16>, vector<512x18xf32> -> vector<512x18xf32>
    %c6_49 = arith.constant 6 : index
    %c0_50 = arith.constant 0 : index
    %c0_51 = arith.constant 0 : index
    %58 = vector.load %arg1[%c6_49, %c0_50, %c0_51] : memref<8x512x18xbf16, #tpu.memory_space<vmem>>, vector<1x512x18xbf16>
    %59 = vector.shape_cast %58 : vector<1x512x18xbf16> to vector<512x18xbf16>
    %60 = arith.extf %59 : vector<512x18xbf16> to vector<512x18xf32>
    %61 = arith.mulf %57, %60 : vector<512x18xf32>
    %62 = arith.addf %54, %61 : vector<512x18xf32>
    %c7 = arith.constant 7 : index
    %c0_52 = arith.constant 0 : index
    %c0_53 = arith.constant 0 : index
    %63 = vector.load %arg2[%c7, %c0_52, %c0_53] : memref<8x512x9xbf16, #tpu.memory_space<vmem>>, vector<1x512x9xbf16>
    %64 = vector.shape_cast %63 : vector<1x512x9xbf16> to vector<512x9xbf16>
    %cst_54 = arith.constant dense<0.000000e+00> : vector<512x18xf32>
    %65 = tpu.matmul %64, %0, %cst_54 {dimension_numbers = #tpu.dot_dimension_numbers<[1], [0], [0], [1], [0, 0, 1, 1], [], []>} : vector<512x9xbf16>, vector<9x18xbf16>, vector<512x18xf32> -> vector<512x18xf32>
    %c7_55 = arith.constant 7 : index
    %c0_56 = arith.constant 0 : index
    %c0_57 = arith.constant 0 : index
    %66 = vector.load %arg1[%c7_55, %c0_56, %c0_57] : memref<8x512x18xbf16, #tpu.memory_space<vmem>>, vector<1x512x18xbf16>
    %67 = vector.shape_cast %66 : vector<1x512x18xbf16> to vector<512x18xbf16>
    %68 = arith.extf %67 : vector<512x18xbf16> to vector<512x18xf32>
    %69 = arith.mulf %65, %68 : vector<512x18xf32>
    %70 = arith.addf %62, %69 : vector<512x18xf32>
    %71 = arith.truncf %70 : vector<512x18xf32> to vector<512x18xbf16>
    %c1_58 = arith.constant 1 : index
    %c0_59 = arith.constant 0 : index
    %c0_60 = arith.constant 0 : index
    %72 = vector.load %arg4[%c1_58, %c0_59, %c0_60] : memref<2x18x2xbf16, #tpu.memory_space<vmem>>, vector<1x18x2xbf16>
    %73 = vector.shape_cast %72 : vector<1x18x2xbf16> to vector<18x2xbf16>
    %cst_61 = arith.constant dense<0.000000e+00> : vector<512x2xf32>
    %74 = tpu.matmul %71, %73, %cst_61 {dimension_numbers = #tpu.dot_dimension_numbers<[1], [0], [0], [1], [0, 0, 1, 1], [], []>} : vector<512x18xbf16>, vector<18x2xbf16>, vector<512x2xf32> -> vector<512x2xf32>
    %75 = arith.truncf %74 : vector<512x2xf32> to vector<512x2xbf16>
    %c0_62 = arith.constant 0 : index
    %c2_63 = arith.constant 2 : index
    %76 = vector.load %arg5[%c0_62, %c2_63] : memref<512x128xbf16, #tpu.memory_space<vmem>>, vector<512x2xbf16>
    tpu.vector_store %arg5[%c0_62, %c2_63], %75 {strides = array<i32>} : memref<512x128xbf16, #tpu.memory_space<vmem>>, vector<512x2xbf16>,
    return
  }
  func.func @transform_0(%arg0: i32) -> (i32, i32, i32) {
    %c0_i32 = arith.constant 0 : i32
    %c0_i32_0 = arith.constant 0 : i32
    %c0_i32_1 = arith.constant 0 : i32
    return %c0_i32, %arg0, %c0_i32_0 : i32, i32, i32
  }
  func.func @transform_1(%arg0: i32) -> (i32, i32, i32) {
    %c0_i32 = arith.constant 0 : i32
    %c0_i32_0 = arith.constant 0 : i32
    %c0_i32_1 = arith.constant 0 : i32
    return %c0_i32, %arg0, %c0_i32_0 : i32, i32, i32
  }
  func.func @transform_2(%arg0: i32) -> (i32, i32) {
    %c0_i32 = arith.constant 0 : i32
    %c0_i32_0 = arith.constant 0 : i32
    %c0_i32_1 = arith.constant 0 : i32
    return %c0_i32, %c0_i32_0 : i32, i32
  }
  func.func @transform_3(%arg0: i32) -> (i32, i32, i32) {
    %c0_i32 = arith.constant 0 : i32
    %c0_i32_0 = arith.constant 0 : i32
    %c0_i32_1 = arith.constant 0 : i32
    %c0_i32_2 = arith.constant 0 : i32
    return %c0_i32, %c0_i32_0, %c0_i32_1 : i32, i32, i32
  }
  func.func @transform_4(%arg0: i32) -> (i32, i32) {
    %c0_i32 = arith.constant 0 : i32
    %c0_i32_0 = arith.constant 0 : i32
    return %arg0, %c0_i32 : i32, i32
  }
}

</mosaic_0001>

<bundles_post_ra>
// kernel: group_deform_conv_forward.1
= control target key start
LH: loop header
LB: loop body
LE: loop exit
PB: predicated region body
PF: predicated region fallthrough
CT: control target
= control target key end

     0   :  { %vm410_vm0 = vcmask 1043456   ;;  %vm411_vm1 = vcmask 1044480   ;;  %vm313_vm2 = vcmask 72704   ;;  %v12821_v1 = vmov 65535   ;;  %s16488_s2 = inlined_call_operand.vmem [shape: bf16[9,18], index: 2, kind: input, shape index: {}]   ;;  %s16489_s1 = inlined_call_operand.vmem [shape: bf16[8,512,9], index: 1, kind: input, shape index: {}]   ;;  %s16490_s3 = inlined_call_operand.vmem [shape: bf16[2,18,2], index: 3, kind: input, shape index: {}]   ;;  %s16491_s0 = inlined_call_operand.vmem [shape: bf16[8,512,18], index: 0, kind: input, shape index: {}]   ;;  %s16492_s4 = inlined_call_operand.vmem [shape: bf16[512,128], index: 4, kind: output, shape index: {}]  }
   0x1   :  { %v12560_v0 = vld [vmem:[%s16488_s2] sm:$0x1f]   ;;  %v412_v2 = vsel %vm410_vm0, 4294967295, %v12821_v1  ;;  %v12563_v7 = vld [vmem:[%s16489_s1 + $0x8] sm:$0xff]   ;;  %v12565_v9 = vld [vmem:[%s16489_s1 + $0x10] sm:$0xff]   ;;  %vm3640_vm3 = vcmask 1040384  }
   0x2   :  { %v12561_v3 = vld [vmem:[%s16489_s1] sm:$0xff]   ;;  %v413_v4 = vsel %vm411_vm1, %v412_v2, 0  ;;  %v12564_v8 = vld [vmem:[%s16489_s1 + $0x108] sm:$0xff]   ;;  %v12566_v10 = vld [vmem:[%s16489_s1 + $0x110] sm:$0xff]   ;;  %vm3543_vm4 = vcmask 146432   ;;  %vm4189_vm5 = vcmask 11264  }
   0x3   :  { %v12562_v5 = vld [vmem:[%s16489_s1 + $0x100] sm:$0xff]   ;;  %v12858_v6 = vand.u32 %v12560_v0, %v413_v4  ;;  %11893 = vmatprep.mubr.msk.bf16.mxu0 %vm313_vm2, %v12561_v3  ;;  %v12567_v11 = vld [vmem:[%s16489_s1 + $0x18] sm:$0xff]   ;;  %v12571_v15 = vld [vmem:[%s16489_s1 + $0x28] sm:$0xff]   ;;  %vm8475_vm6 = vcmask 27664  }
   0x4   :  { %11959 = vmatprep.mubr.msk.bf16.mxu1 %vm313_vm2, %v12562_v5  ;;  %v12568_v12 = vld [vmem:[%s16489_s1 + $0x118] sm:$0xff]   ;;  %v12569_v13 = vld [vmem:[%s16489_s1 + $0x20] sm:$0xff]   ;;  %v12572_v16 = vld [vmem:[%s16489_s1 + $0x128] sm:$0xff]  }
   0x5   :  { %11891 = vmatprep.subr.bf16.mxu0 %v12858_v6  ;;  %11957 = vmatprep.subr.bf16.mxu1 %v12858_v6  ;;  %v12570_v14 = vld [vmem:[%s16489_s1 + $0x120] sm:$0xff]   ;;  %v12573_v17 = vld [vmem:[%s16489_s1 + $0x30] sm:$0xff]   ;;  %v12575_v19 = vld [vmem:[%s16489_s1 + $0x38] sm:$0xff]  }
   0x6   :  { %11892 = vmatpush3.bf16.msra.mxu0 %v12858_v6  ;;  %11958 = vmatpush3.bf16.msra.mxu1 %v12858_v6  ;;  %v12574_v18 = vld [vmem:[%s16489_s1 + $0x130] sm:$0xff]   ;;  %v12576_v20 = vld [vmem:[%s16489_s1 + $0x138] sm:$0xff]   ;;  %v12577_v21 = vld [vmem:[%s16489_s1 + $0x40] sm:$0xff]  }
   0x7   :  { %12023 = vmatprep.subr.bf16.mxu0 %v12858_v6  ;;  %12089 = vmatprep.subr.bf16.mxu1 %v12858_v6  ;;  %v12578_v22 = vld [vmem:[%s16489_s1 + $0x140] sm:$0xff]   ;;  %v12579_v23 = vld [vmem:[%s16489_s1 + $0x48] sm:$0xff]   ;;  %v12581_v25 = vld [vmem:[%s16489_s1 + $0x50] sm:$0xff]  }
   0x8   :  { %v12580_v24 = vld [vmem:[%s16489_s1 + $0x148] sm:$0xff]   ;;  %v12582_v26 = vld [vmem:[%s16489_s1 + $0x150] sm:$0xff]   ;;  %v12583_v27 = vld [vmem:[%s16489_s1 + $0x58] sm:$0xff]  }
   0x9   :  { %11894 = vmatmul.mubr.msk.bf16.vlgmr.msra.gmra.mrb[0].mxu0 %vm313_vm2, %v12563_v7  ;;  %11960 = vmatmul.mubr.msk.bf16.vlgmr.msra.gmra.mrb[0].mxu1 %vm313_vm2, %v12564_v8  ;;  %v12584_v28 = vld [vmem:[%s16489_s1 + $0x158] sm:$0xff]   ;;  %v12585_v29 = vld [vmem:[%s16489_s1 + $0x60] sm:$0xff]   ;;  %v12587_v31 = vld [vmem:[%s16489_s1 + $0x68] sm:$0xff]  }
   0xa   :  { %12024 = vmatpush3.bf16.msra.mxu0 %v12858_v6  ;;  %12090 = vmatpush3.bf16.msra.mxu1 %v12858_v6  ;;  %v12586_v30 = vld [vmem:[%s16489_s1 + $0x160] sm:$0xff]   ;;  %v12588_v32 = vld [vmem:[%s16489_s1 + $0x168] sm:$0xff]   ;;  %v12589_v33 = vld [vmem:[%s16489_s1 + $0x70] sm:$0xff]  }
   0xb   :  { %11897 = vmatprep.mubr.msk.bf16.mxu0 %vm313_vm2, %v12565_v9  ;;  %11963 = vmatprep.mubr.msk.bf16.mxu1 %vm313_vm2, %v12566_v10  ;;  %v12590_v34 = vld [vmem:[%s16489_s1 + $0x170] sm:$0xff]   ;;  %v12591_v35 = vld [vmem:[%s16489_s1 + $0x78] sm:$0xff]   ;;  %v12593_v37 = vld [vmem:[%s16489_s1 + $0x80] sm:$0xff]  }
   0xc   :  { %12223 = vmatprep.subr.bf16.mxu1 %v12858_v6  ;;  %v12592_v36 = vld [vmem:[%s16489_s1 + $0x178] sm:$0xff]   ;;  %v12594_v38 = vld [vmem:[%s16489_s1 + $0x180] sm:$0xff]   ;;  %v12595_v39 = vld [vmem:[%s16489_s1 + $0x88] sm:$0xff]  }
   0xd   :  { %v12596_v40 = vld [vmem:[%s16489_s1 + $0x188] sm:$0xff]   ;;  %v12597_v41 = vld [vmem:[%s16489_s1 + $0x90] sm:$0xff]   ;;  %v12599_v43 = vld [vmem:[%s16489_s1 + $0x98] sm:$0xff]  }
   0xe   :  { %v12598_v42 = vld [vmem:[%s16489_s1 + $0x190] sm:$0xff]   ;;  %v12600_v44 = vld [vmem:[%s16489_s1 + $0x198] sm:$0xff]   ;;  %v12601_v45 = vld [vmem:[%s16489_s1 + $0xa0] sm:$0xff]  }
   0xf   :  { %v12602_v46 = vld [vmem:[%s16489_s1 + $0x1a0] sm:$0xff]   ;;  %v12603_v47 = vld [vmem:[%s16489_s1 + $0xa8] sm:$0xff]   ;;  %v12605_v49 = vld [vmem:[%s16489_s1 + $0xb0] sm:$0xff]  }
  0x10   :  { %v12604_v48 = vld [vmem:[%s16489_s1 + $0x1a8] sm:$0xff]   ;;  %v12606_v50 = vld [vmem:[%s16489_s1 + $0x1b0] sm:$0xff]   ;;  %v12607_v51 = vld [vmem:[%s16489_s1 + $0xb8] sm:$0xff]  }
  0x11   :  { %11898 = vmatmul.mubr.msk.bf16.gmra.mrb[4].mxu0 %vm313_vm2, %v12567_v11  ;;  %11964 = vmatmul.mubr.msk.bf16.gmra.mrb[4].mxu1 %vm313_vm2, %v12568_v12  ;;  %v12608_v52 = vld [vmem:[%s16489_s1 + $0x1b8] sm:$0xff]   ;;  %v12609_v53 = vld [vmem:[%s16489_s1 + $0xc0] sm:$0xff]   ;;  %v12611_v55 = vld [vmem:[%s16489_s1 + $0xc8] sm:$0xff]  }
  0x12   :  { %11901 = vmatprep.mubr.msk.bf16.mxu0 %vm313_vm2, %v12569_v13  ;;  %11967 = vmatprep.mubr.msk.bf16.mxu1 %vm313_vm2, %v12570_v14  ;;  %v12610_v54 = vld [vmem:[%s16489_s1 + $0x1c0] sm:$0xff]   ;;  %v12612_v56 = vld [vmem:[%s16489_s1 + $0x1c8] sm:$0xff]   ;;  %v12613_v57 = vld [vmem:[%s16489_s1 + $0xd0] sm:$0xff]  }
  0x13   :  { %v12614_v58 = vld [vmem:[%s16489_s1 + $0x1d0] sm:$0xff]   ;;  %v12615_v59 = vld [vmem:[%s16489_s1 + $0xd8] sm:$0xff]   ;;  %v12617_v61 = vld [vmem:[%s16489_s1 + $0xe0] sm:$0xff]  }
  0x14   :  { %v12616_v60 = vld [vmem:[%s16489_s1 + $0x1d8] sm:$0xff]   ;;  %v12618_v62 = vld [vmem:[%s16489_s1 + $0x1e0] sm:$0xff]   ;;  %v12619_v63 = vld [vmem:[%s16489_s1 + $0xe8] sm:$0xff]  }
  0x15   :  { %v12620_v0 = vld [vmem:[%s16489_s1 + $0x1e8] sm:$0xff]   ;;  %v12621_v1 = vld [vmem:[%s16489_s1 + $0xf0] sm:$0xff]   ;;  %v12677_v3 = vld [vmem:[%s16490_s3] sm:$0xff]  }
  0x16   :  { %v12622_v2 = vld [vmem:[%s16489_s1 + $0x1f0] sm:$0xff]   ;;  %12155 = vmatprep.subr.bf16.mxu0 %v12677_v3  ;;  %v12623_v4 = vld [vmem:[%s16489_s1 + $0xf8] sm:$0xff]   ;;  %v12625_v7 = vld [vmem:[%s16489_s1 + $0x200] sm:$0xff]  }
  0x17   :  { %v12624_v5 = vld [vmem:[%s16489_s1 + $0x1f8] sm:$0xff]   ;;  %v12626_v8 = vld [vmem:[%s16489_s1 + $0x300] sm:$0xff]   ;;  %v12627_v9 = vld [vmem:[%s16489_s1 + $0x208] sm:$0xff]  }
  0x18   :  { %v12628_v10 = vld [vmem:[%s16489_s1 + $0x308] sm:$0xff]   ;;  %v12629_v11 = vld [vmem:[%s16489_s1 + $0x210] sm:$0xff]   ;;  %v12631_v13 = vld [vmem:[%s16489_s1 + $0x218] sm:$0xff]  }
  0x19   :  { %11902 = vmatmul.mubr.msk.bf16.gmra.mrb[8].mxu0 %vm313_vm2, %v12571_v15  ;;  %11968 = vmatmul.mubr.msk.bf16.gmra.mrb[8].mxu1 %vm313_vm2, %v12572_v16  ;;  %v12630_v12 = vld [vmem:[%s16489_s1 + $0x310] sm:$0xff]   ;;  %v12632_v14 = vld [vmem:[%s16489_s1 + $0x318] sm:$0xff]   ;;  %v12633_v15 = vld [vmem:[%s16489_s1 + $0x220] sm:$0xff]  }
  0x1a   :  { %11905 = vmatprep.mubr.msk.bf16.mxu0 %vm313_vm2, %v12573_v17  ;;  %11971 = vmatprep.mubr.msk.bf16.mxu1 %vm313_vm2, %v12574_v18  ;;  %v12634_v16 = vld [vmem:[%s16489_s1 + $0x320] sm:$0xff]   ;;  %v12635_v17 = vld [vmem:[%s16489_s1 + $0x228] sm:$0xff]  }
  0x1b   :  { %v12636_v18 = vld [vmem:[%s16489_s1 + $0x328] sm:$0xff]  }
  0x21   :  { %11906 = vmatmul.mubr.msk.bf16.gmra.mrb[12].mxu0 %vm313_vm2, %v12575_v19  ;;  %11972 = vmatmul.mubr.msk.bf16.gmra.mrb[12].mxu1 %vm313_vm2, %v12576_v20  ;;  %v12637_v19 = vld [vmem:[%s16489_s1 + $0x230] sm:$0xff]  }
  0x22   :  { %11909 = vmatprep.mubr.msk.bf16.mxu0 %vm313_vm2, %v12577_v21  ;;  %11975 = vmatprep.mubr.msk.bf16.mxu1 %vm313_vm2, %v12578_v22  ;;  %v12638_v20 = vld [vmem:[%s16489_s1 + $0x330] sm:$0xff]   ;;  %v12639_v21 = vld [vmem:[%s16489_s1 + $0x238] sm:$0xff]  }
  0x23   :  { %v12640_v22 = vld [vmem:[%s16489_s1 + $0x338] sm:$0xff]  }
  0x29   :  { %11910 = vmatmul.mubr.msk.bf16.gmra.mrb[16].mxu0 %vm313_vm2, %v12579_v23  ;;  %11976 = vmatmul.mubr.msk.bf16.gmra.mrb[16].mxu1 %vm313_vm2, %v12580_v24  ;;  %v12641_v23 = vld [vmem:[%s16489_s1 + $0x240] sm:$0xff]  }
  0x2a   :  { %11913 = vmatprep.mubr.msk.bf16.mxu0 %vm313_vm2, %v12581_v25  ;;  %11979 = vmatprep.mubr.msk.bf16.mxu1 %vm313_vm2, %v12582_v26  ;;  %v12642_v24 = vld [vmem:[%s16489_s1 + $0x340] sm:$0xff]   ;;  %v12643_v25 = vld [vmem:[%s16489_s1 + $0x248] sm:$0xff]  }
  0x2b   :  { %v12644_v26 = vld [vmem:[%s16489_s1 + $0x348] sm:$0xff]  }
  0x31   :  { %11914 = vmatmul.mubr.msk.bf16.gmra.mrb[20].mxu0 %vm313_vm2, %v12583_v27  ;;  %11980 = vmatmul.mubr.msk.bf16.gmra.mrb[20].mxu1 %vm313_vm2, %v12584_v28  ;;  %v12645_v27 = vld [vmem:[%s16489_s1 + $0x250] sm:$0xff]  }
  0x32   :  { %11917 = vmatprep.mubr.msk.bf16.mxu0 %vm313_vm2, %v12585_v29  ;;  %11983 = vmatprep.mubr.msk.bf16.mxu1 %vm313_vm2, %v12586_v30  ;;  %v12646_v28 = vld [vmem:[%s16489_s1 + $0x350] sm:$0xff]   ;;  %v12690_v29 = vld [vmem:[%s16490_s3 + $0x8] ss:$0 sps:$4 sm:$0x11]  }
  0x33   :  { %v3642_v30 = vsel %vm3640_vm3, %v12690_v29, 0 }
  0x39   :  { %11918 = vmatmul.mubr.msk.bf16.gmra.mrb[24].mxu0 %vm313_vm2, %v12587_v31  ;;  %11984 = vmatmul.mubr.msk.bf16.gmra.mrb[24].mxu1 %vm313_vm2, %v12588_v32  ;;  %v12647_v31 = vld [vmem:[%s16489_s1 + $0x258] sm:$0xff]  }
  0x3a   :  { %11921 = vmatprep.mubr.msk.bf16.mxu0 %vm313_vm2, %v12589_v33  ;;  %11987 = vmatprep.mubr.msk.bf16.mxu1 %vm313_vm2, %v12590_v34  ;;  %v12648_v32 = vld [vmem:[%s16489_s1 + $0x358] sm:$0xff]   ;;  %v12649_v33 = vld [vmem:[%s16489_s1 + $0x260] sm:$0xff]  }
  0x3b   :  { %v12650_v34 = vld [vmem:[%s16489_s1 + $0x360] sm:$0xff]  }
  0x41   :  { %11922 = vmatmul.mubr.msk.bf16.gmra.mrb[28].mxu0 %vm313_vm2, %v12591_v35  ;;  %11988 = vmatmul.mubr.msk.bf16.gmra.mrb[28].mxu1 %vm313_vm2, %v12592_v36  ;;  %v12651_v35 = vld [vmem:[%s16489_s1 + $0x268] sm:$0xff]  }
  0x42   :  { %11925 = vmatprep.mubr.msk.bf16.mxu0 %vm313_vm2, %v12593_v37  ;;  %11991 = vmatprep.mubr.msk.bf16.mxu1 %vm313_vm2, %v12594_v38  ;;  %v12652_v36 = vld [vmem:[%s16489_s1 + $0x368] sm:$0xff]   ;;  %v12653_v37 = vld [vmem:[%s16489_s1 + $0x270] sm:$0xff]  }
  0x43   :  { %v12654_v38 = vld [vmem:[%s16489_s1 + $0x370] sm:$0xff]  }
  0x49   :  { %11926 = vmatmul.mubr.msk.bf16.gmra.mrb[32].mxu0 %vm313_vm2, %v12595_v39  ;;  %11992 = vmatmul.mubr.msk.bf16.gmra.mrb[32].mxu1 %vm313_vm2, %v12596_v40  ;;  %v12655_v39 = vld [vmem:[%s16489_s1 + $0x278] sm:$0xff]  }
  0x4a   :  { %11929 = vmatprep.mubr.msk.bf16.mxu0 %vm313_vm2, %v12597_v41  ;;  %11995 = vmatprep.mubr.msk.bf16.mxu1 %vm313_vm2, %v12598_v42  ;;  %v12656_v40 = vld [vmem:[%s16489_s1 + $0x378] sm:$0xff]   ;;  %v12657_v41 = vld [vmem:[%s16489_s1 + $0x280] sm:$0xff]  }
  0x4b   :  { %v12658_v42 = vld [vmem:[%s16489_s1 + $0x380] sm:$0xff]  }
  0x51   :  { %11930 = vmatmul.mubr.msk.bf16.gmra.mrb[36].mxu0 %vm313_vm2, %v12599_v43  ;;  %11996 = vmatmul.mubr.msk.bf16.gmra.mrb[36].mxu1 %vm313_vm2, %v12600_v44  ;;  %v12659_v43 = vld [vmem:[%s16489_s1 + $0x288] sm:$0xff]  }
  0x52   :  { %11933 = vmatprep.mubr.msk.bf16.mxu0 %vm313_vm2, %v12601_v45  ;;  %11999 = vmatprep.mubr.msk.bf16.mxu1 %vm313_vm2, %v12602_v46  ;;  %v12660_v44 = vld [vmem:[%s16489_s1 + $0x388] sm:$0xff]   ;;  %v12661_v45 = vld [vmem:[%s16489_s1 + $0x290] sm:$0xff]  }
  0x53   :  { %v12662_v46 = vld [vmem:[%s16489_s1 + $0x390] sm:$0xff]  }
  0x59   :  { %11934 = vmatmul.mubr.msk.bf16.gmra.mrb[40].mxu0 %vm313_vm2, %v12603_v47  ;;  %12000 = vmatmul.mubr.msk.bf16.gmra.mrb[40].mxu1 %vm313_vm2, %v12604_v48  ;;  %v12663_v47 = vld [vmem:[%s16489_s1 + $0x298] sm:$0xff]  }
  0x5a   :  { %11937 = vmatprep.mubr.msk.bf16.mxu0 %vm313_vm2, %v12605_v49  ;;  %12003 = vmatprep.mubr.msk.bf16.mxu1 %vm313_vm2, %v12606_v50  ;;  %v12664_v48 = vld [vmem:[%s16489_s1 + $0x398] sm:$0xff]   ;;  %v12665_v49 = vld [vmem:[%s16489_s1 + $0x2a0] sm:$0xff]  }
  0x5b   :  { %v12666_v50 = vld [vmem:[%s16489_s1 + $0x3a0] sm:$0xff]  }
  0x61   :  { %11938 = vmatmul.mubr.msk.bf16.gmra.mrb[44].mxu0 %vm313_vm2, %v12607_v51  ;;  %12004 = vmatmul.mubr.msk.bf16.gmra.mrb[44].mxu1 %vm313_vm2, %v12608_v52  ;;  %v12667_v51 = vld [vmem:[%s16489_s1 + $0x2a8] sm:$0xff]  }
  0x62   :  { %11941 = vmatprep.mubr.msk.bf16.mxu0 %vm313_vm2, %v12609_v53  ;;  %12007 = vmatprep.mubr.msk.bf16.mxu1 %vm313_vm2, %v12610_v54  ;;  %v12668_v52 = vld [vmem:[%s16489_s1 + $0x3a8] sm:$0xff]  }
  0x63   :  { %v11304_v53 = vld [vmem:[%s16491_s0 + $0x8] sm:$0xff]  }
  0x64   :  { %v11336_v54 = vld [vmem:[%s16491_s0 + $0x108] sm:$0xff]  }
  0x69   :  { %11942 = vmatmul.mubr.msk.bf16.gmra.mrb[48].mxu0 %vm313_vm2, %v12611_v55  ;;  %12008 = vmatmul.mubr.msk.bf16.gmra.mrb[48].mxu1 %vm313_vm2, %v12612_v56  ;;  %v12669_v55 = vld [vmem:[%s16489_s1 + $0x2b0] sm:$0xff]  }
  0x6a   :  { %11945 = vmatprep.mubr.msk.bf16.mxu0 %vm313_vm2, %v12613_v57  ;;  %12011 = vmatprep.mubr.msk.bf16.mxu1 %vm313_vm2, %v12614_v58  ;;  %v12670_v56 = vld [vmem:[%s16489_s1 + $0x3b0] sm:$0xff]   ;;  %v10281_v57 = vld [vmem:[%s16491_s0] sm:$0xff]  }
  0x6b   :  { %v11335_v58 = vld [vmem:[%s16491_s0 + $0x100] sm:$0xff]  }
  0x71   :  { %11946 = vmatmul.mubr.msk.bf16.gmra.mrb[52].mxu0 %vm313_vm2, %v12615_v59  ;;  %12012 = vmatmul.mubr.msk.bf16.gmra.mrb[52].mxu1 %vm313_vm2, %v12616_v60  ;;  %v10286_v59 = vunpack.c.l.bf16 %v11304_v53  ;;  %v10414_v60 = vunpack.c.l.bf16 %v11336_v54 }
  0x72   :  { %11949 = vmatprep.mubr.msk.bf16.mxu0 %vm313_vm2, %v12617_v61  ;;  %12015 = vmatprep.mubr.msk.bf16.mxu1 %vm313_vm2, %v12618_v62  ;;  %v10282_v61 = vunpack.c.l.bf16 %v10281_v57  ;;  %v10410_v62 = vunpack.c.l.bf16 %v11335_v58 }
  0x79   :  { %11950 = vmatmul.mubr.msk.bf16.gmra.mrb[56].mxu0 %vm313_vm2, %v12619_v63  ;;  %12016 = vmatmul.mubr.msk.bf16.gmra.mrb[56].mxu1 %vm313_vm2, %v12620_v0  ;;  %v10287_v63 = vunpack.c.h.bf16 %v11304_v53  ;;  %v10415_v0 = vunpack.c.h.bf16 %v11336_v54  ;;  %v11339_v53 = vld [vmem:[%s16491_s0 + $0x120] sm:$0xff]  }
  0x7a   :  { %11953 = vmatprep.mubr.msk.bf16.mxu0 %vm313_vm2, %v12621_v1  ;;  %12019 = vmatprep.mubr.msk.bf16.mxu1 %vm313_vm2, %v12622_v2  ;;  %v12671_v1 = vld [vmem:[%s16489_s1 + $0x2b8] sm:$0xff]  }
  0x7b   :  { %v12672_v2 = vld [vmem:[%s16489_s1 + $0x3b8] sm:$0xff]  }
  0x81   :  { %11954 = vmatmul.mubr.msk.bf16.gmra.mrb[60].mxu0 %vm313_vm2, %v12623_v4  ;;  %12020 = vmatmul.mubr.msk.bf16.gmra.mrb[60].mxu1 %vm313_vm2, %v12624_v5  ;;  %v10283_v5 = vunpack.c.h.bf16 %v10281_v57 }
  0x82   :  { %12025 = vmatprep.mubr.msk.bf16.mxu0 %vm313_vm2, %v12625_v7  ;;  %12091 = vmatprep.mubr.msk.bf16.mxu1 %vm313_vm2, %v12626_v8  ;;  %v10411_v7 = vunpack.c.h.bf16 %v11335_v58  ;;  %v11306_v8 = vld [vmem:[%s16491_s0 + $0x18] sm:$0xff]  }
  0x89   :  { %12026 = vmatmul.mubr.msk.bf16.vlgmr.msra.gmra.mrb[64].mxu0 %vm313_vm2, %v12627_v9  ;;  %12092 = vmatmul.mubr.msk.bf16.vlgmr.msra.gmra.mrb[64].mxu1 %vm313_vm2, %v12628_v10  ;;  %v11338_v9 = vld [vmem:[%s16491_s0 + $0x118] sm:$0xff]   ;;  %v12673_v10 = vld [vmem:[%s16489_s1 + $0x2c0] sm:$0xff]  }
  0x8a   :  { %12029 = vmatprep.mubr.msk.bf16.mxu0 %vm313_vm2, %v12629_v11  ;;  %12095 = vmatprep.mubr.msk.bf16.mxu1 %vm313_vm2, %v12630_v12  ;;  %v12674_v11 = vld [vmem:[%s16489_s1 + $0x3c0] sm:$0xff]  }
  0x8b   :  { %12156 = vmatpush3.bf16.msra.mxu0 %v12677_v3  ;;  %12224 = vmatpush3.bf16.msra.mxu1 %v12858_v6 }
  0x8c   :  { %12355 = vmatprep.subr.bf16.mxu1 %v12858_v6  ;;  %12555 = vmatprep.subr.msk.bf16.mxu0 %vm3640_vm3, %v12690_v29 }
  0x8f   :  { %12158 = vmatpush3.bf16.msra.mxu0 %v3642_v30  ;;  %v10294_v30 = vunpack.c.l.bf16 %v11306_v8 }
  0x90   :  { %12289 = vmatprep.subr.bf16.mxu0 %v12858_v6 }
  0x91   :  { %12030 = vmatmul.mubr.msk.bf16.gmra.mrb[68].mxu0 %vm313_vm2, %v12631_v13  ;;  %12096 = vmatmul.mubr.msk.bf16.gmra.mrb[68].mxu1 %vm313_vm2, %v12632_v14 }
  0x92   :  { %12033 = vmatprep.mubr.msk.bf16.mxu0 %vm313_vm2, %v12633_v15  ;;  %12099 = vmatprep.mubr.msk.bf16.mxu1 %vm313_vm2, %v12634_v16  ;;  %v11305_v16 = vld [vmem:[%s16491_s0 + $0x10] sm:$0xff]  }
  0x99   :  { %12034 = vmatmul.mubr.msk.bf16.gmra.mrb[72].mxu0 %vm313_vm2, %v12635_v17  ;;  %12100 = vmatmul.mubr.msk.bf16.gmra.mrb[72].mxu1 %vm313_vm2, %v12636_v18  ;;  %v11337_v17 = vld [vmem:[%s16491_s0 + $0x110] sm:$0xff]  }
  0x9a   :  { %12037 = vmatprep.mubr.msk.bf16.mxu0 %vm313_vm2, %v12637_v19  ;;  %12103 = vmatprep.mubr.msk.bf16.mxu1 %vm313_vm2, %v12638_v20 }
  0xa1   :  { %12038 = vmatmul.mubr.msk.bf16.gmra.mrb[76].mxu0 %vm313_vm2, %v12639_v21  ;;  %12104 = vmatmul.mubr.msk.bf16.gmra.mrb[76].mxu1 %vm313_vm2, %v12640_v22 }
  0xa2   :  { %12041 = vmatprep.mubr.msk.bf16.mxu0 %vm313_vm2, %v12641_v23  ;;  %12107 = vmatprep.mubr.msk.bf16.mxu1 %vm313_vm2, %v12642_v24 }
  0xa9   :  { %12042 = vmatmul.mubr.msk.bf16.gmra.mrb[80].mxu0 %vm313_vm2, %v12643_v25  ;;  %12108 = vmatmul.mubr.msk.bf16.gmra.mrb[80].mxu1 %vm313_vm2, %v12644_v26 }
  0xaa   :  { %12045 = vmatprep.mubr.msk.bf16.mxu0 %vm313_vm2, %v12645_v27  ;;  %12111 = vmatprep.mubr.msk.bf16.mxu1 %vm313_vm2, %v12646_v28 }
  0xb1   :  { %12046 = vmatmul.mubr.msk.bf16.gmra.mrb[84].mxu0 %vm313_vm2, %v12647_v31  ;;  %12112 = vmatmul.mubr.msk.bf16.gmra.mrb[84].mxu1 %vm313_vm2, %v12648_v32  ;;  %v10422_v31 = vunpack.c.l.bf16 %v11338_v9 }
  0xb2   :  { %12049 = vmatprep.mubr.msk.bf16.mxu0 %vm313_vm2, %v12649_v33  ;;  %12115 = vmatprep.mubr.msk.bf16.mxu1 %vm313_vm2, %v12650_v34  ;;  %v10290_v33 = vunpack.c.l.bf16 %v11305_v16  ;;  %v10418_v34 = vunpack.c.l.bf16 %v11337_v17 }
  0xb9   :  { %12050 = vmatmul.mubr.msk.bf16.gmra.mrb[88].mxu0 %vm313_vm2, %v12651_v35  ;;  %12116 = vmatmul.mubr.msk.bf16.gmra.mrb[88].mxu1 %vm313_vm2, %v12652_v36  ;;  %v10295_v36 = vunpack.c.h.bf16 %v11306_v8 }
  0xba   :  { %12053 = vmatprep.mubr.msk.bf16.mxu0 %vm313_vm2, %v12653_v37  ;;  %12119 = vmatprep.mubr.msk.bf16.mxu1 %vm313_vm2, %v12654_v38  ;;  %v10423_v37 = vunpack.c.h.bf16 %v11338_v9  ;;  %v12675_v38 = vld [vmem:[%s16489_s1 + $0x2c8] sm:$0xff]  }
  0xc1   :  { %12054 = vmatmul.mubr.msk.bf16.gmra.mrb[92].mxu0 %vm313_vm2, %v12655_v39  ;;  %12120 = vmatmul.mubr.msk.bf16.gmra.mrb[92].mxu1 %vm313_vm2, %v12656_v40  ;;  %v12676_v39 = vld [vmem:[%s16489_s1 + $0x3c8] sm:$0xff]  }
  0xc2   :  { %12057 = vmatprep.mubr.msk.bf16.mxu0 %vm313_vm2, %v12657_v41  ;;  %12123 = vmatprep.mubr.msk.bf16.mxu1 %vm313_vm2, %v12658_v42  ;;  %v10291_v42 = vunpack.c.h.bf16 %v11305_v16  ;;  %v10427_v16 = vunpack.c.h.bf16 %v11339_v53 }
  0xc9   :  { %12058 = vmatmul.mubr.msk.bf16.gmra.mrb[96].mxu0 %vm313_vm2, %v12659_v43  ;;  %12124 = vmatmul.mubr.msk.bf16.gmra.mrb[96].mxu1 %vm313_vm2, %v12660_v44  ;;  %v10419_v43 = vunpack.c.h.bf16 %v11337_v17  ;;  %v11308_v44 = vld [vmem:[%s16491_s0 + $0x28] sm:$0xff]   ;;  %v11310_v17 = vld [vmem:[%s16491_s0 + $0x38] sm:$0xff]  }
  0xca   :  { %12061 = vmatprep.mubr.msk.bf16.mxu0 %vm313_vm2, %v12661_v45  ;;  %12127 = vmatprep.mubr.msk.bf16.mxu1 %vm313_vm2, %v12662_v46  ;;  %v11340_v45 = vld [vmem:[%s16491_s0 + $0x128] sm:$0xff]   ;;  %v12678_v46 = vld [vmem:[%s16489_s1 + $0x2d0] sm:$0xff]   ;;  %v10303_v9 = vunpack.c.h.bf16 %v11308_v44 }
  0xd1   :  { %12062 = vmatmul.mubr.msk.bf16.gmra.mrb[100].mxu0 %vm313_vm2, %v12663_v47  ;;  %12128 = vmatmul.mubr.msk.bf16.gmra.mrb[100].mxu1 %vm313_vm2, %v12664_v48  ;;  %v12679_v47 = vld [vmem:[%s16489_s1 + $0x3d0] sm:$0xff]  }
  0xd2   :  { %12065 = vmatprep.mubr.msk.bf16.mxu0 %vm313_vm2, %v12665_v49  ;;  %12131 = vmatprep.mubr.msk.bf16.mxu1 %vm313_vm2, %v12666_v50 }
  0xd9   :  { %12066 = vmatmul.mubr.msk.bf16.gmra.mrb[104].mxu0 %vm313_vm2, %v12667_v51  ;;  %12132 = vmatmul.mubr.msk.bf16.gmra.mrb[104].mxu1 %vm313_vm2, %v12668_v52  ;;  %v11307_v52 = vld [vmem:[%s16491_s0 + $0x20] sm:$0xff]  }
  0xda   :  { %12069 = vmatprep.mubr.msk.bf16.mxu0 %vm313_vm2, %v12669_v55  ;;  %12135 = vmatprep.mubr.msk.bf16.mxu1 %vm313_vm2, %v12670_v56 }
  0xdc   :  { %v11895_v3 = vpop.f32.mrb[0].mxu0  ;;  %v11961_v4 = vpop.f32.mrb[0].mxu1 }
  0xdd   :  { %v836_v12 = vmul.f32 %v11895_v3, %v10286_v59  ;;  %v1639_v13 = vmul.f32 %v11961_v4, %v10414_v60  ;;  %v451_v14 = vpop.f32.mrb[1].mxu0  ;;  %v1253_v15 = vpop.f32.mrb[1].mxu1  ;;  %v10430_v3 = vunpack.c.l.bf16 %v11340_v45 }
  0xde   :  { %v834_v18 = vmul.f32 %v10282_v61, %v451_v14  ;;  %v1637_v19 = vmul.f32 %v10410_v62, %v1253_v15  ;;  %v11896_v20 = vpop.f32.mrb[2].mxu0  ;;  %v11962_v21 = vpop.f32.mrb[2].mxu1  ;;  %v10299_v15 = vunpack.c.h.bf16 %v11307_v52 }
  0xdf   :  { %v837_v22 = vmul.f32 %v11896_v20, %v10287_v63  ;;  %v1640_v23 = vmul.f32 %v11962_v21, %v10415_v0  ;;  %v454_v24 = vpop.f32.mrb[3].mxu0  ;;  %v1256_v25 = vpop.f32.mrb[3].mxu1  ;;  %v13350_v26 = vadd.f32 %v1639_v13, %v836_v12  ;;  %v12681_v12 = vld [vmem:[%s16489_s1 + $0x3d8] sm:$0xff]   ;;  %v12683_v20 = vld [vmem:[%s16489_s1 + $0x3e0] sm:$0xff]  }
  0xe0   :  { %v835_v27 = vmul.f32 %v10283_v5, %v454_v24  ;;  %v1638_v28 = vmul.f32 %v10411_v7, %v1256_v25  ;;  %v13352_v29 = vadd.f32 %v1637_v19, %v834_v18  ;;  %v10298_v5 = vunpack.c.l.bf16 %v11307_v52  ;;  %v11342_v18 = vld [vmem:[%s16491_s0 + $0x138] sm:$0xff]   ;;  %v12682_v19 = vld [vmem:[%s16489_s1 + $0x2e0] sm:$0xff]   ;;  %v11309_v25 = vld [vmem:[%s16491_s0 + $0x30] sm:$0xff]  }
  0xe1   :  { %12070 = vmatmul.mubr.msk.bf16.gmra.mrb[108].mxu0 %vm313_vm2, %v12671_v1  ;;  %12136 = vmatmul.mubr.msk.bf16.gmra.mrb[108].mxu1 %vm313_vm2, %v12672_v2  ;;  %v13356_v32 = vadd.f32 %v1640_v23, %v837_v22  ;;  %v10302_v2 = vunpack.c.l.bf16 %v11308_v44  ;;  %v10426_v7 = vunpack.c.l.bf16 %v11339_v53  ;;  %v10438_v44 = vunpack.c.l.bf16 %v11342_v18  ;;  %v12685_v52 = vld [vmem:[%s16489_s1 + $0x3e8] sm:$0xff]  }
  0xe2   :  { %12073 = vmatprep.mubr.msk.bf16.mxu0 %vm313_vm2, %v12673_v10  ;;  %12139 = vmatprep.mubr.msk.bf16.mxu1 %vm313_vm2, %v12674_v11  ;;  %v13360_v35 = vadd.f32 %v1638_v28, %v835_v27  ;;  %v10431_v10 = vunpack.c.h.bf16 %v11340_v45  ;;  %v12680_v11 = vld [vmem:[%s16489_s1 + $0x2d8] sm:$0xff]   ;;  %v11341_v27 = vld [vmem:[%s16491_s0 + $0x130] sm:$0xff]  }
  0xe4   :  { %v11899_v40 = vpop.f32.mrb[4].mxu0  ;;  %v11965_v41 = vpop.f32.mrb[4].mxu1 }
  0xe5   :  { %v840_v48 = vmul.f32 %v11899_v40, %v10294_v30  ;;  %v1643_v49 = vmul.f32 %v11965_v41, %v10422_v31  ;;  %v467_v50 = vpop.f32.mrb[5].mxu0  ;;  %v1269_v51 = vpop.f32.mrb[5].mxu1 }
  0xe6   :  { %v838_v54 = vmul.f32 %v10290_v33, %v467_v50  ;;  %v1641_v55 = vmul.f32 %v10418_v34, %v1269_v51  ;;  %v11900_v56 = vpop.f32.mrb[6].mxu0  ;;  %v11966_v57 = vpop.f32.mrb[6].mxu1  ;;  %v10439_v50 = vunpack.c.h.bf16 %v11342_v18  ;;  %v12684_v51 = vld [vmem:[%s16489_s1 + $0x2e8] sm:$0xff]  }
  0xe7   :  { %v841_v58 = vmul.f32 %v11900_v56, %v10295_v36  ;;  %v1644_v59 = vmul.f32 %v11966_v57, %v10423_v37  ;;  %v470_v60 = vpop.f32.mrb[7].mxu0  ;;  %v1272_v61 = vpop.f32.mrb[7].mxu1  ;;  %v13386_v62 = vadd.f32 %v1643_v49, %v840_v48  ;;  %v10311_v49 = vunpack.c.h.bf16 %v11310_v17  ;;  %v11312_v57 = vld [vmem:[%s16491_s0 + $0x48] sm:$0xff]  }
  0xe8   :  { %v839_v63 = vmul.f32 %v10291_v42, %v470_v60  ;;  %v1642_v0 = vmul.f32 %v10419_v43, %v1272_v61  ;;  %v13388_v1 = vadd.f32 %v1641_v55, %v838_v54  ;;  %v10310_v43 = vunpack.c.l.bf16 %v11310_v17  ;;  %v12687_v60 = vld [vmem:[%s16489_s1 + $0x3f0] sm:$0xff]  }
  0xe9   :  { %12074 = vmatmul.mubr.msk.bf16.gmra.mrb[112].mxu0 %vm313_vm2, %v12675_v38  ;;  %12140 = vmatmul.mubr.msk.bf16.gmra.mrb[112].mxu1 %vm313_vm2, %v12676_v39  ;;  %v13392_v4 = vadd.f32 %v1644_v59, %v841_v58  ;;  %v10307_v55 = vunpack.c.h.bf16 %v11309_v25  ;;  %v10435_v56 = vunpack.c.h.bf16 %v11341_v27  ;;  %v11344_v58 = vld [vmem:[%s16491_s0 + $0x148] sm:$0xff]   ;;  %v12686_v59 = vld [vmem:[%s16489_s1 + $0x2f0] sm:$0xff]  }
  0xea   :  { %12077 = vmatprep.mubr.msk.bf16.mxu0 %vm313_vm2, %v12678_v46  ;;  %12143 = vmatprep.mubr.msk.bf16.mxu1 %vm313_vm2, %v12679_v47  ;;  %v13396_v8 = vadd.f32 %v1642_v0, %v839_v63  ;;  %v10306_v46 = vunpack.c.l.bf16 %v11309_v25  ;;  %v10434_v47 = vunpack.c.l.bf16 %v11341_v27  ;;  %v10319_v27 = vunpack.c.h.bf16 %v11312_v57 }
  0xec   :  { %v11903_v13 = vpop.f32.mrb[8].mxu0  ;;  %v11969_v14 = vpop.f32.mrb[8].mxu1 }
  0xed   :  { %v844_v21 = vmul.f32 %v11903_v13, %v10302_v2  ;;  %v1647_v22 = vmul.f32 %v11969_v14, %v10430_v3  ;;  %v483_v23 = vpop.f32.mrb[9].mxu0  ;;  %v1285_v24 = vpop.f32.mrb[9].mxu1  ;;  %v11311_v3 = vld [vmem:[%s16491_s0 + $0x40] sm:$0xff]  }
  0xee   :  { %v842_v28 = vmul.f32 %v10298_v5, %v483_v23  ;;  %v1645_v30 = vmul.f32 %v10426_v7, %v1285_v24  ;;  %v11904_v31 = vpop.f32.mrb[10].mxu0  ;;  %v11970_v33 = vpop.f32.mrb[10].mxu1  ;;  %v11343_v5 = vld [vmem:[%s16491_s0 + $0x140] sm:$0xff]   ;;  %v10314_v23 = vunpack.c.l.bf16 %v11311_v3 }
  0xef   :  { %v845_v34 = vmul.f32 %v11904_v31, %v10303_v9  ;;  %v1648_v36 = vmul.f32 %v11970_v33, %v10431_v10  ;;  %v486_v37 = vpop.f32.mrb[11].mxu0  ;;  %v1288_v38 = vpop.f32.mrb[11].mxu1  ;;  %v13422_v39 = vadd.f32 %v1647_v22, %v844_v21  ;;  %v10446_v21 = vunpack.c.l.bf16 %v11344_v58 }
  0xf0   :  { %v843_v40 = vmul.f32 %v10299_v15, %v486_v37  ;;  %v1646_v41 = vmul.f32 %v10427_v16, %v1288_v38  ;;  %v13424_v42 = vadd.f32 %v1645_v30, %v842_v28  ;;  %v10442_v24 = vunpack.c.l.bf16 %v11343_v5 }
  0xf1   :  { %12078 = vmatmul.mubr.msk.bf16.gmra.mrb[116].mxu0 %vm313_vm2, %v12680_v11  ;;  %12144 = vmatmul.mubr.msk.bf16.gmra.mrb[116].mxu1 %vm313_vm2, %v12681_v12  ;;  %v13428_v45 = vadd.f32 %v1648_v36, %v845_v34  ;;  %v10447_v28 = vunpack.c.h.bf16 %v11344_v58  ;;  %v10315_v33 = vunpack.c.h.bf16 %v11311_v3  ;;  %v10443_v34 = vunpack.c.h.bf16 %v11343_v5  ;;  %v11345_v58 = vld [vmem:[%s16491_s0 + $0x150] sm:$0xff]  }
  0xf2   :  { %12081 = vmatprep.mubr.msk.bf16.mxu0 %vm313_vm2, %v12682_v19  ;;  %12147 = vmatprep.mubr.msk.bf16.mxu1 %vm313_vm2, %v12683_v20  ;;  %v13432_v48 = vadd.f32 %v1646_v41, %v843_v40  ;;  %v10318_v20 = vunpack.c.l.bf16 %v11312_v57  ;;  %v12688_v41 = vld [vmem:[%s16489_s1 + $0x2f8] sm:$0xff]   ;;  %v11313_v57 = vld [vmem:[%s16491_s0 + $0x50] sm:$0xff]  }
  0xf3   :  { %v10322_v5 = vunpack.c.l.bf16 %v11313_v57 }
  0xf4   :  { %v11907_v53 = vpop.f32.mrb[12].mxu0  ;;  %v11973_v54 = vpop.f32.mrb[12].mxu1 }
  0xf5   :  { %v848_v61 = vmul.f32 %v11907_v53, %v10310_v43  ;;  %v1651_v63 = vmul.f32 %v11973_v54, %v10438_v44  ;;  %v499_v0 = vpop.f32.mrb[13].mxu0  ;;  %v1301_v2 = vpop.f32.mrb[13].mxu1  ;;  %v12689_v43 = vld [vmem:[%s16489_s1 + $0x3f8] sm:$0xff]  }
  0xf6   :  { %v846_v7 = vmul.f32 %v10306_v46, %v499_v0  ;;  %v1649_v9 = vmul.f32 %v10434_v47, %v1301_v2  ;;  %v11908_v10 = vpop.f32.mrb[14].mxu0  ;;  %v11974_v11 = vpop.f32.mrb[14].mxu1 }
  0xf7   :  { %v849_v12 = vmul.f32 %v11908_v10, %v10311_v49  ;;  %v1652_v13 = vmul.f32 %v11974_v11, %v10439_v50  ;;  %v502_v14 = vpop.f32.mrb[15].mxu0  ;;  %v1304_v15 = vpop.f32.mrb[15].mxu1  ;;  %v13458_v16 = vadd.f32 %v1651_v63, %v848_v61  ;;  %v11314_v50 = vld [vmem:[%s16491_s0 + $0x58] sm:$0xff]  }
  0xf8   :  { %v847_v17 = vmul.f32 %v10307_v55, %v502_v14  ;;  %v1650_v18 = vmul.f32 %v10435_v56, %v1304_v15  ;;  %v13460_v19 = vadd.f32 %v1649_v9, %v846_v7  ;;  %v10326_v0 = vunpack.c.l.bf16 %v11314_v50 }
  0xf9   :  { %12082 = vmatmul.mubr.msk.bf16.gmra.mrb[120].mxu0 %vm313_vm2, %v12684_v51  ;;  %12148 = vmatmul.mubr.msk.bf16.gmra.mrb[120].mxu1 %vm313_vm2, %v12685_v52  ;;  %v13464_v22 = vadd.f32 %v1652_v13, %v849_v12  ;;  %v11346_v51 = vld [vmem:[%s16491_s0 + $0x158] sm:$0xff]   ;;  %v12691_v52 = vld [vmem:[%s16489_s1 + $0x400] sm:$0xff]   ;;  %v10450_v7 = vunpack.c.l.bf16 %v11345_v58  ;;  %v10327_v10 = vunpack.c.h.bf16 %v11314_v50  ;;  %v10323_v14 = vunpack.c.h.bf16 %v11313_v57 }
  0xfa   :  { %12085 = vmatprep.mubr.msk.bf16.mxu0 %vm313_vm2, %v12686_v59  ;;  %12151 = vmatprep.mubr.msk.bf16.mxu1 %vm313_vm2, %v12687_v60  ;;  %v13468_v25 = vadd.f32 %v1650_v18, %v847_v17  ;;  %v10454_v2 = vunpack.c.l.bf16 %v11346_v51  ;;  %v10455_v11 = vunpack.c.h.bf16 %v11346_v51  ;;  %v10451_v15 = vunpack.c.h.bf16 %v11345_v58 }
  0xfc   :  { %v11911_v30 = vpop.f32.mrb[16].mxu0  ;;  %v11977_v31 = vpop.f32.mrb[16].mxu1 }
  0xfd   :  { %v852_v36 = vmul.f32 %v11911_v30, %v10318_v20  ;;  %v1655_v37 = vmul.f32 %v11977_v31, %v10446_v21  ;;  %v515_v38 = vpop.f32.mrb[17].mxu0  ;;  %v1317_v40 = vpop.f32.mrb[17].mxu1  ;;  %v11316_v31 = vld [vmem:[%s16491_s0 + $0x68] sm:$0xff]  }
  0xfe   :  { %v850_v44 = vmul.f32 %v10314_v23, %v515_v38  ;;  %v1653_v46 = vmul.f32 %v10442_v24, %v1317_v40  ;;  %v11912_v47 = vpop.f32.mrb[18].mxu0  ;;  %v11978_v49 = vpop.f32.mrb[18].mxu1  ;;  %v12692_v23 = vld [vmem:[%s16489_s1 + $0x408] sm:$0xff]   ;;  %v10334_v50 = vunpack.c.l.bf16 %v11316_v31 }
  0xff   :  { %v853_v53 = vmul.f32 %v11912_v47, %v10319_v27  ;;  %v1656_v54 = vmul.f32 %v11978_v49, %v10447_v28  ;;  %v518_v55 = vpop.f32.mrb[19].mxu0  ;;  %v1320_v56 = vpop.f32.mrb[19].mxu1  ;;  %v13491_v59 = vadd.f32 %v1655_v37, %v852_v36 }
 0x100   :  { %v851_v60 = vmul.f32 %v10315_v33, %v518_v55  ;;  %v1654_v61 = vmul.f32 %v10443_v34, %v1320_v56  ;;  %v13493_v63 = vadd.f32 %v1653_v46, %v850_v44  ;;  %v11348_v33 = vld [vmem:[%s16491_s0 + $0x168] sm:$0xff]   ;;  %v12693_v34 = vld [vmem:[%s16489_s1 + $0x410] sm:$0xff]   ;;  %v10335_v56 = vunpack.c.h.bf16 %v11316_v31 }
 0x101   :  { %12086 = vmatmul.mubr.msk.bf16.gmra.mrb[124].mxu0 %vm313_vm2, %v12688_v41  ;;  %12152 = vmatmul.mubr.msk.bf16.gmra.mrb[124].mxu1 %vm313_vm2, %v12689_v43  ;;  %v13497_v3 = vadd.f32 %v1656_v54, %v853_v53  ;;  %v11315_v41 = vld [vmem:[%s16491_s0 + $0x60] sm:$0xff]   ;;  %v10462_v51 = vunpack.c.l.bf16 %v11348_v33  ;;  %v10463_v57 = vunpack.c.h.bf16 %v11348_v33 }
 0x102   :  { %12225 = vmatprep.mubr.msk.bf16.mxu1 %vm313_vm2, %v12691_v52  ;;  %v13500_v9 = vadd.f32 %v1654_v61, %v851_v60  ;;  %v11347_v43 = vld [vmem:[%s16491_s0 + $0x160] sm:$0xff]   ;;  %v10330_v53 = vunpack.c.l.bf16 %v11315_v41  ;;  %v10331_v61 = vunpack.c.h.bf16 %v11315_v41 }
 0x103   :  { %v10458_v54 = vunpack.c.l.bf16 %v11347_v43 }
 0x104   :  { %v11915_v12 = vpop.f32.mrb[20].mxu0  ;;  %v11981_v13 = vpop.f32.mrb[20].mxu1 }
 0x105   :  { %v856_v17 = vmul.f32 %v11915_v12, %v10326_v0  ;;  %v1659_v18 = vmul.f32 %v11981_v13, %v10454_v2  ;;  %v531_v20 = vpop.f32.mrb[21].mxu0  ;;  %v1333_v21 = vpop.f32.mrb[21].mxu1  ;;  %v10459_v0 = vunpack.c.h.bf16 %v11347_v43 }
 0x106   :  { %v854_v24 = vmul.f32 %v10322_v5, %v531_v20  ;;  %v1657_v27 = vmul.f32 %v10450_v7, %v1333_v21  ;;  %v11916_v28 = vpop.f32.mrb[22].mxu0  ;;  %v11982_v30 = vpop.f32.mrb[22].mxu1  ;;  %v12695_v20 = vld [vmem:[%s16489_s1 + $0x420] sm:$0xff]  }
 0x107   :  { %v857_v36 = vmul.f32 %v11916_v28, %v10327_v10  ;;  %v1660_v37 = vmul.f32 %v11982_v30, %v10455_v11  ;;  %v534_v38 = vpop.f32.mrb[23].mxu0  ;;  %v1336_v40 = vpop.f32.mrb[23].mxu1  ;;  %v13520_v44 = vadd.f32 %v1659_v18, %v856_v17  ;;  %v12694_v11 = vld [vmem:[%s16489_s1 + $0x418] sm:$0xff]   ;;  %v11317_v28 = vld [vmem:[%s16491_s0 + $0x70] sm:$0xff]  }
 0x108   :  { %v855_v46 = vmul.f32 %v10323_v14, %v534_v38  ;;  %v1658_v47 = vmul.f32 %v10451_v15, %v1336_v40  ;;  %v13522_v49 = vadd.f32 %v1657_v27, %v854_v24  ;;  %v11318_v17 = vld [vmem:[%s16491_s0 + $0x78] sm:$0xff]   ;;  %v11349_v30 = vld [vmem:[%s16491_s0 + $0x170] sm:$0xff]   ;;  %v10338_v41 = vunpack.c.l.bf16 %v11317_v28 }
 0x109   :  { %12226 = vmatmul.mubr.msk.bf16.vlgmr.msra.gmra.mrb[128].mxu1 %vm313_vm2, %v12692_v23  ;;  %v13525_v52 = vadd.f32 %v1660_v37, %v857_v36  ;;  %v11350_v18 = vld [vmem:[%s16491_s0 + $0x178] sm:$0xff]   ;;  %v10342_v37 = vunpack.c.l.bf16 %v11318_v17  ;;  %v10466_v43 = vunpack.c.l.bf16 %v11349_v30 }
 0x10a   :  { %12229 = vmatprep.mubr.msk.bf16.mxu1 %vm313_vm2, %v12693_v34  ;;  %v13528_v55 = vadd.f32 %v1658_v47, %v855_v46  ;;  %12356 = vmatpush3.bf16.msra.mxu1 %v12858_v6  ;;  %v10470_v38 = vunpack.c.l.bf16 %v11350_v18  ;;  %v10343_v47 = vunpack.c.h.bf16 %v11318_v17 }
 0x10c   :  { %v11919_v58 = vpop.f32.mrb[24].mxu0  ;;  %v11985_v60 = vpop.f32.mrb[24].mxu1 }
 0x10d   :  { %v860_v2 = vmul.f32 %v11919_v58, %v10334_v50  ;;  %v1663_v5 = vmul.f32 %v11985_v60, %v10462_v51  ;;  %v547_v7 = vpop.f32.mrb[25].mxu0  ;;  %v1349_v10 = vpop.f32.mrb[25].mxu1  ;;  %v10471_v50 = vunpack.c.h.bf16 %v11350_v18 }
 0x10e   :  { %v858_v12 = vmul.f32 %v10330_v53, %v547_v7  ;;  %v1661_v13 = vmul.f32 %v10458_v54, %v1349_v10  ;;  %v11920_v14 = vpop.f32.mrb[26].mxu0  ;;  %v11986_v15 = vpop.f32.mrb[26].mxu1  ;;  %v10339_v54 = vunpack.c.h.bf16 %v11317_v28 }
 0x10f   :  { %v861_v21 = vmul.f32 %v11920_v14, %v10335_v56  ;;  %v1664_v23 = vmul.f32 %v11986_v15, %v10463_v57  ;;  %v550_v24 = vpop.f32.mrb[27].mxu0  ;;  %v1352_v27 = vpop.f32.mrb[27].mxu1  ;;  %v13549_v31 = vadd.f32 %v1663_v5, %v860_v2  ;;  %v10467_v56 = vunpack.c.h.bf16 %v11349_v30 }
 0x110   :  { %v859_v33 = vmul.f32 %v10331_v61, %v550_v24  ;;  %v1662_v34 = vmul.f32 %v10459_v0, %v1352_v27  ;;  %v13551_v36 = vadd.f32 %v1661_v13, %v858_v12  ;;  %v12696_v0 = vld [vmem:[%s16489_s1 + $0x428] sm:$0xff]   ;;  %v12697_v13 = vld [vmem:[%s16489_s1 + $0x430] sm:$0xff]  }
 0x111   :  { %12230 = vmatmul.mubr.msk.bf16.gmra.mrb[132].mxu1 %vm313_vm2, %v12694_v11  ;;  %v13554_v40 = vadd.f32 %v1664_v23, %v861_v21  ;;  %v11320_v11 = vld [vmem:[%s16491_s0 + $0x88] sm:$0xff]   ;;  %v11351_v21 = vld [vmem:[%s16491_s0 + $0x180] sm:$0xff]  }
 0x112   :  { %12233 = vmatprep.mubr.msk.bf16.mxu1 %vm313_vm2, %v12695_v20  ;;  %v13557_v46 = vadd.f32 %v1662_v34, %v859_v33  ;;  %v11352_v12 = vld [vmem:[%s16491_s0 + $0x188] sm:$0xff]   ;;  %v11319_v20 = vld [vmem:[%s16491_s0 + $0x80] sm:$0xff]   ;;  %v10350_v30 = vunpack.c.l.bf16 %v11320_v11 }
 0x113   :  { %v10478_v33 = vunpack.c.l.bf16 %v11352_v12 }
 0x114   :  { %v11923_v51 = vpop.f32.mrb[28].mxu0  ;;  %v11989_v53 = vpop.f32.mrb[28].mxu1 }
 0x115   :  { %v864_v57 = vmul.f32 %v11923_v51, %v10342_v37  ;;  %v1667_v58 = vmul.f32 %v11989_v53, %v10470_v38  ;;  %v563_v60 = vpop.f32.mrb[29].mxu0  ;;  %v1365_v61 = vpop.f32.mrb[29].mxu1  ;;  %v10346_v37 = vunpack.c.l.bf16 %v11319_v20  ;;  %v10474_v38 = vunpack.c.l.bf16 %v11351_v21 }
 0x116   :  { %v862_v2 = vmul.f32 %v10338_v41, %v563_v60  ;;  %v1665_v5 = vmul.f32 %v10466_v43, %v1365_v61  ;;  %v11924_v7 = vpop.f32.mrb[30].mxu0  ;;  %v11990_v10 = vpop.f32.mrb[30].mxu1  ;;  %v10351_v43 = vunpack.c.h.bf16 %v11320_v11  ;;  %v10347_v53 = vunpack.c.h.bf16 %v11319_v20  ;;  %v12698_v61 = vld [vmem:[%s16489_s1 + $0x438] sm:$0xff]   ;;  %v11353_v20 = vld [vmem:[%s16491_s0 + $0x190] sm:$0xff]  }
 0x117   :  { %v865_v14 = vmul.f32 %v11924_v7, %v10343_v47  ;;  %v1668_v15 = vmul.f32 %v11990_v10, %v10471_v50  ;;  %v566_v17 = vpop.f32.mrb[31].mxu0  ;;  %v1368_v18 = vpop.f32.mrb[31].mxu1  ;;  %v13577_v23 = vadd.f32 %v1667_v58, %v864_v57  ;;  %v10479_v47 = vunpack.c.h.bf16 %v11352_v12  ;;  %v11322_v10 = vld [vmem:[%s16491_s0 + $0x98] sm:$0xff]   ;;  %v12699_v12 = vld [vmem:[%s16489_s1 + $0x440] sm:$0xff]  }
 0x118   :  { %v863_v24 = vmul.f32 %v10339_v54, %v566_v17  ;;  %v1666_v27 = vmul.f32 %v10467_v56, %v1368_v18  ;;  %v13579_v28 = vadd.f32 %v1665_v5, %v862_v2  ;;  %v10475_v54 = vunpack.c.h.bf16 %v11351_v21  ;;  %v11354_v11 = vld [vmem:[%s16491_s0 + $0x198] sm:$0xff]   ;;  %v11321_v18 = vld [vmem:[%s16491_s0 + $0x90] sm:$0xff]  }
 0x119   :  { %12234 = vmatmul.mubr.msk.bf16.gmra.mrb[136].mxu1 %vm313_vm2, %v12696_v0  ;;  %v13582_v34 = vadd.f32 %v1668_v15, %v865_v14 }
 0x11a   :  { %12237 = vmatprep.mubr.msk.bf16.mxu1 %vm313_vm2, %v12697_v13  ;;  %v13585_v41 = vadd.f32 %v1666_v27, %v863_v24 }
 0x11c   :  { %v11927_v50 = vpop.f32.mrb[32].mxu0  ;;  %v11993_v51 = vpop.f32.mrb[32].mxu1 }
 0x11d   :  { %v868_v56 = vmul.f32 %v11927_v50, %v10350_v30  ;;  %v1671_v57 = vmul.f32 %v11993_v51, %v10478_v33  ;;  %v579_v58 = vpop.f32.mrb[33].mxu0  ;;  %v1381_v60 = vpop.f32.mrb[33].mxu1  ;;  %v10358_v33 = vunpack.c.l.bf16 %v11322_v10  ;;  %v10359_v51 = vunpack.c.h.bf16 %v11322_v10  ;;  %v11324_v10 = vld [vmem:[%s16491_s0 + $0xa8] sm:$0xff]  }
 0x11e   :  { %v866_v0 = vmul.f32 %v10346_v37, %v579_v58  ;;  %v1669_v2 = vmul.f32 %v10474_v38, %v1381_v60  ;;  %v11928_v5 = vpop.f32.mrb[34].mxu0  ;;  %v11994_v7 = vpop.f32.mrb[34].mxu1  ;;  %v10486_v37 = vunpack.c.l.bf16 %v11354_v11  ;;  %v10487_v58 = vunpack.c.h.bf16 %v11354_v11  ;;  %v11356_v11 = vld [vmem:[%s16491_s0 + $0x1a8] sm:$0xff]  }
 0x11f   :  { %v869_v13 = vmul.f32 %v11928_v5, %v10351_v43  ;;  %v1672_v14 = vmul.f32 %v11994_v7, %v10479_v47  ;;  %v582_v15 = vpop.f32.mrb[35].mxu0  ;;  %v1384_v17 = vpop.f32.mrb[35].mxu1  ;;  %v13605_v21 = vadd.f32 %v1671_v57, %v868_v56  ;;  %v10354_v43 = vunpack.c.l.bf16 %v11321_v18 }
 0x120   :  { %v867_v24 = vmul.f32 %v10347_v53, %v582_v15  ;;  %v1670_v27 = vmul.f32 %v10475_v54, %v1384_v17  ;;  %v13607_v30 = vadd.f32 %v1669_v2, %v866_v0  ;;  %v10482_v47 = vunpack.c.l.bf16 %v11353_v20  ;;  %v12701_v15 = vld [vmem:[%s16489_s1 + $0x450] sm:$0xff]  }
 0x121   :  { %12238 = vmatmul.mubr.msk.bf16.gmra.mrb[140].mxu1 %vm313_vm2, %v12698_v61  ;;  %v13610_v38 = vadd.f32 %v1672_v14, %v869_v13  ;;  %v10355_v53 = vunpack.c.h.bf16 %v11321_v18  ;;  %v10483_v54 = vunpack.c.h.bf16 %v11353_v20  ;;  %v12700_v61 = vld [vmem:[%s16489_s1 + $0x448] sm:$0xff]  }
 0x122   :  { %16493 = vst [vmem:[#allocation2_spill] sm:$0xff] %v13607_v30  ;;  %12241 = vmatprep.mubr.msk.bf16.mxu1 %vm313_vm2, %v12699_v12  ;;  %v13613_v50 = vadd.f32 %v1670_v27, %v867_v24  ;;  %v11323_v27 = vld [vmem:[%s16491_s0 + $0xa0] sm:$0xff]  }
 0x123   :  { %16494 = vst [vmem:[#allocation3_spill] sm:$0xff] %v13610_v38 }
 0x124   :  { %16495 = vst [vmem:[#allocation4_spill] sm:$0xff] %v13613_v50  ;;  %v11931_v56 = vpop.f32.mrb[36].mxu0  ;;  %v11997_v57 = vpop.f32.mrb[36].mxu1  ;;  %v10495_v50 = vunpack.c.h.bf16 %v11356_v11 }
 0x125   :  { %v872_v60 = vmul.f32 %v11931_v56, %v10358_v33  ;;  %v1675_v0 = vmul.f32 %v11997_v57, %v10486_v37  ;;  %v595_v2 = vpop.f32.mrb[37].mxu0  ;;  %v1397_v5 = vpop.f32.mrb[37].mxu1  ;;  %v11355_v33 = vld [vmem:[%s16491_s0 + $0x1a0] sm:$0xff]   ;;  %v10366_v57 = vunpack.c.l.bf16 %v11324_v10 }
 0x126   :  { %v870_v7 = vmul.f32 %v10354_v43, %v595_v2  ;;  %v1673_v13 = vmul.f32 %v10482_v47, %v1397_v5  ;;  %v11932_v14 = vpop.f32.mrb[38].mxu0  ;;  %v11998_v12 = vpop.f32.mrb[38].mxu1  ;;  %v10494_v2 = vunpack.c.l.bf16 %v11356_v11  ;;  %v10490_v5 = vunpack.c.l.bf16 %v11355_v33  ;;  %v11358_v11 = vld [vmem:[%s16491_s0 + $0x1b8] sm:$0xff]  }
 0x127   :  { %v873_v17 = vmul.f32 %v11932_v14, %v10359_v51  ;;  %v1676_v18 = vmul.f32 %v11998_v12, %v10487_v58  ;;  %v598_v20 = vpop.f32.mrb[39].mxu0  ;;  %v1400_v24 = vpop.f32.mrb[39].mxu1  ;;  %v13633_v37 = vadd.f32 %v1675_v0, %v872_v60  ;;  %v10362_v58 = vunpack.c.l.bf16 %v11323_v27 }
 0x128   :  { %v871_v43 = vmul.f32 %v10355_v53, %v598_v20  ;;  %v1674_v47 = vmul.f32 %v10483_v54, %v1400_v24  ;;  %v13635_v56 = vadd.f32 %v1673_v13, %v870_v7  ;;  %v10367_v12 = vunpack.c.h.bf16 %v11324_v10  ;;  %v11326_v10 = vld [vmem:[%s16491_s0 + $0xb8] sm:$0xff]  }
 0x129   :  { %16496 = vst [vmem:[#allocation5_spill] sm:$0xff] %v13633_v37  ;;  %12242 = vmatmul.mubr.msk.bf16.gmra.mrb[144].mxu1 %vm313_vm2, %v12700_v61  ;;  %v13638_v51 = vadd.f32 %v1676_v18, %v873_v17  ;;  %v10363_v53 = vunpack.c.h.bf16 %v11323_v27  ;;  %v10491_v54 = vunpack.c.h.bf16 %v11355_v33  ;;  %v12702_v61 = vld [vmem:[%s16489_s1 + $0x458] sm:$0xff]   ;;  %v12703_v27 = vld [vmem:[%s16489_s1 + $0x460] sm:$0xff]   ;;  %v10503_v37 = vunpack.c.h.bf16 %v11358_v11 }
 0x12a   :  { %16497 = vst [vmem:[#allocation6_spill] sm:$0xff] %v13635_v56  ;;  %12245 = vmatprep.mubr.msk.bf16.mxu1 %vm313_vm2, %v12701_v15  ;;  %v13641_v14 = vadd.f32 %v1674_v47, %v871_v43  ;;  %v10375_v56 = vunpack.c.h.bf16 %v11326_v10 }
 0x12b   :  { %16498 = vst [vmem:[#allocation7_spill] sm:$0xff] %v13638_v51 }
 0x12c   :  { %16499 = vst [vmem:[#allocation8_spill] sm:$0xff] %v13641_v14  ;;  %v11935_v60 = vpop.f32.mrb[40].mxu0  ;;  %v12001_v0 = vpop.f32.mrb[40].mxu1  ;;  %v10502_v14 = vunpack.c.l.bf16 %v11358_v11  ;;  %v11360_v11 = vld [vmem:[%s16491_s0 + $0x1c8] sm:$0xff]  }
 0x12d   :  { %v876_v7 = vmul.f32 %v11935_v60, %v10366_v57  ;;  %v1679_v13 = vmul.f32 %v12001_v0, %v10494_v2  ;;  %v611_v20 = vpop.f32.mrb[41].mxu0  ;;  %v1413_v24 = vpop.f32.mrb[41].mxu1  ;;  %v11325_v2 = vld [vmem:[%s16491_s0 + $0xb0] sm:$0xff]  }
 0x12e   :  { %v874_v17 = vmul.f32 %v10362_v58, %v611_v20  ;;  %v1677_v18 = vmul.f32 %v10490_v5, %v1413_v24  ;;  %v11936_v51 = vpop.f32.mrb[42].mxu0  ;;  %v12002_v15 = vpop.f32.mrb[42].mxu1  ;;  %v11357_v58 = vld [vmem:[%s16491_s0 + $0x1b0] sm:$0xff]   ;;  %v10374_v24 = vunpack.c.l.bf16 %v11326_v10  ;;  %v11328_v10 = vld [vmem:[%s16491_s0 + $0xc8] sm:$0xff]  }
 0x12f   :  { %v877_v33 = vmul.f32 %v11936_v51, %v10367_v12  ;;  %v1680_v43 = vmul.f32 %v12002_v15, %v10495_v50  ;;  %v614_v47 = vpop.f32.mrb[43].mxu0  ;;  %v1416_v57 = vpop.f32.mrb[43].mxu1  ;;  %v13661_v5 = vadd.f32 %v1679_v13, %v876_v7  ;;  %v10370_v51 = vunpack.c.l.bf16 %v11325_v2 }
 0x130   :  { %v875_v60 = vmul.f32 %v10363_v53, %v614_v47  ;;  %v1678_v0 = vmul.f32 %v10491_v54, %v1416_v57  ;;  %v13663_v20 = vadd.f32 %v1677_v18, %v874_v17  ;;  %v10498_v12 = vunpack.c.l.bf16 %v11357_v58 }
 0x131   :  { %16500 = vst [vmem:[#allocation9_spill] sm:$0xff] %v13661_v5  ;;  %12246 = vmatmul.mubr.msk.bf16.gmra.mrb[148].mxu1 %vm313_vm2, %v12702_v61  ;;  %v13666_v50 = vadd.f32 %v1680_v43, %v877_v33  ;;  %v10371_v53 = vunpack.c.h.bf16 %v11325_v2  ;;  %v10499_v54 = vunpack.c.h.bf16 %v11357_v58  ;;  %v12704_v61 = vld [vmem:[%s16489_s1 + $0x468] sm:$0xff]   ;;  %v10511_v5 = vunpack.c.h.bf16 %v11360_v11 }
 0x132   :  { %16501 = vst [vmem:[#allocation10_spill] sm:$0xff] %v13663_v20  ;;  %12249 = vmatprep.mubr.msk.bf16.mxu1 %vm313_vm2, %v12703_v27  ;;  %v13669_v15 = vadd.f32 %v1678_v0, %v875_v60  ;;  %v10383_v20 = vunpack.c.h.bf16 %v11328_v10 }
 0x133   :  { %16502 = vst [vmem:[#allocation11_spill] sm:$0xff] %v13666_v50 }
 0x134   :  { %16503 = vst [vmem:[#allocation12_spill] sm:$0xff] %v13669_v15  ;;  %v11939_v7 = vpop.f32.mrb[44].mxu0  ;;  %v12005_v13 = vpop.f32.mrb[44].mxu1  ;;  %v10510_v15 = vunpack.c.l.bf16 %v11360_v11  ;;  %v11362_v11 = vld [vmem:[%s16491_s0 + $0x1d8] sm:$0xff]  }
 0x135   :  { %v880_v17 = vmul.f32 %v11939_v7, %v10374_v24  ;;  %v1683_v18 = vmul.f32 %v12005_v13, %v10502_v14  ;;  %v627_v47 = vpop.f32.mrb[45].mxu0  ;;  %v1429_v57 = vpop.f32.mrb[45].mxu1  ;;  %v12705_v14 = vld [vmem:[%s16489_s1 + $0x470] sm:$0xff]   ;;  %v11327_v24 = vld [vmem:[%s16491_s0 + $0xc0] sm:$0xff]  }
 0x136   :  { %v878_v33 = vmul.f32 %v10370_v51, %v627_v47  ;;  %v1681_v43 = vmul.f32 %v10498_v12, %v1429_v57  ;;  %v11940_v50 = vpop.f32.mrb[46].mxu0  ;;  %v12006_v27 = vpop.f32.mrb[46].mxu1  ;;  %v11359_v51 = vld [vmem:[%s16491_s0 + $0x1c0] sm:$0xff]   ;;  %v10382_v57 = vunpack.c.l.bf16 %v11328_v10  ;;  %v11330_v10 = vld [vmem:[%s16491_s0 + $0xd8] sm:$0xff]  }
 0x137   :  { %v881_v2 = vmul.f32 %v11940_v50, %v10375_v56  ;;  %v1684_v58 = vmul.f32 %v12006_v27, %v10503_v37  ;;  %v630_v60 = vpop.f32.mrb[47].mxu0  ;;  %v1432_v0 = vpop.f32.mrb[47].mxu1  ;;  %v13689_v12 = vadd.f32 %v1683_v18, %v880_v17  ;;  %v10378_v56 = vunpack.c.l.bf16 %v11327_v24 }
 0x138   :  { %v879_v7 = vmul.f32 %v10371_v53, %v630_v60  ;;  %v1682_v13 = vmul.f32 %v10499_v54, %v1432_v0  ;;  %v13691_v47 = vadd.f32 %v1681_v43, %v878_v33  ;;  %v10506_v50 = vunpack.c.l.bf16 %v11359_v51 }
 0x139   :  { %16504 = vst [vmem:[#allocation13_spill] sm:$0xff] %v13689_v12  ;;  %12250 = vmatmul.mubr.msk.bf16.gmra.mrb[152].mxu1 %vm313_vm2, %v12704_v61  ;;  %v13694_v37 = vadd.f32 %v1684_v58, %v881_v2  ;;  %v10379_v53 = vunpack.c.h.bf16 %v11327_v24  ;;  %v10507_v54 = vunpack.c.h.bf16 %v11359_v51  ;;  %v12706_v61 = vld [vmem:[%s16489_s1 + $0x478] sm:$0xff]   ;;  %v10519_v12 = vunpack.c.h.bf16 %v11362_v11 }
 0x13a   :  { %16505 = vst [vmem:[#allocation14_spill] sm:$0xff] %v13691_v47  ;;  %12253 = vmatprep.mubr.msk.bf16.mxu1 %vm313_vm2, %v12705_v14  ;;  %v13697_v27 = vadd.f32 %v1682_v13, %v879_v7  ;;  %v10391_v47 = vunpack.c.h.bf16 %v11330_v10 }
 0x13b   :  { %16506 = vst [vmem:[#allocation15_spill] sm:$0xff] %v13694_v37 }
 0x13c   :  { %16507 = vst [vmem:[#allocation16_spill] sm:$0xff] %v13697_v27  ;;  %v11943_v17 = vpop.f32.mrb[48].mxu0  ;;  %v12009_v18 = vpop.f32.mrb[48].mxu1  ;;  %v10518_v27 = vunpack.c.l.bf16 %v11362_v11  ;;  %v11364_v11 = vld [vmem:[%s16491_s0 + $0x1e8] sm:$0xff]  }
 0x13d   :  { %v884_v33 = vmul.f32 %v11943_v17, %v10382_v57  ;;  %v1687_v43 = vmul.f32 %v12009_v18, %v10510_v15  ;;  %v643_v60 = vpop.f32.mrb[49].mxu0  ;;  %v1445_v0 = vpop.f32.mrb[49].mxu1  ;;  %v12707_v15 = vld [vmem:[%s16489_s1 + $0x480] sm:$0xff]   ;;  %v11329_v57 = vld [vmem:[%s16491_s0 + $0xd0] sm:$0xff]  }
 0x13e   :  { %v882_v2 = vmul.f32 %v10378_v56, %v643_v60  ;;  %v1685_v58 = vmul.f32 %v10506_v50, %v1445_v0  ;;  %v11944_v37 = vpop.f32.mrb[50].mxu0  ;;  %v12010_v14 = vpop.f32.mrb[50].mxu1  ;;  %v11361_v56 = vld [vmem:[%s16491_s0 + $0x1d0] sm:$0xff]   ;;  %v10390_v0 = vunpack.c.l.bf16 %v11330_v10  ;;  %v11332_v10 = vld [vmem:[%s16491_s0 + $0xe8] sm:$0xff]  }
 0x13f   :  { %v885_v24 = vmul.f32 %v11944_v37, %v10383_v20  ;;  %v1688_v51 = vmul.f32 %v12010_v14, %v10511_v5  ;;  %v646_v7 = vpop.f32.mrb[51].mxu0  ;;  %v1448_v13 = vpop.f32.mrb[51].mxu1  ;;  %v13717_v50 = vadd.f32 %v1687_v43, %v884_v33  ;;  %v10386_v20 = vunpack.c.l.bf16 %v11329_v57 }
 0x140   :  { %v883_v17 = vmul.f32 %v10379_v53, %v646_v7  ;;  %v1686_v18 = vmul.f32 %v10507_v54, %v1448_v13  ;;  %v13719_v60 = vadd.f32 %v1685_v58, %v882_v2  ;;  %v10514_v37 = vunpack.c.l.bf16 %v11361_v56 }
 0x141   :  { %16508 = vst [vmem:[#allocation17_spill] sm:$0xff] %v13717_v50  ;;  %12254 = vmatmul.mubr.msk.bf16.gmra.mrb[156].mxu1 %vm313_vm2, %v12706_v61  ;;  %v13722_v5 = vadd.f32 %v1688_v51, %v885_v24  ;;  %v10387_v53 = vunpack.c.h.bf16 %v11329_v57  ;;  %v10515_v54 = vunpack.c.h.bf16 %v11361_v56  ;;  %v12708_v61 = vld [vmem:[%s16489_s1 + $0x488] sm:$0xff]   ;;  %v10527_v50 = vunpack.c.h.bf16 %v11364_v11 }
 0x142   :  { %16509 = vst [vmem:[#allocation18_spill] sm:$0xff] %v13719_v60  ;;  %12257 = vmatprep.mubr.msk.bf16.mxu1 %vm313_vm2, %v12707_v15  ;;  %v13725_v14 = vadd.f32 %v1686_v18, %v883_v17  ;;  %v10399_v60 = vunpack.c.h.bf16 %v11332_v10 }
 0x143   :  { %16510 = vst [vmem:[#allocation19_spill] sm:$0xff] %v13722_v5 }
 0x144   :  { %16511 = vst [vmem:[#allocation20_spill] sm:$0xff] %v13725_v14  ;;  %v11947_v33 = vpop.f32.mrb[52].mxu0  ;;  %v12013_v43 = vpop.f32.mrb[52].mxu1  ;;  %v10526_v14 = vunpack.c.l.bf16 %v11364_v11  ;;  %v11366_v11 = vld [vmem:[%s16491_s0 + $0x1f8] sm:$0xff]  }
 0x145   :  { %v888_v2 = vmul.f32 %v11947_v33, %v10390_v0  ;;  %v1691_v58 = vmul.f32 %v12013_v43, %v10518_v27  ;;  %v659_v7 = vpop.f32.mrb[53].mxu0  ;;  %v1461_v13 = vpop.f32.mrb[53].mxu1  ;;  %v12709_v27 = vld [vmem:[%s16489_s1 + $0x490] sm:$0xff]   ;;  %v11331_v0 = vld [vmem:[%s16491_s0 + $0xe0] sm:$0xff]  }
 0x146   :  { %v886_v24 = vmul.f32 %v10386_v20, %v659_v7  ;;  %v1689_v51 = vmul.f32 %v10514_v37, %v1461_v13  ;;  %v11948_v5 = vpop.f32.mrb[54].mxu0  ;;  %v12014_v15 = vpop.f32.mrb[54].mxu1  ;;  %v11363_v20 = vld [vmem:[%s16491_s0 + $0x1e0] sm:$0xff]   ;;  %v10398_v13 = vunpack.c.l.bf16 %v11332_v10  ;;  %v11334_v10 = vld [vmem:[%s16491_s0 + $0xf8] sm:$0xff]  }
 0x147   :  { %v889_v57 = vmul.f32 %v11948_v5, %v10391_v47  ;;  %v1692_v56 = vmul.f32 %v12014_v15, %v10519_v12  ;;  %v662_v17 = vpop.f32.mrb[55].mxu0  ;;  %v1464_v18 = vpop.f32.mrb[55].mxu1  ;;  %v13745_v37 = vadd.f32 %v1691_v58, %v888_v2  ;;  %v10394_v47 = vunpack.c.l.bf16 %v11331_v0 }
 0x148   :  { %v887_v33 = vmul.f32 %v10387_v53, %v662_v17  ;;  %v1690_v43 = vmul.f32 %v10515_v54, %v1464_v18  ;;  %v13747_v7 = vadd.f32 %v1689_v51, %v886_v24  ;;  %v10522_v5 = vunpack.c.l.bf16 %v11363_v20 }
 0x149   :  { %16512 = vst [vmem:[#allocation21_spill] sm:$0xff] %v13745_v37  ;;  %12258 = vmatmul.mubr.msk.bf16.gmra.mrb[160].mxu1 %vm313_vm2, %v12708_v61  ;;  %v13750_v12 = vadd.f32 %v1692_v56, %v889_v57  ;;  %v10395_v53 = vunpack.c.h.bf16 %v11331_v0  ;;  %v10523_v54 = vunpack.c.h.bf16 %v11363_v20  ;;  %v12710_v61 = vld [vmem:[%s16489_s1 + $0x498] sm:$0xff]   ;;  %v10535_v37 = vunpack.c.h.bf16 %v11366_v11 }
 0x14a   :  { %16513 = vst [vmem:[#allocation22_spill] sm:$0xff] %v13747_v7  ;;  %12261 = vmatprep.mubr.msk.bf16.mxu1 %vm313_vm2, %v12709_v27  ;;  %v13753_v15 = vadd.f32 %v1690_v43, %v887_v33  ;;  %v10407_v7 = vunpack.c.h.bf16 %v11334_v10 }
 0x14b   :  { %16514 = vst [vmem:[#allocation23_spill] sm:$0xff] %v13750_v12 }
 0x14c   :  { %16515 = vst [vmem:[#allocation24_spill] sm:$0xff] %v13753_v15  ;;  %v11951_v2 = vpop.f32.mrb[56].mxu0  ;;  %v12017_v58 = vpop.f32.mrb[56].mxu1  ;;  %v10534_v15 = vunpack.c.l.bf16 %v11366_v11  ;;  %v11400_v11 = vld [vmem:[%s16491_s0 + $0x308] sm:$0xff]  }
 0x14d   :  { %v892_v24 = vmul.f32 %v11951_v2, %v10398_v13  ;;  %v1695_v51 = vmul.f32 %v12017_v58, %v10526_v14  ;;  %v675_v17 = vpop.f32.mrb[57].mxu0  ;;  %v1477_v18 = vpop.f32.mrb[57].mxu1  ;;  %v12711_v14 = vld [vmem:[%s16489_s1 + $0x4a0] sm:$0xff]   ;;  %v11333_v13 = vld [vmem:[%s16491_s0 + $0xf0] sm:$0xff]  }
 0x14e   :  { %v890_v57 = vmul.f32 %v10394_v47, %v675_v17  ;;  %v1693_v56 = vmul.f32 %v10522_v5, %v1477_v18  ;;  %v11952_v12 = vpop.f32.mrb[58].mxu0  ;;  %v12018_v27 = vpop.f32.mrb[58].mxu1  ;;  %v11365_v47 = vld [vmem:[%s16491_s0 + $0x1f0] sm:$0xff]   ;;  %v10406_v18 = vunpack.c.l.bf16 %v11334_v10  ;;  %v11368_v10 = vld [vmem:[%s16491_s0 + $0x208] sm:$0xff]  }
 0x14f   :  { %v893_v0 = vmul.f32 %v11952_v12, %v10399_v60  ;;  %v1696_v20 = vmul.f32 %v12018_v27, %v10527_v50  ;;  %v678_v33 = vpop.f32.mrb[59].mxu0  ;;  %v1480_v43 = vpop.f32.mrb[59].mxu1  ;;  %v13773_v5 = vadd.f32 %v1695_v51, %v892_v24  ;;  %v10402_v60 = vunpack.c.l.bf16 %v11333_v13 }
 0x150   :  { %v891_v2 = vmul.f32 %v10395_v53, %v678_v33  ;;  %v1694_v58 = vmul.f32 %v10523_v54, %v1480_v43  ;;  %v13775_v17 = vadd.f32 %v1693_v56, %v890_v57  ;;  %v10530_v12 = vunpack.c.l.bf16 %v11365_v47 }
 0x151   :  { %16516 = vst [vmem:[#allocation25_spill] sm:$0xff] %v13773_v5  ;;  %12262 = vmatmul.mubr.msk.bf16.gmra.mrb[164].mxu1 %vm313_vm2, %v12710_v61  ;;  %v13778_v50 = vadd.f32 %v1696_v20, %v893_v0  ;;  %v10403_v53 = vunpack.c.h.bf16 %v11333_v13  ;;  %v10531_v54 = vunpack.c.h.bf16 %v11365_v47  ;;  %v12712_v61 = vld [vmem:[%s16489_s1 + $0x4a8] sm:$0xff]  }
 0x152   :  { %16517 = vst [vmem:[#allocation26_spill] sm:$0xff] %v13775_v17  ;;  %12265 = vmatprep.mubr.msk.bf16.mxu1 %vm313_vm2, %v12711_v14  ;;  %v13781_v27 = vadd.f32 %v1694_v58, %v891_v2  ;;  %v10543_v17 = vunpack.c.h.bf16 %v11368_v10 }
 0x153   :  { %16518 = vst [vmem:[#allocation27_spill] sm:$0xff] %v13778_v50 }
 0x154   :  { %16519 = vst [vmem:[#allocation28_spill] sm:$0xff] %v13781_v27  ;;  %v11955_v24 = vpop.f32.mrb[60].mxu0  ;;  %v12021_v51 = vpop.f32.mrb[60].mxu1  ;;  %v10670_v27 = vunpack.c.l.bf16 %v11400_v11 }
 0x155   :  { %v896_v57 = vmul.f32 %v11955_v24, %v10406_v18  ;;  %v1699_v56 = vmul.f32 %v12021_v51, %v10534_v15  ;;  %v691_v33 = vpop.f32.mrb[61].mxu0  ;;  %v1493_v43 = vpop.f32.mrb[61].mxu1  ;;  %v12713_v15 = vld [vmem:[%s16489_s1 + $0x4b0] sm:$0xff]   ;;  %v11367_v18 = vld [vmem:[%s16491_s0 + $0x200] sm:$0xff]  }
 0x156   :  { %v894_v0 = vmul.f32 %v10402_v60, %v691_v33  ;;  %v1697_v20 = vmul.f32 %v10530_v12, %v1493_v43  ;;  %v11956_v50 = vpop.f32.mrb[62].mxu0  ;;  %v12022_v14 = vpop.f32.mrb[62].mxu1  ;;  %v11399_v60 = vld [vmem:[%s16491_s0 + $0x300] sm:$0xff]   ;;  %v10542_v43 = vunpack.c.l.bf16 %v11368_v10  ;;  %v12714_v10 = vld [vmem:[%s16489_s1 + $0x4b8] sm:$0xff]  }
 0x157   :  { %v897_v13 = vmul.f32 %v11956_v50, %v10407_v7  ;;  %v1700_v47 = vmul.f32 %v12022_v14, %v10535_v37  ;;  %v694_v2 = vpop.f32.mrb[63].mxu0  ;;  %v1496_v58 = vpop.f32.mrb[63].mxu1  ;;  %v13801_v12 = vadd.f32 %v1699_v56, %v896_v57  ;;  %v10538_v7 = vunpack.c.l.bf16 %v11367_v18 }
 0x158   :  { %v895_v24 = vmul.f32 %v10403_v53, %v694_v2  ;;  %v1698_v51 = vmul.f32 %v10531_v54, %v1496_v58  ;;  %v13803_v33 = vadd.f32 %v1697_v20, %v894_v0  ;;  %v10666_v50 = vunpack.c.l.bf16 %v11399_v60 }
 0x159   :  { %16520 = vst [vmem:[#allocation29_spill] sm:$0xff] %v13801_v12  ;;  %12266 = vmatmul.mubr.msk.bf16.gmra.mrb[168].mxu1 %vm313_vm2, %v12712_v61  ;;  %v13806_v37 = vadd.f32 %v1700_v47, %v897_v13  ;;  %v10539_v56 = vunpack.c.h.bf16 %v11367_v18  ;;  %v10671_v2 = vunpack.c.h.bf16 %v11400_v11  ;;  %v11370_v61 = vld [vmem:[%s16491_s0 + $0x218] sm:$0xff]   ;;  %v11369_v13 = vld [vmem:[%s16491_s0 + $0x210] sm:$0xff]   ;;  %v12715_v18 = vld [vmem:[%s16489_s1 + $0x4c0] sm:$0xff]  }
 0x15a   :  { %16521 = vst [vmem:[#allocation30_spill] sm:$0xff] %v13803_v33  ;;  %12269 = vmatprep.mubr.msk.bf16.mxu1 %vm313_vm2, %v12713_v15  ;;  %v13809_v14 = vadd.f32 %v1698_v51, %v895_v24  ;;  %v11402_v11 = vld [vmem:[%s16491_s0 + $0x318] sm:$0xff]   ;;  %v10551_v30 = vunpack.c.h.bf16 %v11370_v61 }
 0x15b   :  { %16522 = vst [vmem:[#allocation31_spill] sm:$0xff] %v13806_v37  ;;  %v10678_v12 = vunpack.c.l.bf16 %v11402_v11 }
 0x15c   :  { %16523 = vst [vmem:[#allocation32_spill] sm:$0xff] %v13809_v14  ;;  %v12027_v5 = vpop.f32.mrb[64].mxu0  ;;  %v12093_v57 = vpop.f32.mrb[64].mxu1 }
 0x15d   :  { %v2506_v53 = vmul.f32 %v12027_v5, %v10542_v43  ;;  %v3373_v54 = vmul.f32 %v12093_v57, %v10670_v27  ;;  %v2120_v0 = vpop.f32.mrb[65].mxu0  ;;  %v2987_v20 = vpop.f32.mrb[65].mxu1  ;;  %v10667_v27 = vunpack.c.h.bf16 %v11399_v60 }
 0x15e   :  { %v2504_v15 = vmul.f32 %v10538_v7, %v2120_v0  ;;  %v3371_v47 = vmul.f32 %v10666_v50, %v2987_v20  ;;  %v12028_v58 = vpop.f32.mrb[66].mxu0  ;;  %v12094_v5 = vpop.f32.mrb[66].mxu1  ;;  %v11401_v7 = vld [vmem:[%s16491_s0 + $0x310] sm:$0xff]   ;;  %v10550_v0 = vunpack.c.l.bf16 %v11370_v61  ;;  %v10546_v20 = vunpack.c.l.bf16 %v11369_v13 }
 0x15f   :  { %v2570_v24 = vadd.f32 %v2506_v53, %v13350_v26  ;;  %v2507_v51 = vmul.f32 %v12028_v58, %v10543_v17  ;;  %v2123_v43 = vpop.f32.mrb[67].mxu0  ;;  %v2990_v57 = vpop.f32.mrb[67].mxu1  ;;  %v3374_v33 = vmul.f32 %v12094_v5, %v10671_v2  ;;  %v10674_v58 = vunpack.c.l.bf16 %v11401_v7 }
 0x160   :  { %v2568_v50 = vadd.f32 %v2504_v15, %v13352_v29  ;;  %v2505_v60 = vmul.f32 %v10539_v56, %v2123_v43  ;;  %v3372_v53 = vmul.f32 %v10667_v27, %v2990_v57  ;;  %v10679_v43 = vunpack.c.h.bf16 %v11402_v11  ;;  %v12717_v27 = vld [vmem:[%s16489_s1 + $0x4d0] sm:$0xff]  }
 0x161   :  { %v3437_v14 = vadd.f32 %v3373_v54, %v2570_v24  ;;  %v2571_v37 = vadd.f32 %v2507_v51, %v13356_v32  ;;  %12270 = vmatmul.mubr.msk.bf16.gmra.mrb[172].mxu1 %vm313_vm2, %v12714_v10  ;;  %v10547_v54 = vunpack.c.h.bf16 %v11369_v13  ;;  %v10675_v10 = vunpack.c.h.bf16 %v11401_v7 }
 0x162   :  { %v3435_v26 = vadd.f32 %v3371_v47, %v2568_v50  ;;  %v2569_v17 = vadd.f32 %v2505_v60, %v13360_v35  ;;  %12273 = vmatprep.mubr.msk.bf16.mxu1 %vm313_vm2, %v12715_v18  ;;  %v11372_v35 = vld [vmem:[%s16491_s0 + $0x228] sm:$0xff]   ;;  %v11403_v60 = vld [vmem:[%s16491_s0 + $0x320] sm:$0xff]  }
 0x163   :  { %v3438_v38 = vadd.f32 %v3374_v33, %v2571_v37  ;;  %v13841_v33 = vld [vmem:[%s16491_s0 + $0x220] sm:$0xff]   ;;  %v12716_v37 = vld [vmem:[%s16489_s1 + $0x4c8] sm:$0xff]  }
 0x164   :  { %v3436_v29 = vadd.f32 %v3372_v53, %v2569_v17  ;;  %v12031_v56 = vpop.f32.mrb[68].mxu0  ;;  %v12097_v15 = vpop.f32.mrb[68].mxu1  ;;  %v11404_v47 = vld [vmem:[%s16491_s0 + $0x328] sm:$0xff]  }
 0x165   :  { %v3500_v24 = vpack.c.bf16 %v3438_v38, %v3437_v14  ;;  %v2510_v32 = vmul.f32 %v12031_v56, %v10550_v0  ;;  %v3377_v2 = vmul.f32 %v12097_v15, %v10678_v12  ;;  %v2136_v5 = vpop.f32.mrb[69].mxu0  ;;  %v3003_v51 = vpop.f32.mrb[69].mxu1 }
 0x166   :  { %v3499_v61 = vpack.c.bf16 %v3436_v29, %v3435_v26  ;;  %v2508_v38 = vmul.f32 %v10546_v20, %v2136_v5  ;;  %v3375_v14 = vmul.f32 %v10674_v58, %v3003_v51  ;;  %v12032_v12 = vpop.f32.mrb[70].mxu0  ;;  %v12098_v13 = vpop.f32.mrb[70].mxu1  ;;  %v10558_v20 = vunpack.c.l.bf16 %v11372_v35 }
 0x167   :  { %v2574_v11 = vadd.f32 %v2510_v32, %v13386_v62  ;;  %v2511_v18 = vmul.f32 %v12032_v12, %v10551_v30  ;;  %v2139_v57 = vpop.f32.mrb[71].mxu0  ;;  %v3006_v50 = vpop.f32.mrb[71].mxu1  ;;  %v10554_v26 = vunpack.c.l.bf16 %v13841_v33  ;;  %v3378_v58 = vmul.f32 %v12098_v13, %v10679_v43 }
 0x168   :  { %v2572_v0 = vadd.f32 %v2508_v38, %v13388_v1  ;;  %v2509_v7 = vmul.f32 %v10547_v54, %v2139_v57  ;;  %12159 = vmatprep.mubr.msk.bf16.mxu0 %vm3543_vm4, %v3499_v61  ;;  %v10686_v62 = vunpack.c.l.bf16 %v11404_v47  ;;  %v3376_v56 = vmul.f32 %v10675_v10, %v3006_v50  ;;  %v11374_v38 = vld [vmem:[%s16491_s0 + $0x238] sm:$0xff]  }
 0x169   :  { %v3441_v17 = vadd.f32 %v3377_v2, %v2574_v11  ;;  %v2575_v53 = vadd.f32 %v2511_v18, %v13392_v4  ;;  %12160 = vmatmul.mubr.msk.bf16.vlgmr.msra.gmra.mrb[128].mxu0 %vm3543_vm4, %v3500_v24  ;;  %12274 = vmatmul.mubr.msk.bf16.gmra.mrb[176].mxu1 %vm313_vm2, %v12716_v37  ;;  %v10682_v1 = vunpack.c.l.bf16 %v11403_v60  ;;  %v10559_v54 = vunpack.c.h.bf16 %v11372_v35  ;;  %v11373_v35 = vld [vmem:[%s16491_s0 + $0x230] sm:$0xff]   ;;  %v12719_v18 = vld [vmem:[%s16489_s1 + $0x4e0] sm:$0xff]  }
 0x16a   :  { %v3439_v30 = vadd.f32 %v3375_v14, %v2572_v0  ;;  %v2573_v29 = vadd.f32 %v2509_v7, %v13396_v8  ;;  %12290 = vmatpush3.bf16.msra.mxu0 %v12858_v6  ;;  %12277 = vmatprep.mubr.msk.bf16.mxu1 %vm313_vm2, %v12717_v27  ;;  %v10555_v24 = vunpack.c.h.bf16 %v13841_v33  ;;  %v10687_v61 = vunpack.c.h.bf16 %v11404_v47  ;;  %v12718_v14 = vld [vmem:[%s16489_s1 + $0x4d8] sm:$0xff]  }
 0x16b   :  { %v3442_v15 = vadd.f32 %v3378_v58, %v2575_v53  ;;  %12421 = vmatprep.subr.bf16.mxu0 %v12858_v6  ;;  %v10683_v11 = vunpack.c.h.bf16 %v11403_v60  ;;  %v11406_v47 = vld [vmem:[%s16491_s0 + $0x338] sm:$0xff]   ;;  %v10562_v53 = vunpack.c.l.bf16 %v11373_v35 }
 0x16c   :  { %v3440_v4 = vadd.f32 %v3376_v56, %v2573_v29  ;;  %v12035_v43 = vpop.f32.mrb[72].mxu0  ;;  %v12101_v32 = vpop.f32.mrb[72].mxu1 }
 0x16d   :  { %v3502_v2 = vpack.c.bf16 %v3442_v15, %v3441_v17  ;;  %v2514_v5 = vmul.f32 %v12035_v43, %v10558_v20  ;;  %v3381_v51 = vmul.f32 %v12101_v32, %v10686_v62  ;;  %v2152_v37 = vpop.f32.mrb[73].mxu0  ;;  %v3019_v8 = vpop.f32.mrb[73].mxu1  ;;  %v11405_v20 = vld [vmem:[%s16491_s0 + $0x330] sm:$0xff]   ;;  %v10566_v17 = vunpack.c.l.bf16 %v11374_v38 }
 0x16e   :  { %v3501_v12 = vpack.c.bf16 %v3440_v4, %v3439_v30  ;;  %v2512_v33 = vmul.f32 %v10554_v26, %v2152_v37  ;;  %v3379_v13 = vmul.f32 %v10682_v1, %v3019_v8  ;;  %v12036_v10 = vpop.f32.mrb[74].mxu0  ;;  %v12102_v27 = vpop.f32.mrb[74].mxu1  ;;  %v10690_v15 = vunpack.c.l.bf16 %v11405_v20 }
 0x16f   :  { %v2578_v57 = vadd.f32 %v2514_v5, %v13422_v39  ;;  %v2515_v50 = vmul.f32 %v12036_v10, %v10559_v54  ;;  %v2155_v0 = vpop.f32.mrb[75].mxu0  ;;  %v3022_v7 = vpop.f32.mrb[75].mxu1  ;;  %v3382_v30 = vmul.f32 %v12102_v27, %v10687_v61  ;;  %v10694_v39 = vunpack.c.l.bf16 %v11406_v47  ;;  %v11375_v61 = vld [vmem:[%s16491_s0 + $0x240] sm:$0xff]   ;;  %v11408_v27 = vld [vmem:[%s16491_s0 + $0x348] sm:$0xff]  }
 0x170   :  { %v2576_v26 = vadd.f32 %v2512_v33, %v13424_v42  ;;  %v2513_v60 = vmul.f32 %v10555_v24, %v2155_v0  ;;  %12163 = vmatprep.mubr.msk.bf16.mxu0 %vm3543_vm4, %v3501_v12  ;;  %v3380_v1 = vmul.f32 %v10683_v11, %v3022_v7  ;;  %v10567_v54 = vunpack.c.h.bf16 %v11374_v38  ;;  %v12720_v38 = vld [vmem:[%s16489_s1 + $0x4e8] sm:$0xff]   ;;  %v12721_v11 = vld [vmem:[%s16489_s1 + $0x4f0] sm:$0xff]   ;;  %v11407_v0 = vld [vmem:[%s16491_s0 + $0x340] sm:$0xff]  }
 0x171   :  { %v3445_v58 = vadd.f32 %v3381_v51, %v2578_v57  ;;  %v2579_v62 = vadd.f32 %v2515_v50, %v13428_v45  ;;  %12164 = vmatmul.mubr.msk.bf16.gmra.mrb[132].mxu0 %vm3543_vm4, %v3502_v2  ;;  %12278 = vmatmul.mubr.msk.bf16.gmra.mrb[180].mxu1 %vm313_vm2, %v12718_v14  ;;  %v10563_v24 = vunpack.c.h.bf16 %v11373_v35  ;;  %v10695_v8 = vunpack.c.h.bf16 %v11406_v47 }
 0x172   :  { %v3443_v29 = vadd.f32 %v3379_v13, %v2576_v26  ;;  %v2577_v56 = vadd.f32 %v2513_v60, %v13432_v48  ;;  %12281 = vmatprep.mubr.msk.bf16.mxu1 %vm313_vm2, %v12719_v18  ;;  %v11376_v48 = vld [vmem:[%s16491_s0 + $0x248] sm:$0xff]   ;;  %v10691_v10 = vunpack.c.h.bf16 %v11405_v20  ;;  %v10570_v60 = vunpack.c.l.bf16 %v11375_v61 }
 0x173   :  { %v3446_v42 = vadd.f32 %v3382_v30, %v2579_v62  ;;  %v10574_v26 = vunpack.c.l.bf16 %v11376_v48 }
 0x174   :  { %v3444_v4 = vadd.f32 %v3380_v1, %v2577_v56  ;;  %v12039_v43 = vpop.f32.mrb[76].mxu0  ;;  %v12105_v32 = vpop.f32.mrb[76].mxu1  ;;  %v10575_v56 = vunpack.c.h.bf16 %v11376_v48 }
 0x175   :  { %v3504_v45 = vpack.c.bf16 %v3446_v42, %v3445_v58  ;;  %v2518_v5 = vmul.f32 %v12039_v43, %v10566_v17  ;;  %v3385_v51 = vmul.f32 %v12105_v32, %v10694_v39  ;;  %v2168_v2 = vpop.f32.mrb[77].mxu0  ;;  %v3035_v37 = vpop.f32.mrb[77].mxu1 }
 0x176   :  { %v3503_v14 = vpack.c.bf16 %v3444_v4, %v3443_v29  ;;  %v2516_v35 = vmul.f32 %v10562_v53, %v2168_v2  ;;  %v3383_v12 = vmul.f32 %v10690_v15, %v3035_v37  ;;  %v12040_v33 = vpop.f32.mrb[78].mxu0  ;;  %v12106_v13 = vpop.f32.mrb[78].mxu1  ;;  %v10698_v29 = vunpack.c.l.bf16 %v11407_v0 }
 0x177   :  { %v2582_v47 = vadd.f32 %v2518_v5, %v13458_v16  ;;  %v2519_v18 = vmul.f32 %v12040_v33, %v10567_v54  ;;  %v2171_v57 = vpop.f32.mrb[79].mxu0  ;;  %v3038_v50 = vpop.f32.mrb[79].mxu1  ;;  %v3386_v58 = vmul.f32 %v12106_v13, %v10695_v8  ;;  %v10702_v16 = vunpack.c.l.bf16 %v11408_v27  ;;  %v11377_v5 = vld [vmem:[%s16491_s0 + $0x250] sm:$0xff]  }
 0x178   :  { %v2580_v7 = vadd.f32 %v2516_v35, %v13460_v19  ;;  %v2517_v20 = vmul.f32 %v10563_v24, %v2171_v57  ;;  %12167 = vmatprep.mubr.msk.bf16.mxu0 %vm3543_vm4, %v3503_v14  ;;  %v3384_v39 = vmul.f32 %v10691_v10, %v3038_v50  ;;  %v10571_v54 = vunpack.c.h.bf16 %v11375_v61  ;;  %v11410_v14 = vld [vmem:[%s16491_s0 + $0x358] sm:$0xff]   ;;  %v12725_v35 = vld [vmem:[%s16489_s1 + $0x600] sm:$0xff]  }
 0x179   :  { %v3449_v17 = vadd.f32 %v3385_v51, %v2582_v47  ;;  %v2583_v53 = vadd.f32 %v2519_v18, %v13464_v22  ;;  %12168 = vmatmul.mubr.msk.bf16.gmra.mrb[136].mxu0 %vm3543_vm4, %v3504_v45  ;;  %12282 = vmatmul.mubr.msk.bf16.gmra.mrb[184].mxu1 %vm313_vm2, %v12720_v38  ;;  %v10703_v45 = vunpack.c.h.bf16 %v11408_v27  ;;  %v12722_v51 = vld [vmem:[%s16489_s1 + $0x4f8] sm:$0xff]   ;;  %v10699_v38 = vunpack.c.h.bf16 %v11407_v0  ;;  %v11409_v27 = vld [vmem:[%s16491_s0 + $0x350] sm:$0xff]  }
 0x17a   :  { %v3447_v62 = vadd.f32 %v3383_v12, %v2580_v7  ;;  %v2581_v30 = vadd.f32 %v2517_v20, %v13468_v25  ;;  %12285 = vmatprep.mubr.msk.bf16.mxu1 %vm313_vm2, %v12721_v11  ;;  %v11378_v25 = vld [vmem:[%s16491_s0 + $0x258] sm:$0xff]   ;;  %v10578_v57 = vunpack.c.l.bf16 %v11377_v5 }
 0x17b   :  { %v3450_v19 = vadd.f32 %v3386_v58, %v2583_v53  ;;  %v10582_v18 = vunpack.c.l.bf16 %v11378_v25  ;;  %v10583_v53 = vunpack.c.h.bf16 %v11378_v25  ;;  %v12729_v25 = vld [vmem:[%s16489_s1 + $0x610] sm:$0xff]  }
 0x17c   :  { %v3448_v1 = vadd.f32 %v3384_v39, %v2581_v30  ;;  %v12043_v15 = vpop.f32.mrb[80].mxu0  ;;  %v12109_v42 = vpop.f32.mrb[80].mxu1  ;;  %v10579_v30 = vunpack.c.h.bf16 %v11377_v5 }
 0x17d   :  { %v3506_v22 = vpack.c.bf16 %v3450_v19, %v3449_v17  ;;  %v2522_v4 = vmul.f32 %v12043_v15, %v10574_v26  ;;  %v3389_v43 = vmul.f32 %v12109_v42, %v10702_v16  ;;  %v2184_v32 = vpop.f32.mrb[81].mxu0  ;;  %v3051_v24 = vpop.f32.mrb[81].mxu1  ;;  %v10706_v17 = vunpack.c.l.bf16 %v11409_v27  ;;  %v11379_v15 = vld [vmem:[%s16491_s0 + $0x260] sm:$0xff]   ;;  %v12726_v42 = vld [vmem:[%s16489_s1 + $0x608] sm:$0xff]  }
 0x17e   :  { %v3505_v2 = vpack.c.bf16 %v3448_v1, %v3447_v62  ;;  %v2520_v37 = vmul.f32 %v10570_v60, %v2184_v32  ;;  %v3387_v8 = vmul.f32 %v10698_v29, %v3051_v24  ;;  %v12044_v48 = vpop.f32.mrb[82].mxu0  ;;  %v12110_v61 = vpop.f32.mrb[82].mxu1  ;;  %v10711_v1 = vunpack.c.h.bf16 %v11410_v14 }
 0x17f   :  { %v2586_v12 = vadd.f32 %v2522_v4, %v13491_v59  ;;  %v2523_v33 = vmul.f32 %v12044_v48, %v10575_v56  ;;  %v2187_v13 = vpop.f32.mrb[83].mxu0  ;;  %v3054_v10 = vpop.f32.mrb[83].mxu1  ;;  %v3390_v7 = vmul.f32 %v12110_v61, %v10703_v45  ;;  %v10710_v59 = vunpack.c.l.bf16 %v11410_v14  ;;  %v11412_v45 = vld [vmem:[%s16491_s0 + $0x368] sm:$0xff]  }
 0x180   :  { %v2584_v11 = vadd.f32 %v2520_v37, %v13493_v63  ;;  %v2521_v47 = vmul.f32 %v10571_v54, %v2187_v13  ;;  %12171 = vmatprep.mubr.msk.bf16.mxu0 %vm3543_vm4, %v3505_v2  ;;  %v3388_v60 = vmul.f32 %v10699_v38, %v3054_v10  ;;  %v10707_v24 = vunpack.c.h.bf16 %v11409_v27 }
 0x181   :  { %v3453_v50 = vadd.f32 %v3389_v43, %v2586_v12  ;;  %v2587_v0 = vadd.f32 %v2523_v33, %v13497_v3  ;;  %12172 = vmatmul.mubr.msk.bf16.gmra.mrb[140].mxu0 %vm3543_vm4, %v3506_v22  ;;  %12286 = vmatmul.mubr.msk.bf16.gmra.mrb[188].mxu1 %vm313_vm2, %v12722_v51  ;;  %v10586_v14 = vunpack.c.l.bf16 %v11379_v15 }
 0x182   :  { %v3451_v20 = vadd.f32 %v3387_v8, %v2584_v11  ;;  %v2585_v26 = vadd.f32 %v2521_v47, %v13500_v9  ;;  %12357 = vmatprep.mubr.msk.bf16.mxu1 %vm313_vm2, %v12725_v35  ;;  %v11380_v9 = vld [vmem:[%s16491_s0 + $0x268] sm:$0xff]   ;;  %v11411_v8 = vld [vmem:[%s16491_s0 + $0x360] sm:$0xff]  }
 0x183   :  { %v3454_v63 = vadd.f32 %v3390_v7, %v2587_v0  ;;  %v10590_v38 = vunpack.c.l.bf16 %v11380_v9  ;;  %v10714_v11 = vunpack.c.l.bf16 %v11411_v8  ;;  %v10591_v47 = vunpack.c.h.bf16 %v11380_v9 }
 0x184   :  { %v3452_v58 = vadd.f32 %v3388_v60, %v2585_v26  ;;  %v12047_v16 = vpop.f32.mrb[84].mxu0  ;;  %v12113_v62 = vpop.f32.mrb[84].mxu1  ;;  %v10587_v0 = vunpack.c.h.bf16 %v11379_v15  ;;  %v10719_v60 = vunpack.c.h.bf16 %v11412_v45  ;;  %v11413_v15 = vld [vmem:[%s16491_s0 + $0x370] sm:$0xff]  }
 0x185   :  { %v3508_v3 = vpack.c.bf16 %v3454_v63, %v3453_v50  ;;  %v2526_v39 = vmul.f32 %v12047_v16, %v10582_v18  ;;  %v3393_v29 = vmul.f32 %v12113_v62, %v10710_v59  ;;  %v2200_v19 = vpop.f32.mrb[85].mxu0  ;;  %v3067_v56 = vpop.f32.mrb[85].mxu1  ;;  %v12730_v63 = vld [vmem:[%s16489_s1 + $0x618] sm:$0xff]  }
 0x186   :  { %v3507_v54 = vpack.c.bf16 %v3452_v58, %v3451_v20  ;;  %v2524_v22 = vmul.f32 %v10578_v57, %v2200_v19  ;;  %v3391_v4 = vmul.f32 %v10706_v17, %v3067_v56  ;;  %v12048_v43 = vpop.f32.mrb[86].mxu0  ;;  %v12114_v32 = vpop.f32.mrb[86].mxu1  ;;  %v11381_v17 = vld [vmem:[%s16491_s0 + $0x270] sm:$0xff]  }
 0x187   :  { %v2590_v5 = vadd.f32 %v2526_v39, %v13520_v44  ;;  %v2527_v51 = vmul.f32 %v12048_v43, %v10583_v53  ;;  %v2203_v2 = vpop.f32.mrb[87].mxu0  ;;  %v3070_v37 = vpop.f32.mrb[87].mxu1  ;;  %v3394_v33 = vmul.f32 %v12114_v32, %v10711_v1  ;;  %v10718_v44 = vunpack.c.l.bf16 %v11412_v45  ;;  %v11414_v39 = vld [vmem:[%s16491_s0 + $0x378] sm:$0xff]  }
 0x188   :  { %v2588_v48 = vadd.f32 %v2524_v22, %v13522_v49  ;;  %v2525_v61 = vmul.f32 %v10579_v30, %v2203_v2  ;;  %12175 = vmatprep.mubr.msk.bf16.mxu0 %vm3543_vm4, %v3507_v54  ;;  %v3392_v27 = vmul.f32 %v10707_v24, %v3070_v37 }
 0x189   :  { %v3457_v35 = vadd.f32 %v3393_v29, %v2590_v5  ;;  %v2591_v12 = vadd.f32 %v2527_v51, %v13525_v52  ;;  %12176 = vmatmul.mubr.msk.bf16.gmra.mrb[144].mxu0 %vm3543_vm4, %v3508_v3  ;;  %12358 = vmatmul.mubr.msk.bf16.vlgmr.msra.gmra.mrb[192].mxu1 %vm313_vm2, %v12726_v42  ;;  %v10715_v3 = vunpack.c.h.bf16 %v11411_v8  ;;  %v12733_v29 = vld [vmem:[%s16489_s1 + $0x620] sm:$0xff]   ;;  %v10722_v51 = vunpack.c.l.bf16 %v11413_v15 }
 0x18a   :  { %v3455_v13 = vadd.f32 %v3391_v4, %v2588_v48  ;;  %v2589_v10 = vadd.f32 %v2525_v61, %v13528_v55  ;;  %12361 = vmatprep.mubr.msk.bf16.mxu1 %vm313_vm2, %v12729_v25  ;;  %v11382_v55 = vld [vmem:[%s16491_s0 + $0x278] sm:$0xff]   ;;  %v10594_v4 = vunpack.c.l.bf16 %v11381_v17  ;;  %v10595_v61 = vunpack.c.h.bf16 %v11381_v17 }
 0x18b   :  { %v3458_v49 = vadd.f32 %v3394_v33, %v2591_v12  ;;  %v10598_v22 = vunpack.c.l.bf16 %v11382_v55  ;;  %v10599_v2 = vunpack.c.h.bf16 %v11382_v55  ;;  %v10727_v33 = vunpack.c.h.bf16 %v11414_v39 }
 0x18c   :  { %v3456_v18 = vadd.f32 %v3392_v27, %v2589_v10  ;;  %v12051_v57 = vpop.f32.mrb[88].mxu0  ;;  %v12117_v50 = vpop.f32.mrb[88].mxu1 }
 0x18d   :  { %v3510_v52 = vpack.c.bf16 %v3458_v49, %v3457_v35  ;;  %v2530_v7 = vmul.f32 %v12051_v57, %v10590_v38  ;;  %v3397_v59 = vmul.f32 %v12117_v50, %v10718_v44  ;;  %v2216_v20 = vpop.f32.mrb[89].mxu0  ;;  %v3083_v26 = vpop.f32.mrb[89].mxu1  ;;  %v11383_v44 = vld [vmem:[%s16491_s0 + $0x280] sm:$0xff]   ;;  %v11416_v57 = vld [vmem:[%s16491_s0 + $0x388] sm:$0xff]   ;;  %v12737_v50 = vld [vmem:[%s16489_s1 + $0x630] sm:$0xff]  }
 0x18e   :  { %v3509_v53 = vpack.c.bf16 %v3456_v18, %v3455_v13  ;;  %v2528_v58 = vmul.f32 %v10586_v14, %v2216_v20  ;;  %v3395_v16 = vmul.f32 %v10714_v11, %v3083_v26  ;;  %v12052_v62 = vpop.f32.mrb[90].mxu0  ;;  %v12118_v30 = vpop.f32.mrb[90].mxu1  ;;  %v12734_v13 = vld [vmem:[%s16489_s1 + $0x628] sm:$0xff]   ;;  %v10723_v18 = vunpack.c.h.bf16 %v11413_v15  ;;  %v11415_v20 = vld [vmem:[%s16491_s0 + $0x380] sm:$0xff]  }
 0x18f   :  { %v2594_v19 = vadd.f32 %v2530_v7, %v13549_v31  ;;  %v2531_v56 = vmul.f32 %v12052_v62, %v10591_v47  ;;  %v2219_v1 = vpop.f32.mrb[91].mxu0  ;;  %v3086_v9 = vpop.f32.mrb[91].mxu1  ;;  %v3398_v24 = vmul.f32 %v12118_v30, %v10719_v60  ;;  %v10726_v31 = vunpack.c.l.bf16 %v11414_v39 }
 0x190   :  { %v2592_v42 = vadd.f32 %v2528_v58, %v13551_v36  ;;  %v2529_v54 = vmul.f32 %v10587_v0, %v2219_v1  ;;  %12179 = vmatprep.mubr.msk.bf16.mxu0 %vm3543_vm4, %v3509_v53  ;;  %v3396_v5 = vmul.f32 %v10715_v3, %v3086_v9  ;;  %v10602_v17 = vunpack.c.l.bf16 %v11383_v44 }
 0x191   :  { %v3461_v43 = vadd.f32 %v3397_v59, %v2594_v19  ;;  %v2595_v32 = vadd.f32 %v2531_v56, %v13554_v40  ;;  %12180 = vmatmul.mubr.msk.bf16.gmra.mrb[148].mxu0 %vm3543_vm4, %v3510_v52  ;;  %12362 = vmatmul.mubr.msk.bf16.gmra.mrb[196].mxu1 %vm313_vm2, %v12730_v63  ;;  %v10730_v3 = vunpack.c.l.bf16 %v11415_v20  ;;  %v10603_v1 = vunpack.c.h.bf16 %v11383_v44 }
 0x192   :  { %v3459_v45 = vadd.f32 %v3395_v16, %v2592_v42  ;;  %v2593_v25 = vadd.f32 %v2529_v54, %v13557_v46  ;;  %12365 = vmatprep.mubr.msk.bf16.mxu1 %vm313_vm2, %v12733_v29  ;;  %v11384_v46 = vld [vmem:[%s16491_s0 + $0x288] sm:$0xff]  }
 0x193   :  { %v3462_v36 = vadd.f32 %v3398_v24, %v2595_v32  ;;  %v10606_v55 = vunpack.c.l.bf16 %v11384_v46  ;;  %v10607_v39 = vunpack.c.h.bf16 %v11384_v46  ;;  %v16525_v46 = vld [vmem:[#allocation3_spill] sm:$0xff] }
 0x194   :  { %v3460_v37 = vadd.f32 %v3396_v5, %v2593_v25  ;;  %v12055_v8 = vpop.f32.mrb[92].mxu0  ;;  %v12121_v48 = vpop.f32.mrb[92].mxu1  ;;  %v10731_v5 = vunpack.c.h.bf16 %v11415_v20 }
 0x195   :  { %v3512_v40 = vpack.c.bf16 %v3462_v36, %v3461_v43  ;;  %v2534_v38 = vmul.f32 %v12055_v8, %v10598_v22  ;;  %v3401_v14 = vmul.f32 %v12121_v48, %v10726_v31  ;;  %v2232_v35 = vpop.f32.mrb[93].mxu0  ;;  %v3099_v12 = vpop.f32.mrb[93].mxu1  ;;  %v10735_v22 = vunpack.c.h.bf16 %v11416_v57  ;;  %v12738_v43 = vld [vmem:[%s16489_s1 + $0x638] sm:$0xff]   ;;  %v12741_v36 = vld [vmem:[%s16489_s1 + $0x640] sm:$0xff]  }
 0x196   :  { %v3511_v10 = vpack.c.bf16 %v3460_v37, %v3459_v45  ;;  %v2532_v27 = vmul.f32 %v10594_v4, %v2232_v35  ;;  %v3399_v11 = vmul.f32 %v10722_v51, %v3099_v12  ;;  %v12056_v49 = vpop.f32.mrb[94].mxu0  ;;  %v12122_v47 = vpop.f32.mrb[94].mxu1  ;;  %v11385_v4 = vld [vmem:[%s16491_s0 + $0x290] sm:$0xff]   ;;  %v11418_v51 = vld [vmem:[%s16491_s0 + $0x398] sm:$0xff]  }
 0x197   :  { %v2598_v0 = vadd.f32 %v2534_v38, %v13577_v23  ;;  %v2535_v52 = vmul.f32 %v12056_v49, %v10599_v2  ;;  %v2235_v7 = vpop.f32.mrb[95].mxu0  ;;  %v3102_v59 = vpop.f32.mrb[95].mxu1  ;;  %v3402_v58 = vmul.f32 %v12122_v47, %v10727_v33  ;;  %v10734_v23 = vunpack.c.l.bf16 %v11416_v57 }
 0x198   :  { %v2596_v26 = vadd.f32 %v2532_v27, %v13579_v28  ;;  %v2533_v60 = vmul.f32 %v10595_v61, %v2235_v7  ;;  %12183 = vmatprep.mubr.msk.bf16.mxu0 %vm3543_vm4, %v3511_v10  ;;  %v3400_v30 = vmul.f32 %v10723_v18, %v3102_v59  ;;  %v11417_v61 = vld [vmem:[%s16491_s0 + $0x390] sm:$0xff]   ;;  %v10610_v12 = vunpack.c.l.bf16 %v11385_v4 }
 0x199   :  { %v3465_v63 = vadd.f32 %v3401_v14, %v2598_v0  ;;  %v2599_v53 = vadd.f32 %v2535_v52, %v13582_v34  ;;  %12184 = vmatmul.mubr.msk.bf16.gmra.mrb[152].mxu0 %vm3543_vm4, %v3512_v40  ;;  %12366 = vmatmul.mubr.msk.bf16.gmra.mrb[200].mxu1 %vm313_vm2, %v12734_v13  ;;  %v16524_v40 = vld [vmem:[#allocation2_spill] sm:$0xff]  ;;  %v16526_v27 = vld [vmem:[#allocation4_spill] sm:$0xff]  ;;  %v10738_v47 = vunpack.c.l.bf16 %v11417_v61  ;;  %v10611_v7 = vunpack.c.h.bf16 %v11385_v4 }
 0x19a   :  { %v3463_v16 = vadd.f32 %v3399_v11, %v2596_v26  ;;  %v2597_v62 = vadd.f32 %v2533_v60, %v13585_v41  ;;  %12369 = vmatprep.mubr.msk.bf16.mxu1 %vm313_vm2, %v12737_v50  ;;  %v11386_v41 = vld [vmem:[%s16491_s0 + $0x298] sm:$0xff]  }
 0x19b   :  { %v3466_v28 = vadd.f32 %v3402_v58, %v2599_v53  ;;  %v10614_v35 = vunpack.c.l.bf16 %v11386_v41  ;;  %v10615_v57 = vunpack.c.h.bf16 %v11386_v41  ;;  %v11387_v53 = vld [vmem:[%s16491_s0 + $0x2a0] sm:$0xff]   ;;  %v12742_v58 = vld [vmem:[%s16489_s1 + $0x648] sm:$0xff]  }
 0x19c   :  { %v3464_v29 = vadd.f32 %v3400_v30, %v2597_v62  ;;  %v12059_v19 = vpop.f32.mrb[96].mxu0  ;;  %v12125_v56 = vpop.f32.mrb[96].mxu1  ;;  %v10618_v4 = vunpack.c.l.bf16 %v11387_v53 }
 0x19d   :  { %v3514_v34 = vpack.c.bf16 %v3466_v28, %v3465_v63  ;;  %v2538_v9 = vmul.f32 %v12059_v19, %v10606_v55  ;;  %v3405_v15 = vmul.f32 %v12125_v56, %v10734_v23  ;;  %v2248_v42 = vpop.f32.mrb[97].mxu0  ;;  %v3115_v54 = vpop.f32.mrb[97].mxu1  ;;  %v11388_v63 = vld [vmem:[%s16491_s0 + $0x2a8] sm:$0xff]   ;;  %v10739_v28 = vunpack.c.h.bf16 %v11417_v61  ;;  %v16527_v19 = vld [vmem:[#allocation5_spill] sm:$0xff] }
 0x19e   :  { %v3513_v32 = vpack.c.bf16 %v3464_v29, %v3463_v16  ;;  %v2536_v24 = vmul.f32 %v10602_v17, %v2248_v42  ;;  %v3403_v31 = vmul.f32 %v10730_v3, %v3115_v54  ;;  %v12060_v45 = vpop.f32.mrb[98].mxu0  ;;  %v12126_v25 = vpop.f32.mrb[98].mxu1  ;;  %v10743_v17 = vunpack.c.h.bf16 %v11418_v51  ;;  %v12745_v29 = vld [vmem:[%s16489_s1 + $0x650] sm:$0xff]   ;;  %v16528_v42 = vld [vmem:[#allocation6_spill] sm:$0xff] }
 0x19f   :  { %v2602_v2 = vadd.f32 %v2538_v9, %v13605_v21  ;;  %v2539_v37 = vmul.f32 %v12060_v45, %v10607_v39  ;;  %v2251_v8 = vpop.f32.mrb[99].mxu0  ;;  %v3118_v48 = vpop.f32.mrb[99].mxu1  ;;  %v3406_v13 = vmul.f32 %v12126_v25, %v10735_v22  ;;  %v10742_v21 = vunpack.c.l.bf16 %v11418_v51  ;;  %v11420_v39 = vld [vmem:[%s16491_s0 + $0x3a8] sm:$0xff]  }
 0x1a0   :  { %v2600_v38 = vadd.f32 %v2536_v24, %v16524_v40  ;;  %v2537_v14 = vmul.f32 %v10603_v1, %v2251_v8  ;;  %12187 = vmatprep.mubr.msk.bf16.mxu0 %vm3543_vm4, %v3513_v32  ;;  %v3404_v49 = vmul.f32 %v10731_v5, %v3118_v48  ;;  %v10622_v41 = vunpack.c.l.bf16 %v11388_v63  ;;  %v16529_v32 = vld [vmem:[#allocation7_spill] sm:$0xff]  ;;  %v16530_v5 = vld [vmem:[#allocation8_spill] sm:$0xff] }
 0x1a1   :  { %v3469_v33 = vadd.f32 %v3405_v15, %v2602_v2  ;;  %v2603_v44 = vadd.f32 %v2539_v37, %v16525_v46  ;;  %12188 = vmatmul.mubr.msk.bf16.gmra.mrb[156].mxu0 %vm3543_vm4, %v3514_v34  ;;  %12370 = vmatmul.mubr.msk.bf16.gmra.mrb[204].mxu1 %vm313_vm2, %v12738_v43  ;;  %v11419_v15 = vld [vmem:[%s16491_s0 + $0x3a0] sm:$0xff]   ;;  %v10750_v45 = vunpack.c.l.bf16 %v11420_v39  ;;  %v10623_v8 = vunpack.c.h.bf16 %v11388_v63 }
 0x1a2   :  { %v3467_v10 = vadd.f32 %v3403_v31, %v2600_v38  ;;  %v2601_v11 = vadd.f32 %v2537_v14, %v16526_v27  ;;  %12373 = vmatprep.mubr.msk.bf16.mxu1 %vm313_vm2, %v12741_v36  ;;  %v10746_v2 = vunpack.c.l.bf16 %v11419_v15  ;;  %v10619_v38 = vunpack.c.h.bf16 %v11387_v53 }
 0x1a3   :  { %v3470_v18 = vadd.f32 %v3406_v13, %v2603_v44  ;;  %v10751_v44 = vunpack.c.h.bf16 %v11420_v39  ;;  %v11390_v13 = vld [vmem:[%s16491_s0 + $0x2b8] sm:$0xff]   ;;  %v16534_v39 = vld [vmem:[#allocation12_spill] sm:$0xff] }
 0x1a4   :  { %v3468_v50 = vadd.f32 %v3404_v49, %v2601_v11  ;;  %v12063_v0 = vpop.f32.mrb[100].mxu0  ;;  %v12129_v52 = vpop.f32.mrb[100].mxu1  ;;  %v10630_v53 = vunpack.c.l.bf16 %v11390_v13 }
 0x1a5   :  { %v3516_v59 = vpack.c.bf16 %v3470_v18, %v3469_v33  ;;  %v2542_v20 = vmul.f32 %v12063_v0, %v10614_v35  ;;  %v3409_v26 = vmul.f32 %v12129_v52, %v10742_v21  ;;  %v2264_v60 = vpop.f32.mrb[101].mxu0  ;;  %v3131_v55 = vpop.f32.mrb[101].mxu1  ;;  %v11389_v21 = vld [vmem:[%s16491_s0 + $0x2b0] sm:$0xff]   ;;  %v12749_v0 = vld [vmem:[%s16489_s1 + $0x660] sm:$0xff]   ;;  %v16531_v52 = vld [vmem:[#allocation9_spill] sm:$0xff] }
 0x1a6   :  { %v3515_v23 = vpack.c.bf16 %v3468_v50, %v3467_v10  ;;  %v2540_v16 = vmul.f32 %v10610_v12, %v2264_v60  ;;  %v3407_v62 = vmul.f32 %v10738_v47, %v3131_v55  ;;  %v12064_v30 = vpop.f32.mrb[102].mxu0  ;;  %v12130_v3 = vpop.f32.mrb[102].mxu1  ;;  %v12746_v10 = vld [vmem:[%s16489_s1 + $0x658] sm:$0xff]   ;;  %v11421_v60 = vld [vmem:[%s16491_s0 + $0x3b0] sm:$0xff]   ;;  %v16532_v55 = vld [vmem:[#allocation10_spill] sm:$0xff] }
 0x1a7   :  { %v2606_v56 = vadd.f32 %v2542_v20, %v16527_v19  ;;  %v2543_v1 = vmul.f32 %v12064_v30, %v10615_v57  ;;  %v2267_v34 = vpop.f32.mrb[103].mxu0  ;;  %v3134_v9 = vpop.f32.mrb[103].mxu1  ;;  %v3410_v31 = vmul.f32 %v12130_v3, %v10743_v17  ;;  %v10747_v57 = vunpack.c.h.bf16 %v11419_v15  ;;  %v11422_v50 = vld [vmem:[%s16491_s0 + $0x3b8] sm:$0xff]  }
 0x1a8   :  { %v2604_v54 = vadd.f32 %v2540_v16, %v16528_v42  ;;  %v2541_v22 = vmul.f32 %v10611_v7, %v2267_v34  ;;  %12191 = vmatprep.mubr.msk.bf16.mxu0 %vm3543_vm4, %v3515_v23  ;;  %v3408_v36 = vmul.f32 %v10739_v28, %v3134_v9  ;;  %v16533_v16 = vld [vmem:[#allocation11_spill] sm:$0xff]  ;;  %v10758_v3 = vunpack.c.l.bf16 %v11422_v50 }
 0x1a9   :  { %v3473_v43 = vadd.f32 %v3409_v26, %v2606_v56  ;;  %v2607_v24 = vadd.f32 %v2543_v1, %v16529_v32  ;;  %12192 = vmatmul.mubr.msk.bf16.gmra.mrb[160].mxu0 %vm3543_vm4, %v3516_v59  ;;  %12374 = vmatmul.mubr.msk.bf16.gmra.mrb[208].mxu1 %vm313_vm2, %v12742_v58  ;;  %v10626_v58 = vunpack.c.l.bf16 %v11389_v21  ;;  %v10754_v56 = vunpack.c.l.bf16 %v11421_v60 }
 0x1aa   :  { %v3471_v25 = vadd.f32 %v3407_v62, %v2604_v54  ;;  %v2605_v51 = vadd.f32 %v2541_v22, %v16530_v5  ;;  %12377 = vmatprep.mubr.msk.bf16.mxu1 %vm313_vm2, %v12745_v29  ;;  %v10631_v34 = vunpack.c.h.bf16 %v11390_v13  ;;  %v10627_v54 = vunpack.c.h.bf16 %v11389_v21 }
 0x1ab   :  { %v3474_v37 = vadd.f32 %v3410_v31, %v2607_v24  ;;  %v10759_v24 = vunpack.c.h.bf16 %v11422_v50  ;;  %v14104_v31 = vld [vmem:[%s16491_s0 + $0x2c8] sm:$0xff]   ;;  %v16538_v50 = vld [vmem:[#allocation16_spill] sm:$0xff] }
 0x1ac   :  { %v3472_v48 = vadd.f32 %v3408_v36, %v2605_v51  ;;  %v12067_v61 = vpop.f32.mrb[104].mxu0  ;;  %v12133_v40 = vpop.f32.mrb[104].mxu1  ;;  %v10638_v21 = vunpack.c.l.bf16 %v14104_v31 }
 0x1ad   :  { %v3518_v14 = vpack.c.bf16 %v3474_v37, %v3473_v43  ;;  %v2546_v35 = vmul.f32 %v12067_v61, %v10622_v41  ;;  %v3413_v12 = vmul.f32 %v12133_v40, %v10750_v45  ;;  %v2280_v33 = vpop.f32.mrb[105].mxu0  ;;  %v3147_v46 = vpop.f32.mrb[105].mxu1  ;;  %v14109_v45 = vld [vmem:[%s16491_s0 + $0x2c0] sm:$0xff]   ;;  %v12753_v61 = vld [vmem:[%s16489_s1 + $0x670] sm:$0xff]   ;;  %v16535_v40 = vld [vmem:[#allocation13_spill] sm:$0xff] }
 0x1ae   :  { %v3517_v27 = vpack.c.bf16 %v3472_v48, %v3471_v25  ;;  %v2544_v11 = vmul.f32 %v10618_v4, %v2280_v33  ;;  %v3411_v49 = vmul.f32 %v10746_v2, %v3147_v46  ;;  %v12068_v47 = vpop.f32.mrb[106].mxu0  ;;  %v12134_v18 = vpop.f32.mrb[106].mxu1  ;;  %v12750_v25 = vld [vmem:[%s16489_s1 + $0x668] sm:$0xff]   ;;  %v14126_v33 = vld [vmem:[%s16491_s0 + $0x3c0] sm:$0xff]  }
 0x1af   :  { %v2610_v7 = vadd.f32 %v2546_v35, %v16531_v52  ;;  %v2547_v59 = vmul.f32 %v12068_v47, %v10623_v8  ;;  %v2283_v20 = vpop.f32.mrb[107].mxu0  ;;  %v3150_v26 = vpop.f32.mrb[107].mxu1  ;;  %v3414_v30 = vmul.f32 %v12134_v18, %v10751_v44  ;;  %v10755_v8 = vunpack.c.h.bf16 %v11421_v60  ;;  %v14117_v48 = vld [vmem:[%s16491_s0 + $0x3c8] sm:$0xff]   ;;  %v16536_v46 = vld [vmem:[#allocation14_spill] sm:$0xff] }
 0x1b0   :  { %v2608_v17 = vadd.f32 %v2544_v11, %v16532_v55  ;;  %v2545_v63 = vmul.f32 %v10619_v38, %v2283_v20  ;;  %12195 = vmatprep.mubr.msk.bf16.mxu0 %vm3543_vm4, %v3517_v27  ;;  %v3412_v19 = vmul.f32 %v10747_v57, %v3150_v26  ;;  %v16537_v11 = vld [vmem:[#allocation15_spill] sm:$0xff]  ;;  %v10766_v18 = vunpack.c.l.bf16 %v14117_v48 }
 0x1b1   :  { %v3477_v23 = vadd.f32 %v3413_v12, %v2610_v7  ;;  %v2611_v62 = vadd.f32 %v2547_v59, %v16533_v16  ;;  %12196 = vmatmul.mubr.msk.bf16.gmra.mrb[164].mxu0 %vm3543_vm4, %v3518_v14  ;;  %12378 = vmatmul.mubr.msk.bf16.gmra.mrb[212].mxu1 %vm313_vm2, %v12746_v10  ;;  %v10634_v10 = vunpack.c.l.bf16 %v14109_v45  ;;  %v10762_v7 = vunpack.c.l.bf16 %v14126_v33 }
 0x1b2   :  { %v3475_v28 = vadd.f32 %v3411_v49, %v2608_v17  ;;  %v2609_v29 = vadd.f32 %v2545_v63, %v16534_v39  ;;  %12381 = vmatprep.mubr.msk.bf16.mxu1 %vm313_vm2, %v12749_v0  ;;  %v10639_v20 = vunpack.c.h.bf16 %v14104_v31  ;;  %v10767_v17 = vunpack.c.h.bf16 %v14117_v48 }
 0x1b3   :  { %v3478_v1 = vadd.f32 %v3414_v30, %v2611_v62  ;;  %v10635_v63 = vunpack.c.h.bf16 %v14109_v45  ;;  %v14159_v30 = vld [vmem:[%s16491_s0 + $0x2d8] sm:$0xff]  }
 0x1b4   :  { %v3476_v9 = vadd.f32 %v3412_v19, %v2609_v29  ;;  %v12071_v15 = vpop.f32.mrb[108].mxu0  ;;  %v12137_v42 = vpop.f32.mrb[108].mxu1  ;;  %v10646_v31 = vunpack.c.l.bf16 %v14159_v30 }
 0x1b5   :  { %v3520_v22 = vpack.c.bf16 %v3478_v1, %v3477_v23  ;;  %v2550_v41 = vmul.f32 %v12071_v15, %v10630_v53  ;;  %v3417_v4 = vmul.f32 %v12137_v42, %v10758_v3  ;;  %v2296_v43 = vpop.f32.mrb[109].mxu0  ;;  %v3163_v32 = vpop.f32.mrb[109].mxu1  ;;  %v14164_v3 = vld [vmem:[%s16491_s0 + $0x2d0] sm:$0xff]   ;;  %v14190_v15 = vld [vmem:[%s16489_s1 + $0x680] sm:$0xff]   ;;  %v12822_v42 = vmov 0  }
 0x1b6   :  { %v3519_v5 = vpack.c.bf16 %v3476_v9, %v3475_v28  ;;  %v2548_v51 = vmul.f32 %v10626_v58, %v2296_v43  ;;  %v3415_v36 = vmul.f32 %v10754_v56, %v3163_v32  ;;  %v12072_v2 = vpop.f32.mrb[110].mxu0  ;;  %v12138_v37 = vpop.f32.mrb[110].mxu1  ;;  %v14169_v28 = vld [vmem:[%s16489_s1 + $0x678] sm:$0xff]   ;;  %22 = vst [vmem:[%s16492_s4 + $0x8] sm:$0xf] %v12822_v42  ;;  %20 = vst [vmem:[%s16492_s4] sm:$0xf] %v12822_v42 }
 0x1b7   :  { %v2614_v38 = vadd.f32 %v2550_v41, %v16535_v40  ;;  %v2551_v14 = vmul.f32 %v12072_v2, %v10631_v34  ;;  %v2299_v35 = vpop.f32.mrb[111].mxu0  ;;  %v3166_v12 = vpop.f32.mrb[111].mxu1  ;;  %v3418_v47 = vmul.f32 %v12138_v37, %v10759_v24  ;;  %v10763_v34 = vunpack.c.h.bf16 %v14126_v33  ;;  %v14185_v9 = vld [vmem:[%s16491_s0 + $0x3d8] sm:$0xff]   ;;  %21 = vst [vmem:[%s16492_s4 + $0x4] sm:$0xf] %v12822_v42  ;;  %v11425_v32 = vld [vmem:[%s16491_s0 + $0x3d0] sm:$0xff]  }
 0x1b8   :  { %v2612_v44 = vadd.f32 %v2548_v51, %v16536_v46  ;;  %v2549_v13 = vmul.f32 %v10627_v54, %v2299_v35  ;;  %12199 = vmatprep.mubr.msk.bf16.mxu0 %vm3543_vm4, %v3519_v5  ;;  %v3416_v52 = vmul.f32 %v10755_v8, %v3166_v12  ;;  %23 = vst [vmem:[%s16492_s4 + $0xc] sm:$0xf] %v12822_v42  ;;  %24 = vst [vmem:[%s16492_s4 + $0x10] sm:$0xf] %v12822_v42  ;;  %v16539_v54 = vld [vmem:[#allocation17_spill] sm:$0xff]  ;;  %v16540_v24 = vld [vmem:[#allocation18_spill] sm:$0xff] }
 0x1b9   :  { %v14132_v27 = vadd.f32 %v3417_v4, %v2614_v38  ;;  %v2615_v49 = vadd.f32 %v2551_v14, %v16537_v11  ;;  %12200 = vmatmul.mubr.msk.bf16.gmra.mrb[168].mxu0 %vm3543_vm4, %v3520_v22  ;;  %12382 = vmatmul.mubr.msk.bf16.gmra.mrb[216].mxu1 %vm313_vm2, %v12750_v25  ;;  %25 = vst [vmem:[%s16492_s4 + $0x14] sm:$0xf] %v12822_v42  ;;  %26 = vst [vmem:[%s16492_s4 + $0x18] sm:$0xf] %v12822_v42  ;;  %v10642_v51 = vunpack.c.l.bf16 %v14164_v3  ;;  %v16541_v2 = vld [vmem:[#allocation19_spill] sm:$0xff]  ;;  %v16542_v40 = vld [vmem:[#allocation20_spill] sm:$0xff] }
 0x1ba   :  { %v14138_v57 = vadd.f32 %v3415_v36, %v2612_v44  ;;  %v2613_v0 = vadd.f32 %v2549_v13, %v16538_v50  ;;  %12385 = vmatprep.mubr.msk.bf16.mxu1 %vm313_vm2, %v12753_v61  ;;  %27 = vst [vmem:[%s16492_s4 + $0x1c] sm:$0xf] %v12822_v42  ;;  %28 = vst [vmem:[%s16492_s4 + $0x20] sm:$0xf] %v12822_v42  ;;  %v10774_v45 = vunpack.c.l.bf16 %v14185_v9  ;;  %v10770_v48 = vunpack.c.l.bf16 %v11425_v32  ;;  %v12758_v50 = vld [vmem:[%s16489_s1 + $0x688] sm:$0xff]  }
 0x1bb   :  { %v14143_v59 = vadd.f32 %v3418_v47, %v2615_v49  ;;  %29 = vst [vmem:[%s16492_s4 + $0x24] sm:$0xf] %v12822_v42  ;;  %30 = vst [vmem:[%s16492_s4 + $0x28] sm:$0xf] %v12822_v42  ;;  %v10647_v12 = vunpack.c.h.bf16 %v14159_v30  ;;  %v10775_v33 = vunpack.c.h.bf16 %v14185_v9 }
 0x1bc   :  { %v14146_v26 = vadd.f32 %v3416_v52, %v2613_v0  ;;  %v12075_v60 = vpop.f32.mrb[112].mxu0  ;;  %v12141_v55 = vpop.f32.mrb[112].mxu1  ;;  %31 = vst [vmem:[%s16492_s4 + $0x2c] sm:$0xf] %v12822_v42  ;;  %32 = vst [vmem:[%s16492_s4 + $0x30] sm:$0xf] %v12822_v42 }
 0x1bd   :  { %v3522_v53 = vpack.c.bf16 %v14143_v59, %v14132_v27  ;;  %v14152_v58 = vmul.f32 %v12075_v60, %v10638_v21  ;;  %v14154_v23 = vmul.f32 %v12141_v55, %v10766_v18  ;;  %v2312_v16 = vpop.f32.mrb[113].mxu0  ;;  %v3179_v62 = vpop.f32.mrb[113].mxu1  ;;  %33 = vst [vmem:[%s16492_s4 + $0x34] sm:$0xf] %v12822_v42  ;;  %34 = vst [vmem:[%s16492_s4 + $0x38] sm:$0xf] %v12822_v42  ;;  %v10643_v21 = vunpack.c.h.bf16 %v14164_v3 }
 0x1be   :  { %v3521_v39 = vpack.c.bf16 %v14146_v26, %v14138_v57  ;;  %v14173_v29 = vmul.f32 %v10634_v10, %v2312_v16  ;;  %v14175_v19 = vmul.f32 %v10762_v7, %v3179_v62  ;;  %v14177_v56 = vpop.f32.mrb[114].mxu0  ;;  %v14179_v1 = vpop.f32.mrb[114].mxu1  ;;  %35 = vst [vmem:[%s16492_s4 + $0x3c] sm:$0xf] %v12822_v42  ;;  %36 = vst [vmem:[%s16492_s4 + $0x40] sm:$0xf] %v12822_v42  ;;  %v10771_v26 = vunpack.c.h.bf16 %v11425_v32 }
 0x1bf   :  { %37 = vst [vmem:[%s16492_s4 + $0x44] sm:$0xf] %v12822_v42  ;;  %38 = vst [vmem:[%s16492_s4 + $0x48] sm:$0xf] %v12822_v42  ;;  %v2618_v22 = vadd.f32 %v14152_v58, %v16539_v54  ;;  %v2555_v41 = vmul.f32 %v14177_v56, %v10639_v20  ;;  %v2315_v4 = vpop.f32.mrb[115].mxu0  ;;  %v3182_v43 = vpop.f32.mrb[115].mxu1  ;;  %v3422_v8 = vmul.f32 %v14179_v1, %v10767_v17 }
 0x1c0   :  { %39 = vst [vmem:[%s16492_s4 + $0x4c] sm:$0xf] %v12822_v42  ;;  %40 = vst [vmem:[%s16492_s4 + $0x50] sm:$0xf] %v12822_v42  ;;  %v2616_v25 = vadd.f32 %v14173_v29, %v16540_v24  ;;  %v2553_v5 = vmul.f32 %v10635_v63, %v2315_v4  ;;  %12203 = vmatprep.mubr.msk.bf16.mxu0 %vm3543_vm4, %v3521_v39  ;;  %v3420_v14 = vmul.f32 %v10763_v34, %v3182_v43  ;;  %v11396_v18 = vld [vmem:[%s16491_s0 + $0x2e8] sm:$0xff]   ;;  %v11395_v57 = vld [vmem:[%s16491_s0 + $0x2e0] sm:$0xff]  }
 0x1c1   :  { %41 = vst [vmem:[%s16492_s4 + $0x54] sm:$0xf] %v12822_v42  ;;  %42 = vst [vmem:[%s16492_s4 + $0x58] sm:$0xf] %v12822_v42  ;;  %v3485_v36 = vadd.f32 %v14154_v23, %v2618_v22  ;;  %v2619_v37 = vadd.f32 %v2555_v41, %v16541_v2  ;;  %12204 = vmatmul.mubr.msk.bf16.gmra.mrb[172].mxu0 %vm3543_vm4, %v3522_v53  ;;  %12386 = vmatmul.mubr.msk.bf16.gmra.mrb[220].mxu1 %vm313_vm2, %v14169_v28  ;;  %v11428_v60 = vld [vmem:[%s16491_s0 + $0x3e8] sm:$0xff]   ;;  %v12761_v55 = vld [vmem:[%s16489_s1 + $0x690] sm:$0xff]   ;;  %v10654_v28 = vunpack.c.l.bf16 %v11396_v18 }
 0x1c2   :  { %43 = vst [vmem:[%s16492_s4 + $0x5c] sm:$0xf] %v12822_v42  ;;  %44 = vst [vmem:[%s16492_s4 + $0x60] sm:$0xf] %v12822_v42  ;;  %v3483_v61 = vadd.f32 %v14175_v19, %v2616_v25  ;;  %v2617_v38 = vadd.f32 %v2553_v5, %v16542_v40  ;;  %12389 = vmatprep.mubr.msk.bf16.mxu1 %vm313_vm2, %v14190_v15  ;;  %v16543_v17 = vld [vmem:[#allocation21_spill] sm:$0xff]  ;;  %v11427_v16 = vld [vmem:[%s16491_s0 + $0x3e0] sm:$0xff]   ;;  %v10650_v39 = vunpack.c.l.bf16 %v11395_v57  ;;  %v10782_v34 = vunpack.c.l.bf16 %v11428_v60 }
 0x1c3   :  { %45 = vst [vmem:[%s16492_s4 + $0x64] sm:$0xf] %v12822_v42  ;;  %46 = vst [vmem:[%s16492_s4 + $0x68] sm:$0xf] %v12822_v42  ;;  %v3486_v35 = vadd.f32 %v3422_v8, %v2619_v37  ;;  %v16544_v62 = vld [vmem:[#allocation22_spill] sm:$0xff]  ;;  %v16545_v19 = vld [vmem:[#allocation23_spill] sm:$0xff]  ;;  %v10778_v22 = vunpack.c.l.bf16 %v11427_v16  ;;  %v10655_v4 = vunpack.c.h.bf16 %v11396_v18  ;;  %v10651_v25 = vunpack.c.h.bf16 %v11395_v57 }
 0x1c4   :  { %47 = vst [vmem:[%s16492_s4 + $0x6c] sm:$0xf] %v12822_v42  ;;  %48 = vst [vmem:[%s16492_s4 + $0x70] sm:$0xf] %v12822_v42  ;;  %v3484_v46 = vadd.f32 %v3420_v14, %v2617_v38  ;;  %v12079_v44 = vpop.f32.mrb[116].mxu0  ;;  %v12145_v13 = vpop.f32.mrb[116].mxu1  ;;  %v10783_v37 = vunpack.c.h.bf16 %v11428_v60 }
 0x1c5   :  { %49 = vst [vmem:[%s16492_s4 + $0x74] sm:$0xf] %v12822_v42  ;;  %50 = vst [vmem:[%s16492_s4 + $0x78] sm:$0xf] %v12822_v42  ;;  %v3524_v10 = vpack.c.bf16 %v3486_v35, %v3485_v36  ;;  %v2558_v27 = vmul.f32 %v12079_v44, %v10646_v31  ;;  %v3425_v11 = vmul.f32 %v12145_v13, %v10774_v45  ;;  %v2328_v49 = vpop.f32.mrb[117].mxu0  ;;  %v3195_v47 = vpop.f32.mrb[117].mxu1 }
 0x1c6   :  { %51 = vst [vmem:[%s16492_s4 + $0x7c] sm:$0xf] %v12822_v42  ;;  %52 = vst [vmem:[%s16492_s4 + $0x80] sm:$0xf] %v12822_v42  ;;  %v3523_v0 = vpack.c.bf16 %v3484_v46, %v3483_v61  ;;  %v2556_v52 = vmul.f32 %v10642_v51, %v2328_v49  ;;  %v3423_v7 = vmul.f32 %v10770_v48, %v3195_v47  ;;  %v12080_v59 = vpop.f32.mrb[118].mxu0  ;;  %v12146_v20 = vpop.f32.mrb[118].mxu1 }
 0x1c7   :  { %53 = vst [vmem:[%s16492_s4 + $0x84] sm:$0xf] %v12822_v42  ;;  %54 = vst [vmem:[%s16492_s4 + $0x88] sm:$0xf] %v12822_v42  ;;  %v2622_v63 = vadd.f32 %v2558_v27, %v16543_v17  ;;  %v2559_v53 = vmul.f32 %v12080_v59, %v10647_v12  ;;  %v2331_v58 = vpop.f32.mrb[119].mxu0  ;;  %v3198_v23 = vpop.f32.mrb[119].mxu1  ;;  %v3426_v1 = vmul.f32 %v12146_v20, %v10775_v33  ;;  %v10779_v12 = vunpack.c.h.bf16 %v11427_v16 }
 0x1c8   :  { %55 = vst [vmem:[%s16492_s4 + $0x8c] sm:$0xf] %v12822_v42  ;;  %56 = vst [vmem:[%s16492_s4 + $0x90] sm:$0xf] %v12822_v42  ;;  %v2620_v30 = vadd.f32 %v2556_v52, %v16544_v62  ;;  %v2557_v3 = vmul.f32 %v10643_v21, %v2331_v58  ;;  %12207 = vmatprep.mubr.msk.bf16.mxu0 %vm3543_vm4, %v3523_v0  ;;  %v16546_v15 = vld [vmem:[#allocation24_spill] sm:$0xff]  ;;  %v3424_v54 = vmul.f32 %v10771_v26, %v3198_v23  ;;  %v11398_v8 = vld [vmem:[%s16491_s0 + $0x2f8] sm:$0xff]  }
 0x1c9   :  { %57 = vst [vmem:[%s16492_s4 + $0x94] sm:$0xf] %v12822_v42  ;;  %58 = vst [vmem:[%s16492_s4 + $0x98] sm:$0xf] %v12822_v42  ;;  %v3489_v29 = vadd.f32 %v3425_v11, %v2622_v63  ;;  %v2623_v56 = vadd.f32 %v2559_v53, %v16545_v19  ;;  %12208 = vmatmul.mubr.msk.bf16.gmra.mrb[176].mxu0 %vm3543_vm4, %v3524_v10  ;;  %12390 = vmatmul.mubr.msk.bf16.gmra.mrb[224].mxu1 %vm313_vm2, %v12758_v50  ;;  %v11397_v45 = vld [vmem:[%s16491_s0 + $0x2f0] sm:$0xff]   ;;  %v12762_v61 = vld [vmem:[%s16489_s1 + $0x698] sm:$0xff]   ;;  %v10662_v57 = vunpack.c.l.bf16 %v11398_v8 }
 0x1ca   :  { %59 = vst [vmem:[%s16492_s4 + $0x9c] sm:$0xf] %v12822_v42  ;;  %60 = vst [vmem:[%s16492_s4 + $0xa0] sm:$0xf] %v12822_v42  ;;  %v3487_v9 = vadd.f32 %v3423_v7, %v2620_v30  ;;  %12393 = vmatprep.mubr.msk.bf16.mxu1 %vm313_vm2, %v12761_v55  ;;  %v11430_v46 = vld [vmem:[%s16491_s0 + $0x3f8] sm:$0xff]   ;;  %v12765_v44 = vld [vmem:[%s16489_s1 + $0x6a0] sm:$0xff]   ;;  %v10658_v50 = vunpack.c.l.bf16 %v11397_v45  ;;  %v10663_v58 = vunpack.c.h.bf16 %v11398_v8  ;;  %v10659_v30 = vunpack.c.h.bf16 %v11397_v45 }
 0x1cb   :  { %61 = vst [vmem:[%s16492_s4 + $0xa4] sm:$0xf] %v12822_v42  ;;  %62 = vst [vmem:[%s16492_s4 + $0xa8] sm:$0xf] %v12822_v42  ;;  %v3490_v41 = vadd.f32 %v3426_v1, %v2623_v56  ;;  %v16547_v13 = vld [vmem:[#allocation25_spill] sm:$0xff]  ;;  %v11429_v49 = vld [vmem:[%s16491_s0 + $0x3f0] sm:$0xff]   ;;  %v10790_v20 = vunpack.c.l.bf16 %v11430_v46  ;;  %v10791_v56 = vunpack.c.h.bf16 %v11430_v46 }
 0x1cc   :  { %63 = vst [vmem:[%s16492_s4 + $0xac] sm:$0xf] %v12822_v42  ;;  %64 = vst [vmem:[%s16492_s4 + $0xb0] sm:$0xf] %v12822_v42  ;;  %v12083_v32 = vpop.f32.mrb[120].mxu0  ;;  %v12149_v24 = vpop.f32.mrb[120].mxu1  ;;  %v10786_v63 = vunpack.c.l.bf16 %v11429_v49 }
 0x1cd   :  { %65 = vst [vmem:[%s16492_s4 + $0xb4] sm:$0xf] %v12822_v42  ;;  %66 = vst [vmem:[%s16492_s4 + $0xb8] sm:$0xf] %v12822_v42  ;;  %v3526_v5 = vpack.c.bf16 %v3490_v41, %v3489_v29  ;;  %v2562_v31 = vmul.f32 %v12083_v32, %v10654_v28  ;;  %v3429_v51 = vmul.f32 %v12149_v24, %v10782_v34  ;;  %v2344_v36 = vpop.f32.mrb[121].mxu0  ;;  %v3211_v2 = vpop.f32.mrb[121].mxu1 }
 0x1ce   :  { %67 = vst [vmem:[%s16492_s4 + $0xbc] sm:$0xf] %v12822_v42  ;;  %68 = vst [vmem:[%s16492_s4 + $0xc0] sm:$0xf] %v12822_v42  ;;  %v2560_v38 = vmul.f32 %v10650_v39, %v2344_v36  ;;  %v3427_v14 = vmul.f32 %v10778_v22, %v3211_v2  ;;  %v12084_v48 = vpop.f32.mrb[122].mxu0  ;;  %v12150_v35 = vpop.f32.mrb[122].mxu1  ;;  %v10787_v22 = vunpack.c.h.bf16 %v11429_v49 }
 0x1cf   :  { %69 = vst [vmem:[%s16492_s4 + $0xc4] sm:$0xf] %v12822_v42  ;;  %70 = vst [vmem:[%s16492_s4 + $0xc8] sm:$0xf] %v12822_v42  ;;  %v2626_v21 = vadd.f32 %v2562_v31, %v16547_v13  ;;  %v2563_v10 = vmul.f32 %v12084_v48, %v10655_v4  ;;  %v2347_v27 = vpop.f32.mrb[123].mxu0  ;;  %v3214_v11 = vpop.f32.mrb[123].mxu1  ;;  %v3430_v59 = vmul.f32 %v12150_v35, %v10783_v37 }
 0x1d0   :  { %71 = vst [vmem:[%s16492_s4 + $0xcc] sm:$0xf] %v12822_v42  ;;  %72 = vst [vmem:[%s16492_s4 + $0xd0] sm:$0xf] %v12822_v42  ;;  %v16548_v47 = vld [vmem:[#allocation26_spill] sm:$0xff]  ;;  %v2561_v18 = vmul.f32 %v10651_v25, %v2347_v27  ;;  %v16549_v52 = vld [vmem:[#allocation27_spill] sm:$0xff]  ;;  %v3428_v17 = vmul.f32 %v10779_v12, %v3214_v11 }
 0x1d1   :  { %73 = vst [vmem:[%s16492_s4 + $0xd4] sm:$0xf] %v12822_v42  ;;  %74 = vst [vmem:[%s16492_s4 + $0xd8] sm:$0xf] %v12822_v42  ;;  %v2624_v33 = vadd.f32 %v2560_v38, %v16548_v47  ;;  %v3493_v0 = vadd.f32 %v3429_v51, %v2626_v21  ;;  %v2627_v7 = vadd.f32 %v2563_v10, %v16549_v52  ;;  %12394 = vmatmul.mubr.msk.bf16.gmra.mrb[228].mxu1 %vm313_vm2, %v12762_v61  ;;  %v16550_v60 = vld [vmem:[#allocation28_spill] sm:$0xff]  ;;  %v12766_v1 = vld [vmem:[%s16489_s1 + $0x6a8] sm:$0xff]  }
 0x1d2   :  { %75 = vst [vmem:[%s16492_s4 + $0xdc] sm:$0xf] %v12822_v42  ;;  %76 = vst [vmem:[%s16492_s4 + $0xe0] sm:$0xf] %v12822_v42  ;;  %v2625_v55 = vadd.f32 %v2561_v18, %v16550_v60  ;;  %12397 = vmatprep.mubr.msk.bf16.mxu1 %vm313_vm2, %v12765_v44  ;;  %v12769_v41 = vld [vmem:[%s16489_s1 + $0x6b0] sm:$0xff]   ;;  %v16551_v4 = vld [vmem:[#allocation29_spill] sm:$0xff] }
 0x1d3   :  { %77 = vst [vmem:[%s16492_s4 + $0xe4] sm:$0xf] %v12822_v42  ;;  %78 = vst [vmem:[%s16492_s4 + $0xe8] sm:$0xf] %v12822_v42  ;;  %v3491_v26 = vadd.f32 %v3427_v14, %v2624_v33  ;;  %v3494_v53 = vadd.f32 %v3430_v59, %v2627_v7  ;;  %v16553_v2 = vld [vmem:[#allocation31_spill] sm:$0xff]  ;;  %v16554_v61 = vld [vmem:[#allocation32_spill] sm:$0xff] }
 0x1d4   :  { %79 = vst [vmem:[%s16492_s4 + $0xec] sm:$0xf] %v12822_v42  ;;  %80 = vst [vmem:[%s16492_s4 + $0xf0] sm:$0xf] %v12822_v42  ;;  %v3492_v23 = vadd.f32 %v3428_v17, %v2625_v55  ;;  %v12087_v16 = vpop.f32.mrb[124].mxu0  ;;  %v12153_v62 = vpop.f32.mrb[124].mxu1 }
 0x1d5   :  { %81 = vst [vmem:[%s16492_s4 + $0xf4] sm:$0xf] %v12822_v42  ;;  %82 = vst [vmem:[%s16492_s4 + $0xf8] sm:$0xf] %v12822_v42  ;;  %v2566_v28 = vmul.f32 %v12087_v16, %v10662_v57  ;;  %v3433_v39 = vmul.f32 %v12153_v62, %v10790_v20  ;;  %v2360_v29 = vpop.f32.mrb[125].mxu0  ;;  %v3227_v19 = vpop.f32.mrb[125].mxu1 }
 0x1d6   :  { %83 = vst [vmem:[%s16492_s4 + $0xfc] sm:$0xf] %v12822_v42  ;;  %v2621_v42 = vadd.f32 %v2557_v3, %v16546_v15  ;;  %v3528_v3 = vpack.c.bf16 %v3494_v53, %v3493_v0  ;;  %v3527_v34 = vpack.c.bf16 %v3492_v23, %v3491_v26  ;;  %v3431_v15 = vmul.f32 %v10786_v63, %v3227_v19  ;;  %v12770_v12 = vld [vmem:[%s16489_s1 + $0x6b8] sm:$0xff]   ;;  %v12723_v44 = vld [vmem:[%s16489_s1 + $0x500] sm:$0xff]   ;;  %v12724_v21 = vld [vmem:[%s16489_s1 + $0x508] sm:$0xff]  }
 0x1d7   :  { %v12773_v13 = vld [vmem:[%s16489_s1 + $0x6c0] sm:$0xff]   ;;  %v12774_v10 = vld [vmem:[%s16489_s1 + $0x6c8] sm:$0xff]   ;;  %v12727_v27 = vld [vmem:[%s16489_s1 + $0x510] sm:$0xff]  }
 0x1d8   :  { %v3488_v43 = vadd.f32 %v3424_v54, %v2621_v42  ;;  %v12088_v42 = vpop.f32.mrb[126].mxu0  ;;  %v12154_v54 = vpop.f32.mrb[126].mxu1  ;;  %v12777_v11 = vld [vmem:[%s16489_s1 + $0x6d0] sm:$0xff]   ;;  %v12728_v49 = vld [vmem:[%s16489_s1 + $0x518] sm:$0xff]   ;;  %v12731_v33 = vld [vmem:[%s16489_s1 + $0x520] sm:$0xff]  }
 0x1d9   :  { %v2567_v32 = vmul.f32 %v12088_v42, %v10663_v58  ;;  %v2363_v24 = vpop.f32.mrb[127].mxu0  ;;  %v3230_v25 = vpop.f32.mrb[127].mxu1  ;;  %v3434_v8 = vmul.f32 %v12154_v54, %v10791_v56  ;;  %12398 = vmatmul.mubr.msk.bf16.gmra.mrb[232].mxu1 %vm313_vm2, %v12766_v1  ;;  %v12778_v47 = vld [vmem:[%s16489_s1 + $0x6d8] sm:$0xff]   ;;  %v12732_v18 = vld [vmem:[%s16489_s1 + $0x528] sm:$0xff]   ;;  %v12785_v0 = vld [vmem:[%s16489_s1 + $0x6f0] sm:$0xff]  }
 0x1da   :  { %v3525_v40 = vpack.c.bf16 %v3488_v43, %v3487_v9  ;;  %v2564_v9 = vmul.f32 %v10658_v50, %v2360_v29  ;;  %v2630_v43 = vadd.f32 %v2566_v28, %v16551_v4  ;;  %v2565_v51 = vmul.f32 %v10659_v30, %v2363_v24  ;;  %12401 = vmatprep.mubr.msk.bf16.mxu1 %vm313_vm2, %v12769_v41  ;;  %v12782_v57 = vld [vmem:[%s16489_s1 + $0x6e8] sm:$0xff]   ;;  %v12735_v50 = vld [vmem:[%s16489_s1 + $0x530] sm:$0xff]   ;;  %v12736_v52 = vld [vmem:[%s16489_s1 + $0x538] sm:$0xff]  }
 0x1db   :  { %v2631_v37 = vadd.f32 %v2567_v32, %v16553_v2  ;;  %v3432_v38 = vmul.f32 %v10787_v22, %v3230_v25  ;;  %v12786_v7 = vld [vmem:[%s16489_s1 + $0x6f8] sm:$0xff]   ;;  %v12739_v59 = vld [vmem:[%s16489_s1 + $0x540] sm:$0xff]   ;;  %v12740_v58 = vld [vmem:[%s16489_s1 + $0x548] sm:$0xff]  }
 0x1dc   :  { %12211 = vmatprep.mubr.msk.bf16.mxu0 %vm3543_vm4, %v3525_v40  ;;  %v3497_v36 = vadd.f32 %v3433_v39, %v2630_v43  ;;  %v2629_v40 = vadd.f32 %v2565_v51, %v16554_v61  ;;  %v14625_v20 = vpop.f32.mrb[128].mxu1  ;;  %v12743_v16 = vld [vmem:[%s16489_s1 + $0x550] sm:$0xff]   ;;  %v12744_v56 = vld [vmem:[%s16489_s1 + $0x558] sm:$0xff]   ;;  %v12748_v43 = vld [vmem:[%s16489_s1 + $0x568] sm:$0xff]  }
 0x1dd   :  { %12212 = vmatmul.mubr.msk.bf16.gmra.mrb[180].mxu0 %vm3543_vm4, %v3526_v5  ;;  %v16552_v5 = vld [vmem:[#allocation30_spill] sm:$0xff]  ;;  %v3498_v14 = vadd.f32 %v3434_v8, %v2631_v37  ;;  %v14627_v26 = vpop.f32.mrb[129].mxu1  ;;  %v12751_v24 = vld [vmem:[%s16489_s1 + $0x570] sm:$0xff]   ;;  %v12752_v8 = vld [vmem:[%s16489_s1 + $0x578] sm:$0xff]  }
 0x1de   :  { %v2628_v31 = vadd.f32 %v2564_v9, %v16552_v5  ;;  %12215 = vmatprep.mubr.msk.bf16.mxu0 %vm3543_vm4, %v3527_v34  ;;  %v3496_v48 = vadd.f32 %v3432_v38, %v2629_v40  ;;  %v14629_v60 = vpop.f32.mrb[130].mxu1  ;;  %v12747_v34 = vld [vmem:[%s16489_s1 + $0x560] sm:$0xff]  }
 0x1df   :  { %v3530_v35 = vpack.c.bf16 %v3498_v14, %v3497_v36  ;;  %v14633_v55 = vpop.f32.mrb[131].mxu1  ;;  %v12755_v61 = vld [vmem:[%s16489_s1 + $0x580] sm:$0xff]  }
 0x1e0   :  { %v3495_v45 = vadd.f32 %v3431_v15, %v2628_v31 }
 0x1e1   :  { %12402 = vmatmul.mubr.msk.bf16.gmra.mrb[236].mxu1 %vm313_vm2, %v12770_v12  ;;  %v12756_v12 = vld [vmem:[%s16489_s1 + $0x588] sm:$0xff]  }
 0x1e2   :  { %v3529_v46 = vpack.c.bf16 %v3496_v48, %v3495_v45  ;;  %12405 = vmatprep.mubr.msk.bf16.mxu1 %vm313_vm2, %v12773_v13 }
 0x1e4   :  { %v14636_v17 = vpop.f32.mrb[132].mxu1 }
 0x1e5   :  { %12216 = vmatmul.mubr.msk.bf16.gmra.mrb[184].mxu0 %vm3543_vm4, %v3528_v3  ;;  %v14638_v63 = vpop.f32.mrb[133].mxu1 }
 0x1e6   :  { %12219 = vmatprep.mubr.msk.bf16.mxu0 %vm3543_vm4, %v3529_v46  ;;  %v14640_v53 = vpop.f32.mrb[134].mxu1 }
 0x1e7   :  { %v14645_v23 = vpop.f32.mrb[135].mxu1 }
 0x1e9   :  { %12406 = vmatmul.mubr.msk.bf16.gmra.mrb[240].mxu1 %vm313_vm2, %v12774_v10 }
 0x1ea   :  { %12409 = vmatprep.mubr.msk.bf16.mxu1 %vm313_vm2, %v12777_v11 }
 0x1ec   :  { %v14650_v62 = vpop.f32.mrb[136].mxu1 }
 0x1ed   :  { %12220 = vmatmul.mubr.msk.bf16.gmra.mrb[188].mxu0 %vm3543_vm4, %v3530_v35  ;;  %v14652_v30 = vpop.f32.mrb[137].mxu1 }
 0x1ee   :  { %12291 = vmatprep.mubr.msk.bf16.mxu0 %vm313_vm2, %v12723_v44  ;;  %v14654_v3 = vpop.f32.mrb[138].mxu1  ;;  %v12759_v44 = vld [vmem:[%s16489_s1 + $0x590] sm:$0xff]  }
 0x1ef   :  { %v14657_v28 = vpop.f32.mrb[139].mxu1 }
 0x1f1   :  { %12410 = vmatmul.mubr.msk.bf16.gmra.mrb[244].mxu1 %vm313_vm2, %v12778_v47 }
 0x1f4   :  { %v14660_v39 = vpop.f32.mrb[140].mxu1 }
 0x1f5   :  { %12292 = vmatmul.mubr.msk.bf16.vlgmr.msra.gmra.mrb[192].mxu0 %vm313_vm2, %v12724_v21  ;;  %v14662_v29 = vpop.f32.mrb[141].mxu1 }
 0x1f6   :  { %12422 = vmatpush3.bf16.msra.mxu0 %v12858_v6  ;;  %12295 = vmatprep.mubr.msk.bf16.mxu0 %vm313_vm2, %v12727_v27  ;;  %v12781_v6 = vld [vmem:[%s16489_s1 + $0x6e0] sm:$0xff]   ;;  %v14664_v19 = vpop.f32.mrb[142].mxu1  ;;  %v12760_v27 = vld [vmem:[%s16489_s1 + $0x598] sm:$0xff]  }
 0x1f7   :  { %12413 = vmatprep.mubr.msk.bf16.mxu1 %vm313_vm2, %v12781_v6  ;;  %v14669_v1 = vpop.f32.mrb[143].mxu1 }
 0x1f9   :  { %12414 = vmatmul.mubr.msk.bf16.gmra.mrb[248].mxu1 %vm313_vm2, %v12782_v57 }
 0x1fa   :  { %12417 = vmatprep.mubr.msk.bf16.mxu1 %vm313_vm2, %v12785_v0 }
 0x1fc   :  { %v14674_v9 = vpop.f32.mrb[144].mxu1 }
 0x1fd   :  { %12296 = vmatmul.mubr.msk.bf16.gmra.mrb[196].mxu0 %vm313_vm2, %v12728_v49  ;;  %v14676_v15 = vpop.f32.mrb[145].mxu1  ;;  %v12763_v49 = vld [vmem:[%s16489_s1 + $0x5a0] sm:$0xff]  }
 0x1fe   :  { %12299 = vmatprep.mubr.msk.bf16.mxu0 %vm313_vm2, %v12731_v33  ;;  %v14678_v42 = vpop.f32.mrb[146].mxu1 }
 0x1ff   :  { %v14681_v54 = vpop.f32.mrb[147].mxu1 }
 0x200   :  { %16555 = vst [vmem:[#allocation2_spill] sm:$0xff] %v14681_v54 }
 0x201   :  { %12418 = vmatmul.mubr.msk.bf16.gmra.mrb[252].mxu1 %vm313_vm2, %v12786_v7 }
 0x204   :  { %v14684_v22 = vpop.f32.mrb[148].mxu1 }
 0x205   :  { %12300 = vmatmul.mubr.msk.bf16.gmra.mrb[200].mxu0 %vm313_vm2, %v12732_v18  ;;  %16556 = vst [vmem:[#allocation3_spill] sm:$0xff] %v14684_v22  ;;  %v14686_v41 = vpop.f32.mrb[149].mxu1  ;;  %v12764_v18 = vld [vmem:[%s16489_s1 + $0x5a8] sm:$0xff]  }
 0x206   :  { %12303 = vmatprep.mubr.msk.bf16.mxu0 %vm313_vm2, %v12735_v50  ;;  %16557 = vst [vmem:[#allocation4_spill] sm:$0xff] %v14686_v41  ;;  %v14688_v4 = vpop.f32.mrb[150].mxu1  ;;  %v12767_v50 = vld [vmem:[%s16489_s1 + $0x5b0] sm:$0xff]  }
 0x207   :  { %16558 = vst [vmem:[#allocation5_spill] sm:$0xff] %v14688_v4  ;;  %v14693_v32 = vpop.f32.mrb[151].mxu1 }
 0x208   :  { %16559 = vst [vmem:[#allocation6_spill] sm:$0xff] %v14693_v32 }
 0x20c   :  { %v14698_v25 = vpop.f32.mrb[152].mxu1 }
 0x20d   :  { %12304 = vmatmul.mubr.msk.bf16.gmra.mrb[204].mxu0 %vm313_vm2, %v12736_v52  ;;  %16560 = vst [vmem:[#allocation7_spill] sm:$0xff] %v14698_v25  ;;  %v14700_v5 = vpop.f32.mrb[153].mxu1 }
 0x20e   :  { %12307 = vmatprep.mubr.msk.bf16.mxu0 %vm313_vm2, %v12739_v59  ;;  %16561 = vst [vmem:[#allocation8_spill] sm:$0xff] %v14700_v5  ;;  %v14702_v31 = vpop.f32.mrb[154].mxu1 }
 0x20f   :  { %16562 = vst [vmem:[#allocation9_spill] sm:$0xff] %v14702_v31  ;;  %v14705_v51 = vpop.f32.mrb[155].mxu1 }
 0x210   :  { %16563 = vst [vmem:[#allocation10_spill] sm:$0xff] %v14705_v51 }
 0x214   :  { %v14708_v36 = vpop.f32.mrb[156].mxu1 }
 0x215   :  { %12308 = vmatmul.mubr.msk.bf16.gmra.mrb[208].mxu0 %vm313_vm2, %v12740_v58  ;;  %16564 = vst [vmem:[#allocation11_spill] sm:$0xff] %v14708_v36  ;;  %v14710_v2 = vpop.f32.mrb[157].mxu1 }
 0x216   :  { %12311 = vmatprep.mubr.msk.bf16.mxu0 %vm313_vm2, %v12743_v16  ;;  %16565 = vst [vmem:[#allocation12_spill] sm:$0xff] %v14710_v2  ;;  %v14712_v37 = vpop.f32.mrb[158].mxu1 }
 0x217   :  { %16566 = vst [vmem:[#allocation13_spill] sm:$0xff] %v14712_v37  ;;  %v14717_v45 = vpop.f32.mrb[159].mxu1 }
 0x218   :  { %16567 = vst [vmem:[#allocation14_spill] sm:$0xff] %v14717_v45 }
 0x21c   :  { %v14722_v40 = vpop.f32.mrb[160].mxu1 }
 0x21d   :  { %12312 = vmatmul.mubr.msk.bf16.gmra.mrb[212].mxu0 %vm313_vm2, %v12744_v56  ;;  %16568 = vst [vmem:[#allocation15_spill] sm:$0xff] %v14722_v40  ;;  %v14724_v38 = vpop.f32.mrb[161].mxu1  ;;  %v12768_v56 = vld [vmem:[%s16489_s1 + $0x5b8] sm:$0xff]  }
 0x21e   :  { %12315 = vmatprep.mubr.msk.bf16.mxu0 %vm313_vm2, %v12747_v34  ;;  %16569 = vst [vmem:[#allocation16_spill] sm:$0xff] %v14724_v38  ;;  %v14726_v14 = vpop.f32.mrb[162].mxu1 }
 0x21f   :  { %16570 = vst [vmem:[#allocation17_spill] sm:$0xff] %v14726_v14  ;;  %v14729_v48 = vpop.f32.mrb[163].mxu1 }
 0x220   :  { %16571 = vst [vmem:[#allocation18_spill] sm:$0xff] %v14729_v48 }
 0x224   :  { %v14732_v35 = vpop.f32.mrb[164].mxu1 }
 0x225   :  { %12316 = vmatmul.mubr.msk.bf16.gmra.mrb[216].mxu0 %vm313_vm2, %v12748_v43  ;;  %16572 = vst [vmem:[#allocation19_spill] sm:$0xff] %v14732_v35  ;;  %v14737_v46 = vpop.f32.mrb[165].mxu1 }
 0x226   :  { %12319 = vmatprep.mubr.msk.bf16.mxu0 %vm313_vm2, %v12751_v24  ;;  %16573 = vst [vmem:[#allocation20_spill] sm:$0xff] %v14737_v46  ;;  %v14742_v13 = vpop.f32.mrb[166].mxu1 }
 0x227   :  { %16574 = vst [vmem:[#allocation21_spill] sm:$0xff] %v14742_v13  ;;  %v14744_v21 = vpop.f32.mrb[167].mxu1 }
 0x228   :  { %16575 = vst [vmem:[#allocation22_spill] sm:$0xff] %v14744_v21 }
 0x22c   :  { %v14748_v10 = vpop.f32.mrb[168].mxu1 }
 0x22d   :  { %12320 = vmatmul.mubr.msk.bf16.gmra.mrb[220].mxu0 %vm313_vm2, %v12752_v8  ;;  %16576 = vst [vmem:[#allocation23_spill] sm:$0xff] %v14748_v10  ;;  %v14753_v11 = vpop.f32.mrb[169].mxu1  ;;  %v12771_v8 = vld [vmem:[%s16489_s1 + $0x5c0] sm:$0xff]  }
 0x22e   :  { %12323 = vmatprep.mubr.msk.bf16.mxu0 %vm313_vm2, %v12755_v61  ;;  %16577 = vst [vmem:[#allocation24_spill] sm:$0xff] %v14753_v11  ;;  %v14758_v47 = vpop.f32.mrb[170].mxu1 }
 0x22f   :  { %16578 = vst [vmem:[#allocation25_spill] sm:$0xff] %v14758_v47  ;;  %v14760_v33 = vpop.f32.mrb[171].mxu1 }
 0x230   :  { %16579 = vst [vmem:[#allocation26_spill] sm:$0xff] %v14760_v33 }
 0x234   :  { %v14764_v6 = vpop.f32.mrb[172].mxu1 }
 0x235   :  { %12324 = vmatmul.mubr.msk.bf16.gmra.mrb[224].mxu0 %vm313_vm2, %v12756_v12  ;;  %16580 = vst [vmem:[#allocation27_spill] sm:$0xff] %v14764_v6  ;;  %v14769_v57 = vpop.f32.mrb[173].mxu1 }
 0x236   :  { %12327 = vmatprep.mubr.msk.bf16.mxu0 %vm313_vm2, %v12759_v44  ;;  %16581 = vst [vmem:[#allocation28_spill] sm:$0xff] %v14769_v57  ;;  %v14774_v0 = vpop.f32.mrb[174].mxu1 }
 0x237   :  { %16582 = vst [vmem:[#allocation29_spill] sm:$0xff] %v14774_v0  ;;  %v14776_v52 = vpop.f32.mrb[175].mxu1 }
 0x238   :  { %16583 = vst [vmem:[#allocation30_spill] sm:$0xff] %v14776_v52 }
 0x23c   :  { %v12161_v7 = vpop.f32.mrb[128].mxu0  ;;  %v14780_v59 = vpop.f32.mrb[176].mxu1 }
 0x23d   :  { %12328 = vmatmul.mubr.msk.bf16.gmra.mrb[228].mxu0 %vm313_vm2, %v12760_v27  ;;  %16584 = vst [vmem:[#allocation31_spill] sm:$0xff] %v14780_v59  ;;  %v10154_v58 = vpack.c.bf16 %v12161_v7, %v12161_v7  ;;  %v3678_v16 = vpop.f32.mrb[129].mxu0  ;;  %v14785_v34 = vpop.f32.mrb[177].mxu1 }
 0x23e   :  { %12331 = vmatprep.mubr.msk.bf16.mxu0 %vm313_vm2, %v12763_v49  ;;  %16585 = vst [vmem:[#allocation32_spill] sm:$0xff] %v14785_v34  ;;  %v10152_v43 = vpack.c.bf16 %v3678_v16, %v3678_v16  ;;  %v12162_v24 = vpop.f32.mrb[130].mxu0  ;;  %v14790_v61 = vpop.f32.mrb[178].mxu1  ;;  %v12772_v16 = vld [vmem:[%s16489_s1 + $0x5c8] sm:$0xff]  }
 0x23f   :  { %16586 = vst [vmem:[#allocation33_spill] sm:$0xff] %v14790_v61  ;;  %v10155_v12 = vpack.c.bf16 %v12162_v24, %v12162_v24  ;;  %v3681_v44 = vpop.f32.mrb[131].mxu0  ;;  %v14792_v27 = vpop.f32.mrb[179].mxu1  ;;  %4192 = vst.msk [vmem:[%s16492_s4 + $0x8] sm:$0xf] %vm4189_vm5, %v10154_v58 }
 0x240   :  { %16587 = vst [vmem:[#allocation34_spill] sm:$0xff] %v14792_v27  ;;  %v10153_v49 = vpack.c.bf16 %v3681_v44, %v3681_v44  ;;  %4190 = vst.msk [vmem:[%s16492_s4] sm:$0xf] %vm4189_vm5, %v10152_v43 }
 0x241   :  { %4193 = vst.msk [vmem:[%s16492_s4 + $0xc] sm:$0xf] %vm4189_vm5, %v10155_v12 }
 0x242   :  { %4191 = vst.msk [vmem:[%s16492_s4 + $0x4] sm:$0xf] %vm4189_vm5, %v10153_v49 }
 0x245   :  { %12332 = vmatmul.mubr.msk.bf16.gmra.mrb[232].mxu0 %vm313_vm2, %v12764_v18  ;;  %v12165_v18 = vpop.f32.mrb[132].mxu0 }
 0x246   :  { %12335 = vmatprep.mubr.msk.bf16.mxu0 %vm313_vm2, %v12767_v50  ;;  %v14812_v50 = vpop.f32.mrb[180].mxu1  ;;  %v10158_v7 = vpack.c.bf16 %v12165_v18, %v12165_v18  ;;  %v3694_v58 = vpop.f32.mrb[133].mxu0 }
 0x247   :  { %16588 = vst [vmem:[#allocation35_spill] sm:$0xff] %v14812_v50  ;;  %v10156_v43 = vpack.c.bf16 %v3694_v58, %v3694_v58  ;;  %v12166_v24 = vpop.f32.mrb[134].mxu0  ;;  %v12811_v58 = vld [vmem:[%s16490_s3 + $0xc] sm:$0xff]  }
 0x248   :  { %v10159_v44 = vpack.c.bf16 %v12166_v24, %v12166_v24  ;;  %v3697_v49 = vpop.f32.mrb[135].mxu0  ;;  %4196 = vst.msk [vmem:[%s16492_s4 + $0x18] sm:$0xf] %vm4189_vm5, %v10158_v7  ;;  %12487 = vmatprep.subr.bf16.mxu1 %v12811_v58 }
 0x249   :  { %v10157_v18 = vpack.c.bf16 %v3697_v49, %v3697_v49  ;;  %4194 = vst.msk [vmem:[%s16492_s4 + $0x10] sm:$0xf] %vm4189_vm5, %v10156_v43  ;;  %12488 = vmatpush3.bf16.msra.mxu1 %v12811_v58 }
 0x24a   :  { %4197 = vst.msk [vmem:[%s16492_s4 + $0x1c] sm:$0xf] %vm4189_vm5, %v10159_v44  ;;  %v12776_v44 = vld [vmem:[%s16489_s1 + $0x5d8] sm:$0xff]  }
 0x24b   :  { %4195 = vst.msk [vmem:[%s16492_s4 + $0x14] sm:$0xf] %vm4189_vm5, %v10157_v18 }
 0x24c   :  { %v12169_v7 = vpop.f32.mrb[136].mxu0 }
 0x24d   :  { %12336 = vmatmul.mubr.msk.bf16.gmra.mrb[236].mxu0 %vm313_vm2, %v12768_v56  ;;  %v14817_v56 = vpop.f32.mrb[181].mxu1  ;;  %v3710_v24 = vpop.f32.mrb[137].mxu0 }
 0x24e   :  { %12339 = vmatprep.mubr.msk.bf16.mxu0 %vm313_vm2, %v12771_v8  ;;  %16589 = vst [vmem:[#allocation36_spill] sm:$0xff] %v14817_v56  ;;  %v12775_v8 = vld [vmem:[%s16489_s1 + $0x5d0] sm:$0xff]   ;;  %v14822_v12 = vpop.f32.mrb[182].mxu1  ;;  %v10160_v49 = vpack.c.bf16 %v3710_v24, %v3710_v24  ;;  %v12780_v24 = vld [vmem:[%s16489_s1 + $0x5e8] sm:$0xff]  }
 0x24f   :  { %16590 = vst [vmem:[#allocation37_spill] sm:$0xff] %v14822_v12  ;;  %v14824_v27 = vpop.f32.mrb[183].mxu1  ;;  %v12779_v12 = vld [vmem:[%s16489_s1 + $0x5e0] sm:$0xff]  }
 0x250   :  { %16591 = vst [vmem:[#allocation38_spill] sm:$0xff] %v14824_v27  ;;  %v14847_v43 = vpop.f32.mrb[184].mxu1  ;;  %v12170_v27 = vpop.f32.mrb[138].mxu0  ;;  %4198 = vst.msk [vmem:[%s16492_s4 + $0x20] sm:$0xf] %vm4189_vm5, %v10160_v49 }
 0x251   :  { %16592 = vst [vmem:[#allocation39_spill] sm:$0xff] %v14847_v43  ;;  %v10163_v56 = vpack.c.bf16 %v12170_v27, %v12170_v27  ;;  %v3713_v43 = vpop.f32.mrb[139].mxu0 }
 0x253   :  { %4201 = vst.msk [vmem:[%s16492_s4 + $0x2c] sm:$0xf] %vm4189_vm5, %v10163_v56 }
 0x254   :  { %v12173_v27 = vpop.f32.mrb[140].mxu0 }
 0x255   :  { %12340 = vmatmul.mubr.msk.bf16.gmra.mrb[240].mxu0 %vm313_vm2, %v12772_v16  ;;  %v10162_v16 = vpack.c.bf16 %v12169_v7, %v12169_v7  ;;  %v10161_v7 = vpack.c.bf16 %v3713_v43, %v3713_v43  ;;  %v10166_v43 = vpack.c.bf16 %v12173_v27, %v12173_v27 }
 0x256   :  { %12343 = vmatprep.mubr.msk.bf16.mxu0 %vm313_vm2, %v12775_v8  ;;  %v14852_v8 = vpop.f32.mrb[185].mxu1 }
 0x257   :  { %16593 = vst [vmem:[#allocation40_spill] sm:$0xff] %v14852_v8  ;;  %v14857_v18 = vpop.f32.mrb[186].mxu1  ;;  %4200 = vst.msk [vmem:[%s16492_s4 + $0x28] sm:$0xf] %vm4189_vm5, %v10162_v16  ;;  %v3726_v16 = vpop.f32.mrb[141].mxu0 }
 0x258   :  { %16594 = vst [vmem:[#allocation41_spill] sm:$0xff] %v14857_v18  ;;  %v14859_v50 = vpop.f32.mrb[187].mxu1  ;;  %4199 = vst.msk [vmem:[%s16492_s4 + $0x24] sm:$0xf] %vm4189_vm5, %v10161_v7  ;;  %v10164_v49 = vpack.c.bf16 %v3726_v16, %v3726_v16  ;;  %v12174_v56 = vpop.f32.mrb[142].mxu0 }
 0x259   :  { %16595 = vst [vmem:[#allocation42_spill] sm:$0xff] %v14859_v50  ;;  %v14879_v58 = vpop.f32.mrb[188].mxu1  ;;  %v10167_v7 = vpack.c.bf16 %v12174_v56, %v12174_v56  ;;  %v3729_v18 = vpop.f32.mrb[143].mxu0  ;;  %4204 = vst.msk [vmem:[%s16492_s4 + $0x38] sm:$0xf] %vm4189_vm5, %v10166_v43 }
 0x25a   :  { %16596 = vst [vmem:[#allocation43_spill] sm:$0xff] %v14879_v58  ;;  %v10165_v27 = vpack.c.bf16 %v3729_v18, %v3729_v18  ;;  %4202 = vst.msk [vmem:[%s16492_s4 + $0x30] sm:$0xf] %vm4189_vm5, %v10164_v49 }
 0x25b   :  { %4205 = vst.msk [vmem:[%s16492_s4 + $0x3c] sm:$0xf] %vm4189_vm5, %v10167_v7 }
 0x25c   :  { %4203 = vst.msk [vmem:[%s16492_s4 + $0x34] sm:$0xf] %vm4189_vm5, %v10165_v27  ;;  %v12177_v18 = vpop.f32.mrb[144].mxu0 }
 0x25d   :  { %12344 = vmatmul.mubr.msk.bf16.gmra.mrb[244].mxu0 %vm313_vm2, %v12776_v44  ;;  %v14884_v44 = vpop.f32.mrb[189].mxu1  ;;  %v10170_v16 = vpack.c.bf16 %v12177_v18, %v12177_v18  ;;  %v3742_v56 = vpop.f32.mrb[145].mxu0 }
 0x25e   :  { %12347 = vmatprep.mubr.msk.bf16.mxu0 %vm313_vm2, %v12779_v12  ;;  %16597 = vst [vmem:[#allocation44_spill] sm:$0xff] %v14884_v44  ;;  %v12783_v12 = vld [vmem:[%s16489_s1 + $0x5f0] sm:$0xff]   ;;  %v14889_v50 = vpop.f32.mrb[190].mxu1  ;;  %v12178_v7 = vpop.f32.mrb[146].mxu0 }
 0x25f   :  { %16598 = vst [vmem:[#allocation45_spill] sm:$0xff] %v14889_v50  ;;  %v14891_v8 = vpop.f32.mrb[191].mxu1  ;;  %v10171_v27 = vpack.c.bf16 %v12178_v7, %v12178_v7  ;;  %v3745_v44 = vpop.f32.mrb[147].mxu0  ;;  %4208 = vst.msk [vmem:[%s16492_s4 + $0x48] sm:$0xf] %vm4189_vm5, %v10170_v16 }
 0x260   :  { %16599 = vst [vmem:[#allocation46_spill] sm:$0xff] %v14891_v8  ;;  %v14911_v43 = vpop.f32.mrb[192].mxu1  ;;  %v10168_v8 = vpack.c.bf16 %v3742_v56, %v3742_v56  ;;  %v10169_v18 = vpack.c.bf16 %v3745_v44, %v3745_v44 }
 0x261   :  { %v14916_v49 = vpop.f32.mrb[193].mxu1  ;;  %4209 = vst.msk [vmem:[%s16492_s4 + $0x4c] sm:$0xf] %vm4189_vm5, %v10171_v27 }
 0x262   :  { %v14921_v50 = vpop.f32.mrb[194].mxu1  ;;  %4206 = vst.msk [vmem:[%s16492_s4 + $0x40] sm:$0xf] %vm4189_vm5, %v10168_v8  ;;  %4207 = vst.msk [vmem:[%s16492_s4 + $0x44] sm:$0xf] %vm4189_vm5, %v10169_v18  ;;  %v12788_v8 = vld [vmem:[%s16489_s1 + $0x708] sm:$0xff]  }
 0x263   :  { %v14923_v58 = vpop.f32.mrb[195].mxu1 }
 0x264   :  { %v12181_v44 = vpop.f32.mrb[148].mxu0  ;;  %v14943_v16 = vpop.f32.mrb[196].mxu1 }
 0x265   :  { %12348 = vmatmul.mubr.msk.bf16.gmra.mrb[248].mxu0 %vm313_vm2, %v12780_v24  ;;  %v12784_v24 = vld [vmem:[%s16489_s1 + $0x5f8] sm:$0xff]   ;;  %v10174_v56 = vpack.c.bf16 %v12181_v44, %v12181_v44  ;;  %v3758_v7 = vpop.f32.mrb[149].mxu0 }
 0x266   :  { %12351 = vmatprep.mubr.msk.bf16.mxu0 %vm313_vm2, %v12783_v12  ;;  %v12787_v12 = vld [vmem:[%s16489_s1 + $0x700] sm:$0xff]   ;;  %v10172_v61 = vpack.c.bf16 %v3758_v7, %v3758_v7  ;;  %v12182_v27 = vpop.f32.mrb[150].mxu0 }
 0x267   :  { %v10175_v18 = vpack.c.bf16 %v12182_v27, %v12182_v27  ;;  %v3761_v59 = vpop.f32.mrb[151].mxu0  ;;  %4212 = vst.msk [vmem:[%s16492_s4 + $0x58] sm:$0xf] %vm4189_vm5, %v10174_v56 }
 0x268   :  { %v10173_v44 = vpack.c.bf16 %v3761_v59, %v3761_v59  ;;  %4210 = vst.msk [vmem:[%s16492_s4 + $0x50] sm:$0xf] %vm4189_vm5, %v10172_v61  ;;  %v12790_v61 = vld [vmem:[%s16489_s1 + $0x718] sm:$0xff]  }
 0x269   :  { %4213 = vst.msk [vmem:[%s16492_s4 + $0x5c] sm:$0xf] %vm4189_vm5, %v10175_v18 }
 0x26a   :  { %4211 = vst.msk [vmem:[%s16492_s4 + $0x54] sm:$0xf] %vm4189_vm5, %v10173_v44 }
 0x26c   :  { %v12185_v59 = vpop.f32.mrb[152].mxu0 }
 0x26d   :  { %12352 = vmatmul.mubr.msk.bf16.gmra.mrb[252].mxu0 %vm313_vm2, %v12784_v24  ;;  %v14948_v24 = vpop.f32.mrb[197].mxu1  ;;  %v10178_v7 = vpack.c.bf16 %v12185_v59, %v12185_v59  ;;  %v3774_v27 = vpop.f32.mrb[153].mxu0 }
 0x26e   :  { %12423 = vmatprep.mubr.msk.bf16.mxu0 %vm313_vm2, %v12787_v12  ;;  %v12789_v12 = vld [vmem:[%s16489_s1 + $0x710] sm:$0xff]   ;;  %v14953_v34 = vpop.f32.mrb[198].mxu1  ;;  %v10176_v0 = vpack.c.bf16 %v3774_v27, %v3774_v27  ;;  %v12186_v18 = vpop.f32.mrb[154].mxu0 }
 0x26f   :  { %v14955_v52 = vpop.f32.mrb[199].mxu1  ;;  %v10179_v44 = vpack.c.bf16 %v12186_v18, %v12186_v18  ;;  %v3777_v6 = vpop.f32.mrb[155].mxu0  ;;  %4216 = vst.msk [vmem:[%s16492_s4 + $0x68] sm:$0xf] %vm4189_vm5, %v10178_v7 }
 0x270   :  { %v14975_v56 = vpop.f32.mrb[200].mxu1  ;;  %v10177_v59 = vpack.c.bf16 %v3777_v6, %v3777_v6  ;;  %4214 = vst.msk [vmem:[%s16492_s4 + $0x60] sm:$0xf] %vm4189_vm5, %v10176_v0  ;;  %v12792_v0 = vld [vmem:[%s16489_s1 + $0x728] sm:$0xff]  }
 0x271   :  { %4217 = vst.msk [vmem:[%s16492_s4 + $0x6c] sm:$0xf] %vm4189_vm5, %v10179_v44 }
 0x272   :  { %4215 = vst.msk [vmem:[%s16492_s4 + $0x64] sm:$0xf] %vm4189_vm5, %v10177_v59 }
 0x274   :  { %v12189_v6 = vpop.f32.mrb[156].mxu0 }
 0x275   :  { %12424 = vmatmul.mubr.msk.bf16.vlgmr.msra.gmra.mrb[0].mxu0 %vm313_vm2, %v12788_v8  ;;  %v14980_v8 = vpop.f32.mrb[201].mxu1  ;;  %v10182_v27 = vpack.c.bf16 %v12189_v6, %v12189_v6  ;;  %v3790_v18 = vpop.f32.mrb[157].mxu0 }
 0x276   :  { %12427 = vmatprep.mubr.msk.bf16.mxu0 %vm313_vm2, %v12789_v12  ;;  %v12791_v12 = vld [vmem:[%s16489_s1 + $0x720] sm:$0xff]   ;;  %v14985_v57 = vpop.f32.mrb[202].mxu1  ;;  %v10180_v47 = vpack.c.bf16 %v3790_v18, %v3790_v18  ;;  %v12190_v44 = vpop.f32.mrb[158].mxu0 }
 0x277   :  { %v14987_v33 = vpop.f32.mrb[203].mxu1  ;;  %v10183_v59 = vpack.c.bf16 %v12190_v44, %v12190_v44  ;;  %v3793_v10 = vpop.f32.mrb[159].mxu0  ;;  %4220 = vst.msk [vmem:[%s16492_s4 + $0x78] sm:$0xf] %vm4189_vm5, %v10182_v27 }
 0x278   :  { %v15007_v7 = vpop.f32.mrb[204].mxu1  ;;  %v10181_v6 = vpack.c.bf16 %v3793_v10, %v3793_v10  ;;  %4218 = vst.msk [vmem:[%s16492_s4 + $0x70] sm:$0xf] %vm4189_vm5, %v10180_v47  ;;  %v12794_v47 = vld [vmem:[%s16489_s1 + $0x738] sm:$0xff]  }
 0x279   :  { %4221 = vst.msk [vmem:[%s16492_s4 + $0x7c] sm:$0xf] %vm4189_vm5, %v10183_v59 }
 0x27a   :  { %4219 = vst.msk [vmem:[%s16492_s4 + $0x74] sm:$0xf] %vm4189_vm5, %v10181_v6 }
 0x27c   :  { %v12193_v10 = vpop.f32.mrb[160].mxu0 }
 0x27d   :  { %12428 = vmatmul.mubr.msk.bf16.gmra.mrb[4].mxu0 %vm313_vm2, %v12790_v61  ;;  %v15012_v61 = vpop.f32.mrb[205].mxu1  ;;  %v10186_v18 = vpack.c.bf16 %v12193_v10, %v12193_v10  ;;  %v3806_v44 = vpop.f32.mrb[161].mxu0 }
 0x27e   :  { %12431 = vmatprep.mubr.msk.bf16.mxu0 %vm313_vm2, %v12791_v12  ;;  %v12793_v12 = vld [vmem:[%s16489_s1 + $0x730] sm:$0xff]   ;;  %v15017_v11 = vpop.f32.mrb[206].mxu1  ;;  %v10184_v13 = vpack.c.bf16 %v3806_v44, %v3806_v44  ;;  %v12194_v59 = vpop.f32.mrb[162].mxu0 }
 0x27f   :  { %v15019_v21 = vpop.f32.mrb[207].mxu1  ;;  %v10187_v6 = vpack.c.bf16 %v12194_v59, %v12194_v59  ;;  %v3809_v35 = vpop.f32.mrb[163].mxu0  ;;  %4224 = vst.msk [vmem:[%s16492_s4 + $0x88] sm:$0xf] %vm4189_vm5, %v10186_v18 }
 0x280   :  { %v15039_v27 = vpop.f32.mrb[208].mxu1  ;;  %v10185_v10 = vpack.c.bf16 %v3809_v35, %v3809_v35  ;;  %4222 = vst.msk [vmem:[%s16492_s4 + $0x80] sm:$0xf] %vm4189_vm5, %v10184_v13  ;;  %v12796_v13 = vld [vmem:[%s16489_s1 + $0x748] sm:$0xff]  }
 0x281   :  { %4225 = vst.msk [vmem:[%s16492_s4 + $0x8c] sm:$0xf] %vm4189_vm5, %v10187_v6 }
 0x282   :  { %4223 = vst.msk [vmem:[%s16492_s4 + $0x84] sm:$0xf] %vm4189_vm5, %v10185_v10 }
 0x284   :  { %v12197_v35 = vpop.f32.mrb[164].mxu0 }
 0x285   :  { %12432 = vmatmul.mubr.msk.bf16.gmra.mrb[8].mxu0 %vm313_vm2, %v12792_v0  ;;  %v15044_v0 = vpop.f32.mrb[209].mxu1  ;;  %v10190_v44 = vpack.c.bf16 %v12197_v35, %v12197_v35  ;;  %v3822_v59 = vpop.f32.mrb[165].mxu0 }
 0x286   :  { %12435 = vmatprep.mubr.msk.bf16.mxu0 %vm313_vm2, %v12793_v12  ;;  %16600 = vst [vmem:[#allocation47_spill] sm:$0xff] %v15044_v0  ;;  %v12795_v12 = vld [vmem:[%s16489_s1 + $0x740] sm:$0xff]   ;;  %v15049_v46 = vpop.f32.mrb[210].mxu1  ;;  %v10188_v38 = vpack.c.bf16 %v3822_v59, %v3822_v59  ;;  %v12198_v6 = vpop.f32.mrb[166].mxu0 }
 0x287   :  { %16601 = vst [vmem:[#allocation48_spill] sm:$0xff] %v15049_v46  ;;  %v15051_v48 = vpop.f32.mrb[211].mxu1  ;;  %v10191_v10 = vpack.c.bf16 %v12198_v6, %v12198_v6  ;;  %v3825_v40 = vpop.f32.mrb[167].mxu0  ;;  %4228 = vst.msk [vmem:[%s16492_s4 + $0x98] sm:$0xf] %vm4189_vm5, %v10190_v44 }
 0x288   :  { %16602 = vst [vmem:[#allocation49_spill] sm:$0xff] %v15051_v48  ;;  %v15071_v18 = vpop.f32.mrb[212].mxu1  ;;  %v10189_v35 = vpack.c.bf16 %v3825_v40, %v3825_v40  ;;  %4226 = vst.msk [vmem:[%s16492_s4 + $0x90] sm:$0xf] %vm4189_vm5, %v10188_v38 }
 0x289   :  { %16603 = vst [vmem:[#allocation50_spill] sm:$0xff] %v15071_v18  ;;  %4229 = vst.msk [vmem:[%s16492_s4 + $0x9c] sm:$0xf] %vm4189_vm5, %v10191_v10  ;;  %v12820_v59 = vld [vmem:[%s16490_s3 + $0x14] ss:$0 sps:$4 sm:$0x11]  }
 0x28a   :  { %4227 = vst.msk [vmem:[%s16492_s4 + $0x94] sm:$0xf] %vm4189_vm5, %v10189_v35  ;;  %12556 = vmatprep.subr.msk.bf16.mxu1 %vm3640_vm3, %v12820_v59  ;;  %v7800_v44 = vsel %vm3640_vm3, %v12820_v59, 0  ;;  %v12799_v35 = vld [vmem:[%s16489_s1 + $0x760] sm:$0xff]  }
 0x28b   :  { %12490 = vmatpush3.bf16.msra.mxu1 %v7800_v44 }
 0x28c   :  { %v12201_v40 = vpop.f32.mrb[168].mxu0 }
 0x28d   :  { %12436 = vmatmul.mubr.msk.bf16.gmra.mrb[12].mxu0 %vm313_vm2, %v12794_v47  ;;  %v15076_v47 = vpop.f32.mrb[213].mxu1  ;;  %v3838_v6 = vpop.f32.mrb[169].mxu0 }
 0x28e   :  { %12439 = vmatprep.mubr.msk.bf16.mxu0 %vm313_vm2, %v12795_v12  ;;  %16604 = vst [vmem:[#allocation51_spill] sm:$0xff] %v15076_v47  ;;  %v12797_v12 = vld [vmem:[%s16489_s1 + $0x750] sm:$0xff]   ;;  %v15081_v14 = vpop.f32.mrb[214].mxu1  ;;  %v10192_v37 = vpack.c.bf16 %v3838_v6, %v3838_v6  ;;  %v12202_v2 = vpop.f32.mrb[170].mxu0 }
 0x28f   :  { %16605 = vst [vmem:[#allocation52_spill] sm:$0xff] %v15081_v14  ;;  %v15083_v45 = vpop.f32.mrb[215].mxu1  ;;  %v10195_v51 = vpack.c.bf16 %v12202_v2, %v12202_v2  ;;  %v3841_v5 = vpop.f32.mrb[171].mxu0 }
 0x290   :  { %16606 = vst [vmem:[#allocation53_spill] sm:$0xff] %v15083_v45  ;;  %v15106_v38 = vpop.f32.mrb[216].mxu1  ;;  %4230 = vst.msk [vmem:[%s16492_s4 + $0xa0] sm:$0xf] %vm4189_vm5, %v10192_v37  ;;  %v12800_v37 = vld [vmem:[%s16489_s1 + $0x768] sm:$0xff]  }
 0x291   :  { %16607 = vst [vmem:[#allocation54_spill] sm:$0xff] %v15106_v38  ;;  %v15113_v10 = vpop.f32.mrb[217].mxu1  ;;  %4233 = vst.msk [vmem:[%s16492_s4 + $0xac] sm:$0xf] %vm4189_vm5, %v10195_v51  ;;  %v11495_v38 = vld [vmem:[%s16491_s0 + $0x600] sm:$0xff]  }
 0x292   :  { %16608 = vst [vmem:[#allocation55_spill] sm:$0xff] %v15113_v10  ;;  %v15118_v36 = vpop.f32.mrb[218].mxu1  ;;  %v11051_v41 = vunpack.c.h.bf16 %v11495_v38 }
 0x293   :  { %16609 = vst [vmem:[#allocation56_spill] sm:$0xff] %v15118_v36  ;;  %v15120_v59 = vpop.f32.mrb[219].mxu1 }
 0x294   :  { %16610 = vst [vmem:[#allocation57_spill] sm:$0xff] %v15120_v59  ;;  %v15140_v2 = vpop.f32.mrb[220].mxu1 }
 0x295   :  { %12440 = vmatmul.mubr.msk.bf16.gmra.mrb[16].mxu0 %vm313_vm2, %v12796_v13  ;;  %v10194_v13 = vpack.c.bf16 %v12201_v40, %v12201_v40  ;;  %v10193_v40 = vpack.c.bf16 %v3841_v5, %v3841_v5  ;;  %v12205_v5 = vpop.f32.mrb[172].mxu0  ;;  %16611 = vst [vmem:[#allocation58_spill] sm:$0xff] %v15140_v2  ;;  %v15145_v6 = vpop.f32.mrb[221].mxu1 }
 0x296   :  { %12443 = vmatprep.mubr.msk.bf16.mxu0 %vm313_vm2, %v12797_v12  ;;  %v12798_v12 = vld [vmem:[%s16489_s1 + $0x758] sm:$0xff]   ;;  %v10198_v44 = vpack.c.bf16 %v12205_v5, %v12205_v5  ;;  %16612 = vst [vmem:[#allocation59_spill] sm:$0xff] %v15145_v6  ;;  %v15150_v59 = vpop.f32.mrb[222].mxu1 }
 0x297   :  { %4232 = vst.msk [vmem:[%s16492_s4 + $0xa8] sm:$0xf] %vm4189_vm5, %v10194_v13  ;;  %4231 = vst.msk [vmem:[%s16492_s4 + $0xa4] sm:$0xf] %vm4189_vm5, %v10193_v40  ;;  %v3854_v13 = vpop.f32.mrb[173].mxu0  ;;  %v15152_v10 = vpop.f32.mrb[223].mxu1 }
 0x298   :  { %v12206_v51 = vpop.f32.mrb[174].mxu0  ;;  %16613 = vst [vmem:[#allocation60_spill] sm:$0xff] %v15150_v59  ;;  %16614 = vst [vmem:[#allocation61_spill] sm:$0xff] %v15152_v10 }
 0x299   :  { %v10199_v40 = vpack.c.bf16 %v12206_v51, %v12206_v51  ;;  %v3857_v36 = vpop.f32.mrb[175].mxu0  ;;  %4236 = vst.msk [vmem:[%s16492_s4 + $0xb8] sm:$0xf] %vm4189_vm5, %v10198_v44 }
 0x29a   :  { %v10197_v5 = vpack.c.bf16 %v3857_v36, %v3857_v36 }
 0x29b   :  { %4237 = vst.msk [vmem:[%s16492_s4 + $0xbc] sm:$0xf] %vm4189_vm5, %v10199_v40 }
 0x29c   :  { %4235 = vst.msk [vmem:[%s16492_s4 + $0xb4] sm:$0xf] %vm4189_vm5, %v10197_v5  ;;  %v12209_v36 = vpop.f32.mrb[176].mxu0  ;;  %v15172_v44 = vpop.f32.mrb[224].mxu1 }
 0x29d   :  { %12444 = vmatmul.mubr.msk.bf16.gmra.mrb[20].mxu0 %vm313_vm2, %v12798_v12  ;;  %v10196_v12 = vpack.c.bf16 %v3854_v13, %v3854_v13  ;;  %16615 = vst [vmem:[#allocation62_spill] sm:$0xff] %v15172_v44  ;;  %v10202_v13 = vpack.c.bf16 %v12209_v36, %v12209_v36  ;;  %v3870_v51 = vpop.f32.mrb[177].mxu0 }
 0x29e   :  { %12447 = vmatprep.mubr.msk.bf16.mxu0 %vm313_vm2, %v12799_v35  ;;  %v12801_v35 = vld [vmem:[%s16489_s1 + $0x770] sm:$0xff]   ;;  %v10200_v10 = vpack.c.bf16 %v3870_v51, %v3870_v51  ;;  %v12210_v40 = vpop.f32.mrb[178].mxu0 }
 0x29f   :  { %4234 = vst.msk [vmem:[%s16492_s4 + $0xb0] sm:$0xf] %vm4189_vm5, %v10196_v12  ;;  %v15177_v12 = vpop.f32.mrb[225].mxu1  ;;  %v10203_v5 = vpack.c.bf16 %v12210_v40, %v12210_v40  ;;  %v3873_v6 = vpop.f32.mrb[179].mxu0  ;;  %4240 = vst.msk [vmem:[%s16492_s4 + $0xc8] sm:$0xf] %vm4189_vm5, %v10202_v13 }
 0x2a0   :  { %16616 = vst [vmem:[#allocation63_spill] sm:$0xff] %v15177_v12  ;;  %v15182_v59 = vpop.f32.mrb[226].mxu1  ;;  %v10201_v36 = vpack.c.bf16 %v3873_v6, %v3873_v6  ;;  %4238 = vst.msk [vmem:[%s16492_s4 + $0xc0] sm:$0xf] %vm4189_vm5, %v10200_v10  ;;  %v12804_v10 = vld [vmem:[%s16489_s1 + $0x788] sm:$0xff]  }
 0x2a1   :  { %16617 = vst [vmem:[#allocation64_spill] sm:$0xff] %v15182_v59  ;;  %v15184_v2 = vpop.f32.mrb[227].mxu1  ;;  %4241 = vst.msk [vmem:[%s16492_s4 + $0xcc] sm:$0xf] %vm4189_vm5, %v10203_v5 }
 0x2a2   :  { %16618 = vst [vmem:[#allocation65_spill] sm:$0xff] %v15184_v2  ;;  %4239 = vst.msk [vmem:[%s16492_s4 + $0xc4] sm:$0xf] %vm4189_vm5, %v10201_v36 }
 0x2a4   :  { %v15204_v13 = vpop.f32.mrb[228].mxu1 }
 0x2a5   :  { %12448 = vmatmul.mubr.msk.bf16.gmra.mrb[24].mxu0 %vm313_vm2, %v12800_v37  ;;  %v12802_v37 = vld [vmem:[%s16489_s1 + $0x778] sm:$0xff]   ;;  %16619 = vst [vmem:[#allocation66_spill] sm:$0xff] %v15204_v13 }
 0x2a6   :  { %12451 = vmatprep.mubr.msk.bf16.mxu0 %vm313_vm2, %v12801_v35  ;;  %v12803_v35 = vld [vmem:[%s16489_s1 + $0x780] sm:$0xff]  }
 0x2ad   :  { %12452 = vmatmul.mubr.msk.bf16.gmra.mrb[28].mxu0 %vm313_vm2, %v12802_v37  ;;  %v15209_v37 = vpop.f32.mrb[229].mxu1 }
 0x2ae   :  { %12455 = vmatprep.mubr.msk.bf16.mxu0 %vm313_vm2, %v12803_v35  ;;  %16620 = vst [vmem:[#allocation67_spill] sm:$0xff] %v15209_v37  ;;  %v12805_v35 = vld [vmem:[%s16489_s1 + $0x790] sm:$0xff]   ;;  %v15214_v59 = vpop.f32.mrb[230].mxu1 }
 0x2af   :  { %16621 = vst [vmem:[#allocation68_spill] sm:$0xff] %v15214_v59  ;;  %v15216_v44 = vpop.f32.mrb[231].mxu1 }
 0x2b0   :  { %v12213_v6 = vpop.f32.mrb[180].mxu0  ;;  %16622 = vst [vmem:[#allocation69_spill] sm:$0xff] %v15216_v44 }
 0x2b1   :  { %v10206_v51 = vpack.c.bf16 %v12213_v6, %v12213_v6  ;;  %v3886_v40 = vpop.f32.mrb[181].mxu0 }
 0x2b2   :  { %v10204_v2 = vpack.c.bf16 %v3886_v40, %v3886_v40  ;;  %v12214_v5 = vpop.f32.mrb[182].mxu0 }
 0x2b3   :  { %v10207_v36 = vpack.c.bf16 %v12214_v5, %v12214_v5  ;;  %v3889_v12 = vpop.f32.mrb[183].mxu0  ;;  %4244 = vst.msk [vmem:[%s16492_s4 + $0xd8] sm:$0xf] %vm4189_vm5, %v10206_v51  ;;  %v15236_v51 = vpop.f32.mrb[232].mxu1 }
 0x2b4   :  { %v10205_v6 = vpack.c.bf16 %v3889_v12, %v3889_v12  ;;  %4242 = vst.msk [vmem:[%s16492_s4 + $0xd0] sm:$0xf] %vm4189_vm5, %v10204_v2  ;;  %16623 = vst [vmem:[#allocation70_spill] sm:$0xff] %v15236_v51  ;;  %v12806_v2 = vld [vmem:[%s16489_s1 + $0x798] sm:$0xff]   ;;  %v11463_v51 = vld [vmem:[%s16491_s0 + $0x500] sm:$0xff]  }
 0x2b5   :  { %12456 = vmatmul.mubr.msk.bf16.gmra.mrb[32].mxu0 %vm313_vm2, %v12804_v10  ;;  %4245 = vst.msk [vmem:[%s16492_s4 + $0xdc] sm:$0xf] %vm4189_vm5, %v10207_v36  ;;  %v15241_v10 = vpop.f32.mrb[233].mxu1  ;;  %v10923_v4 = vunpack.c.h.bf16 %v11463_v51 }
 0x2b6   :  { %12459 = vmatprep.mubr.msk.bf16.mxu0 %vm313_vm2, %v12805_v35  ;;  %4243 = vst.msk [vmem:[%s16492_s4 + $0xd4] sm:$0xf] %vm4189_vm5, %v10205_v6  ;;  %16624 = vst [vmem:[#allocation71_spill] sm:$0xff] %v15241_v10  ;;  %v12807_v35 = vld [vmem:[%s16489_s1 + $0x7a0] sm:$0xff]   ;;  %v15246_v59 = vpop.f32.mrb[234].mxu1 }
 0x2b7   :  { %16625 = vst [vmem:[#allocation72_spill] sm:$0xff] %v15246_v59  ;;  %v15248_v13 = vpop.f32.mrb[235].mxu1 }
 0x2b8   :  { %v12217_v12 = vpop.f32.mrb[184].mxu0  ;;  %16626 = vst [vmem:[#allocation73_spill] sm:$0xff] %v15248_v13 }
 0x2b9   :  { %v10210_v40 = vpack.c.bf16 %v12217_v12, %v12217_v12  ;;  %v3902_v5 = vpop.f32.mrb[185].mxu0 }
 0x2ba   :  { %v10208_v44 = vpack.c.bf16 %v3902_v5, %v3902_v5  ;;  %v12218_v36 = vpop.f32.mrb[186].mxu0 }
 0x2bb   :  { %v10211_v6 = vpack.c.bf16 %v12218_v36, %v12218_v36  ;;  %v3905_v37 = vpop.f32.mrb[187].mxu0  ;;  %4248 = vst.msk [vmem:[%s16492_s4 + $0xe8] sm:$0xf] %vm4189_vm5, %v10210_v40  ;;  %v15268_v40 = vpop.f32.mrb[236].mxu1  ;;  %v12808_v36 = vld [vmem:[%s16489_s1 + $0x7a8] sm:$0xff]  }
 0x2bc   :  { %v10209_v12 = vpack.c.bf16 %v3905_v37, %v3905_v37  ;;  %4246 = vst.msk [vmem:[%s16492_s4 + $0xe0] sm:$0xf] %vm4189_vm5, %v10208_v44  ;;  %16627 = vst [vmem:[#allocation74_spill] sm:$0xff] %v15268_v40  ;;  %v11432_v44 = vld [vmem:[%s16491_s0 + $0x408] sm:$0xff]  }
 0x2bd   :  { %12460 = vmatmul.mubr.msk.bf16.gmra.mrb[36].mxu0 %vm313_vm2, %v12806_v2  ;;  %4249 = vst.msk [vmem:[%s16492_s4 + $0xec] sm:$0xf] %vm4189_vm5, %v10211_v6  ;;  %v15276_v6 = vpop.f32.mrb[237].mxu1  ;;  %v11496_v40 = vld [vmem:[%s16491_s0 + $0x608] sm:$0xff]   ;;  %v10799_v25 = vunpack.c.h.bf16 %v11432_v44 }
 0x2be   :  { %12463 = vmatprep.mubr.msk.bf16.mxu0 %vm313_vm2, %v12807_v35  ;;  %4247 = vst.msk [vmem:[%s16492_s4 + $0xe4] sm:$0xf] %vm4189_vm5, %v10209_v12  ;;  %16628 = vst [vmem:[#allocation75_spill] sm:$0xff] %v15276_v6  ;;  %v11464_v12 = vld [vmem:[%s16491_s0 + $0x508] sm:$0xff]   ;;  %v15287_v59 = vpop.f32.mrb[238].mxu1  ;;  %v11431_v6 = vld [vmem:[%s16491_s0 + $0x400] sm:$0xff]   ;;  %v11054_v14 = vunpack.c.l.bf16 %v11496_v40 }
 0x2bf   :  { %16629 = vst [vmem:[#allocation76_spill] sm:$0xff] %v15287_v59  ;;  %v15298_v31 = vpop.f32.mrb[239].mxu1  ;;  %v10798_v59 = vunpack.c.l.bf16 %v11432_v44  ;;  %v10795_v47 = vunpack.c.h.bf16 %v11431_v6  ;;  %v15321_v44 = vld [vmem:[%s16491_s0 + $0x410] sm:$0xff]   ;;  %v4996_v18 = vmul.f32 %v14629_v60, %v10799_v25 }
 0x2c0   :  { %v12221_v37 = vpop.f32.mrb[188].mxu0  ;;  %16630 = vst [vmem:[#allocation77_spill] sm:$0xff] %v15298_v31  ;;  %v10794_v31 = vunpack.c.l.bf16 %v11431_v6  ;;  %v10927_v6 = vunpack.c.h.bf16 %v11464_v12  ;;  %v15330_v22 = vpop.f32.mrb[240].mxu1  ;;  %v6665_v54 = vmul.f32 %v14911_v43, %v11054_v14  ;;  %v11498_v14 = vld [vmem:[%s16491_s0 + $0x618] sm:$0xff]   ;;  %v12812_v43 = vld [vmem:[%s16489_s1 + $0x7c0] sm:$0xff]  }
 0x2c1   :  { %v10214_v5 = vpack.c.bf16 %v12221_v37, %v12221_v37  ;;  %v3918_v2 = vpop.f32.mrb[189].mxu0  ;;  %v12809_v37 = vld [vmem:[%s16489_s1 + $0x7b0] sm:$0xff]   ;;  %16631 = vst [vmem:[#allocation78_spill] sm:$0xff] %v15330_v22  ;;  %v4994_v25 = vmul.f32 %v10795_v47, %v14633_v55 }
 0x2c2   :  { %v10212_v35 = vpack.c.bf16 %v3918_v2, %v3918_v2  ;;  %v12222_v13 = vpop.f32.mrb[190].mxu0  ;;  %v4993_v60 = vmul.f32 %v10794_v31, %v14627_v26  ;;  %v11465_v47 = vld [vmem:[%s16491_s0 + $0x510] sm:$0xff]  }
 0x2c3   :  { %v10215_v2 = vpack.c.bf16 %v12222_v13, %v12222_v13  ;;  %v3921_v10 = vpop.f32.mrb[191].mxu0  ;;  %4252 = vst.msk [vmem:[%s16492_s4 + $0xf8] sm:$0xf] %vm4189_vm5, %v10214_v5  ;;  %v10926_v13 = vunpack.c.l.bf16 %v11464_v12  ;;  %v10922_v5 = vunpack.c.l.bf16 %v11463_v51  ;;  %v11497_v12 = vld [vmem:[%s16491_s0 + $0x610] sm:$0xff]  }
 0x2c4   :  { %v10213_v45 = vpack.c.bf16 %v3921_v10, %v3921_v10  ;;  %4250 = vst.msk [vmem:[%s16492_s4 + $0xf0] sm:$0xf] %vm4189_vm5, %v10212_v35  ;;  %v15316_v10 = vld [vmem:[%s16491_s0 + $0x418] sm:$0xff]   ;;  %v11055_v35 = vunpack.c.h.bf16 %v11496_v40  ;;  %v11058_v22 = vunpack.c.l.bf16 %v11497_v12 }
 0x2c5   :  { %12464 = vmatmul.mubr.msk.bf16.gmra.mrb[40].mxu0 %vm313_vm2, %v12808_v36  ;;  %4253 = vst.msk [vmem:[%s16492_s4 + $0xfc] sm:$0xf] %vm4189_vm5, %v10215_v2  ;;  %v11050_v36 = vunpack.c.l.bf16 %v11495_v38  ;;  %v4995_v2 = vmul.f32 %v14625_v20, %v10798_v59  ;;  %v10806_v48 = vunpack.c.l.bf16 %v15316_v10  ;;  %v15338_v20 = vpop.f32.mrb[241].mxu1  ;;  %v10807_v26 = vunpack.c.h.bf16 %v15316_v10 }
 0x2c6   :  { %12467 = vmatprep.mubr.msk.bf16.mxu0 %vm313_vm2, %v12809_v37  ;;  %4251 = vst.msk [vmem:[%s16492_s4 + $0xf4] sm:$0xf] %vm4189_vm5, %v10213_v45  ;;  %v10802_v37 = vunpack.c.l.bf16 %v15321_v44  ;;  %v12810_v45 = vld [vmem:[%s16489_s1 + $0x7b8] sm:$0xff]   ;;  %16632 = vst [vmem:[#allocation79_spill] sm:$0xff] %v15338_v20  ;;  %v15352_v40 = vpop.f32.mrb[242].mxu1  ;;  %v10930_v20 = vunpack.c.l.bf16 %v11465_v47 }
 0x2c7   :  { %v6663_v51 = vmul.f32 %v11050_v36, %v14916_v49  ;;  %16633 = vst [vmem:[#allocation80_spill] sm:$0xff] %v15352_v40  ;;  %v6666_v49 = vmul.f32 %v14921_v50, %v11055_v35  ;;  %v11062_v35 = vunpack.c.l.bf16 %v11498_v14 }
 0x2c8   :  { %v12293_v32 = vpop.f32.mrb[192].mxu0 }
 0x2c9   :  { %v5798_v46 = vmul.f32 %v12293_v32, %v10926_v13  ;;  %v5412_v0 = vpop.f32.mrb[193].mxu0  ;;  %v11466_v32 = vld [vmem:[%s16491_s0 + $0x518] sm:$0xff]   ;;  %v15362_v13 = vpop.f32.mrb[243].mxu1 }
 0x2ca   :  { %v5796_v38 = vmul.f32 %v10922_v5, %v5412_v0  ;;  %v12294_v59 = vpop.f32.mrb[194].mxu0  ;;  %v10803_v5 = vunpack.c.h.bf16 %v15321_v44  ;;  %v10934_v50 = vunpack.c.l.bf16 %v11466_v32  ;;  %v4999_v44 = vmul.f32 %v14636_v17, %v10806_v48  ;;  %v15386_v48 = vpop.f32.mrb[244].mxu1 }
 0x2cb   :  { %v5862_v55 = vadd.f32 %v5798_v46, %v4995_v2  ;;  %v5799_v31 = vmul.f32 %v12294_v59, %v10927_v6  ;;  %v5415_v0 = vpop.f32.mrb[195].mxu0  ;;  %v6664_v46 = vmul.f32 %v11051_v41, %v14923_v58  ;;  %v11436_v41 = vld [vmem:[%s16491_s0 + $0x428] sm:$0xff]   ;;  %v11063_v58 = vunpack.c.h.bf16 %v11498_v14 }
 0x2cc   :  { %v5860_v36 = vadd.f32 %v5796_v38, %v4993_v60  ;;  %v5797_v40 = vmul.f32 %v10923_v4, %v5415_v0  ;;  %v10931_v38 = vunpack.c.h.bf16 %v11465_v47  ;;  %v11059_v17 = vunpack.c.h.bf16 %v11497_v12 }
 0x2cd   :  { %v5863_v10 = vadd.f32 %v5799_v31, %v4996_v18  ;;  %v15366_v6 = vadd.f32 %v6665_v54, %v5862_v55  ;;  %12468 = vmatmul.mubr.msk.bf16.gmra.mrb[44].mxu0 %vm313_vm2, %v12810_v45  ;;  %v10935_v54 = vunpack.c.h.bf16 %v11466_v32  ;;  %v4997_v18 = vmul.f32 %v10802_v37, %v14638_v63  ;;  %v15382_v45 = vld [vmem:[%s16491_s0 + $0x420] sm:$0xff]   ;;  %v12813_v37 = vld [vmem:[%s16489_s1 + $0x7c8] sm:$0xff]  }
 0x2ce   :  { %v5861_v2 = vadd.f32 %v5797_v40, %v4994_v25  ;;  %v15369_v59 = vadd.f32 %v6663_v51, %v5860_v36  ;;  %12471 = vmatprep.mubr.msk.bf16.mxu0 %vm313_vm2, %v12812_v43  ;;  %v5000_v51 = vmul.f32 %v14640_v53, %v10807_v26  ;;  %v4998_v43 = vmul.f32 %v10803_v5, %v14645_v23  ;;  %v15394_v40 = vpop.f32.mrb[245].mxu1  ;;  %v11468_v53 = vld [vmem:[%s16491_s0 + $0x528] sm:$0xff]  }
 0x2cf   :  { %v15376_v4 = vadd.f32 %v6666_v49, %v5863_v10  ;;  %v6669_v63 = vmul.f32 %v14943_v16, %v11062_v35  ;;  %v10814_v55 = vunpack.c.l.bf16 %v11436_v41  ;;  %v10815_v31 = vunpack.c.h.bf16 %v11436_v41  ;;  %v11500_v23 = vld [vmem:[%s16491_s0 + $0x628] sm:$0xff]   ;;  %v12814_v16 = vld [vmem:[%s16489_s1 + $0x7d0] sm:$0xff]   ;;  %v15406_v26 = vpop.f32.mrb[246].mxu1 }
 0x2d0   :  { %v15384_v60 = vadd.f32 %v6664_v46, %v5861_v2  ;;  %v12297_v25 = vpop.f32.mrb[196].mxu0  ;;  %v6667_v47 = vmul.f32 %v11058_v22, %v14948_v24  ;;  %v10810_v12 = vunpack.c.l.bf16 %v15382_v45  ;;  %v6670_v22 = vmul.f32 %v14953_v34, %v11063_v58  ;;  %v11467_v24 = vld [vmem:[%s16491_s0 + $0x520] sm:$0xff]   ;;  %v15416_v10 = vpop.f32.mrb[247].mxu1 }
 0x2d1   :  { %v5802_v32 = vmul.f32 %v12297_v25, %v10934_v50  ;;  %v5428_v14 = vpop.f32.mrb[197].mxu0  ;;  %v11499_v46 = vld [vmem:[%s16491_s0 + $0x620] sm:$0xff]   ;;  %v10811_v50 = vunpack.c.h.bf16 %v15382_v45  ;;  %v10942_v34 = vunpack.c.l.bf16 %v11468_v53  ;;  %v11070_v58 = vunpack.c.l.bf16 %v11500_v23  ;;  %v15426_v25 = vld [vmem:[%s16491_s0 + $0x438] sm:$0xff]   ;;  %v15431_v45 = vld [vmem:[%s16491_s0 + $0x430] sm:$0xff]  }
 0x2d2   :  { %v5800_v0 = vmul.f32 %v10930_v20, %v5428_v14  ;;  %v12298_v49 = vpop.f32.mrb[198].mxu0  ;;  %v10943_v14 = vunpack.c.h.bf16 %v11468_v53 }
 0x2d3   :  { %v5866_v20 = vadd.f32 %v5802_v32, %v4999_v44  ;;  %v5803_v5 = vmul.f32 %v12298_v49, %v10935_v54  ;;  %v5431_v36 = vpop.f32.mrb[199].mxu0  ;;  %v6668_v44 = vmul.f32 %v11059_v17, %v14955_v52  ;;  %v10938_v52 = vunpack.c.l.bf16 %v11467_v24 }
 0x2d4   :  { %v5864_v35 = vadd.f32 %v5800_v0, %v4997_v18  ;;  %v5801_v2 = vmul.f32 %v10931_v38, %v5431_v36  ;;  %v11066_v17 = vunpack.c.l.bf16 %v11499_v46  ;;  %v10818_v36 = vunpack.c.l.bf16 %v15431_v45 }
 0x2d5   :  { %v5867_v41 = vadd.f32 %v5803_v5, %v5000_v51  ;;  %v15420_v54 = vadd.f32 %v6669_v63, %v5866_v20  ;;  %12472 = vmatmul.mubr.msk.bf16.gmra.mrb[48].mxu0 %vm313_vm2, %v12813_v37  ;;  %v5003_v51 = vmul.f32 %v14650_v62, %v10814_v55  ;;  %v11071_v63 = vunpack.c.h.bf16 %v11500_v23  ;;  %v12815_v55 = vld [vmem:[%s16489_s1 + $0x7d8] sm:$0xff]  }
 0x2d6   :  { %v5865_v18 = vadd.f32 %v5801_v2, %v4998_v43  ;;  %v15433_v38 = vadd.f32 %v6667_v47, %v5864_v35  ;;  %12475 = vmatprep.mubr.msk.bf16.mxu0 %vm313_vm2, %v12814_v16  ;;  %v5004_v37 = vmul.f32 %v14654_v3, %v10815_v31  ;;  %v10939_v20 = vunpack.c.h.bf16 %v11467_v24  ;;  %v15442_v43 = vpop.f32.mrb[248].mxu1  ;;  %v12816_v2 = vld [vmem:[%s16489_s1 + $0x7e0] sm:$0xff]  }
 0x2d7   :  { %v15437_v32 = vadd.f32 %v6670_v22, %v5867_v41  ;;  %v11067_v5 = vunpack.c.h.bf16 %v11499_v46  ;;  %v10822_v47 = vunpack.c.l.bf16 %v15426_v25  ;;  %v6673_v62 = vmul.f32 %v14975_v56, %v11070_v58  ;;  %v15450_v3 = vpop.f32.mrb[249].mxu1  ;;  %v11470_v46 = vld [vmem:[%s16491_s0 + $0x538] sm:$0xff]   ;;  %v11469_v41 = vld [vmem:[%s16491_s0 + $0x530] sm:$0xff]  }
 0x2d8   :  { %v15440_v0 = vadd.f32 %v6668_v44, %v5865_v18  ;;  %v12301_v49 = vpop.f32.mrb[200].mxu0  ;;  %v5001_v31 = vmul.f32 %v10810_v12, %v14652_v30  ;;  %v5002_v53 = vmul.f32 %v10811_v50, %v14657_v28  ;;  %v6671_v24 = vmul.f32 %v11066_v17, %v14980_v8  ;;  %v11502_v56 = vld [vmem:[%s16491_s0 + $0x638] sm:$0xff]   ;;  %v15464_v44 = vpop.f32.mrb[250].mxu1 }
 0x2d9   :  { %v5806_v16 = vmul.f32 %v12301_v49, %v10942_v34  ;;  %v5444_v35 = vpop.f32.mrb[201].mxu0  ;;  %v10823_v30 = vunpack.c.h.bf16 %v15426_v25  ;;  %v6674_v8 = vmul.f32 %v14985_v57, %v11071_v63  ;;  %v11501_v34 = vld [vmem:[%s16491_s0 + $0x630] sm:$0xff]   ;;  %v15474_v58 = vpop.f32.mrb[251].mxu1  ;;  %v10819_v18 = vunpack.c.h.bf16 %v15431_v45 }
 0x2da   :  { %v5804_v23 = vmul.f32 %v10938_v52, %v5444_v35  ;;  %v12302_v22 = vpop.f32.mrb[202].mxu0  ;;  %v6672_v25 = vmul.f32 %v11067_v5, %v14987_v33  ;;  %v10950_v57 = vunpack.c.l.bf16 %v11470_v46  ;;  %v11078_v63 = vunpack.c.l.bf16 %v11502_v56  ;;  %v11440_v33 = vld [vmem:[%s16491_s0 + $0x448] sm:$0xff]  }
 0x2db   :  { %v5870_v28 = vadd.f32 %v5806_v16, %v5003_v51  ;;  %v5807_v12 = vmul.f32 %v12302_v22, %v10943_v14  ;;  %v5447_v50 = vpop.f32.mrb[203].mxu0  ;;  %v10946_v35 = vunpack.c.l.bf16 %v11469_v41  ;;  %v11074_v22 = vunpack.c.l.bf16 %v11501_v34 }
 0x2dc   :  { %v5868_v52 = vadd.f32 %v5804_v23, %v5001_v31  ;;  %v5805_v17 = vmul.f32 %v10939_v20, %v5447_v50  ;;  %v5007_v45 = vmul.f32 %v14660_v39, %v10822_v47  ;;  %v10951_v20 = vunpack.c.h.bf16 %v11470_v46  ;;  %v15498_v47 = vpop.f32.mrb[252].mxu1 }
 0x2dd   :  { %v5871_v51 = vadd.f32 %v5807_v12, %v5004_v37  ;;  %v15478_v14 = vadd.f32 %v6673_v62, %v5870_v28  ;;  %12476 = vmatmul.mubr.msk.bf16.gmra.mrb[52].mxu0 %vm313_vm2, %v12815_v55  ;;  %v11079_v5 = vunpack.c.h.bf16 %v11502_v56  ;;  %v5005_v62 = vmul.f32 %v10818_v36, %v14662_v29  ;;  %v15494_v55 = vld [vmem:[%s16491_s0 + $0x440] sm:$0xff]   ;;  %v12817_v36 = vld [vmem:[%s16489_s1 + $0x7e8] sm:$0xff]   ;;  %v15506_v28 = vpop.f32.mrb[253].mxu1 }
 0x2de   :  { %v5869_v49 = vadd.f32 %v5805_v17, %v5002_v53  ;;  %v15481_v16 = vadd.f32 %v6671_v24, %v5868_v52  ;;  %12479 = vmatprep.mubr.msk.bf16.mxu0 %vm313_vm2, %v12816_v2  ;;  %v10947_v23 = vunpack.c.h.bf16 %v11469_v41  ;;  %v11075_v39 = vunpack.c.h.bf16 %v11501_v34 }
 0x2df   :  { %v15488_v37 = vadd.f32 %v6674_v8, %v5871_v51  ;;  %v5008_v24 = vmul.f32 %v14664_v19, %v10823_v30  ;;  %v5006_v2 = vmul.f32 %v10819_v18, %v14669_v1  ;;  %v6677_v29 = vmul.f32 %v15007_v7, %v11078_v63  ;;  %v11472_v19 = vld [vmem:[%s16491_s0 + $0x548] sm:$0xff]   ;;  %v12818_v7 = vld [vmem:[%s16489_s1 + $0x7f0] sm:$0xff]   ;;  %v15518_v30 = vpop.f32.mrb[254].mxu1  ;;  %v11471_v51 = vld [vmem:[%s16491_s0 + $0x540] sm:$0xff]  }
 0x2e0   :  { %v15496_v31 = vadd.f32 %v6672_v25, %v5869_v49  ;;  %v12305_v53 = vpop.f32.mrb[204].mxu0  ;;  %v10830_v12 = vunpack.c.l.bf16 %v11440_v33  ;;  %v10831_v50 = vunpack.c.h.bf16 %v11440_v33  ;;  %v6675_v34 = vmul.f32 %v11074_v22, %v15012_v61  ;;  %v11504_v1 = vld [vmem:[%s16491_s0 + $0x648] sm:$0xff]   ;;  %v15528_v63 = vpop.f32.mrb[255].mxu1 }
 0x2e1   :  { %v5810_v46 = vmul.f32 %v12305_v53, %v10950_v57  ;;  %v5460_v56 = vpop.f32.mrb[205].mxu0  ;;  %v10826_v18 = vunpack.c.l.bf16 %v15494_v55  ;;  %v6678_v61 = vmul.f32 %v15017_v11, %v11079_v5  ;;  %v11503_v57 = vld [vmem:[%s16491_s0 + $0x640] sm:$0xff]   ;;  %v10827_v49 = vunpack.c.h.bf16 %v15494_v55  ;;  %v11442_v53 = vld [vmem:[%s16491_s0 + $0x458] sm:$0xff]  }
 0x2e2   :  { %v5808_v8 = vmul.f32 %v10946_v35, %v5460_v56  ;;  %v12306_v41 = vpop.f32.mrb[206].mxu0  ;;  %v10958_v11 = vunpack.c.l.bf16 %v11472_v19  ;;  %v11086_v5 = vunpack.c.l.bf16 %v11504_v1  ;;  %v10959_v56 = vunpack.c.h.bf16 %v11472_v19  ;;  %v16636_v19 = vld [vmem:[#allocation2_spill] sm:$0xff] }
 0x2e3   :  { %v5874_v52 = vadd.f32 %v5810_v46, %v5007_v45  ;;  %v5811_v17 = vmul.f32 %v12306_v41, %v10951_v20  ;;  %v5463_v25 = vpop.f32.mrb[207].mxu0  ;;  %v6676_v45 = vmul.f32 %v11075_v39, %v15019_v21  ;;  %v11441_v46 = vld [vmem:[%s16491_s0 + $0x450] sm:$0xff]   ;;  %v11082_v21 = vunpack.c.l.bf16 %v11503_v57 }
 0x2e4   :  { %v5872_v35 = vadd.f32 %v5808_v8, %v5005_v62  ;;  %v5809_v22 = vmul.f32 %v10947_v23, %v5463_v25  ;;  %v10954_v23 = vunpack.c.l.bf16 %v11471_v51  ;;  %v5011_v39 = vmul.f32 %v14674_v9, %v10830_v12  ;;  %v12819_v9 = vld [vmem:[%s16489_s1 + $0x7f8] sm:$0xff]  }
 0x2e5   :  { %v5875_v33 = vadd.f32 %v5811_v17, %v5008_v24  ;;  %v15532_v20 = vadd.f32 %v6677_v29, %v5874_v52  ;;  %12480 = vmatmul.mubr.msk.bf16.gmra.mrb[56].mxu0 %vm313_vm2, %v12817_v36  ;;  %v11087_v29 = vunpack.c.h.bf16 %v11504_v1  ;;  %v5012_v36 = vmul.f32 %v14678_v42, %v10831_v50 }
 0x2e6   :  { %v5873_v55 = vadd.f32 %v5809_v22, %v5006_v2  ;;  %v15541_v62 = vadd.f32 %v6675_v34, %v5872_v35  ;;  %12483 = vmatprep.mubr.msk.bf16.mxu0 %vm313_vm2, %v12818_v7  ;;  %v10955_v52 = vunpack.c.h.bf16 %v11471_v51  ;;  %v11083_v17 = vunpack.c.h.bf16 %v11503_v57  ;;  %v16637_v7 = vld [vmem:[#allocation47_spill] sm:$0xff]  ;;  %v11474_v51 = vld [vmem:[%s16491_s0 + $0x558] sm:$0xff]  }
 0x2e7   :  { %v15545_v24 = vadd.f32 %v6678_v61, %v5875_v33  ;;  %v10838_v2 = vunpack.c.l.bf16 %v11442_v53  ;;  %v10834_v34 = vunpack.c.l.bf16 %v11441_v46  ;;  %v6681_v22 = vmul.f32 %v15039_v27, %v11086_v5  ;;  %v11506_v27 = vld [vmem:[%s16491_s0 + $0x658] sm:$0xff]   ;;  %v16638_v5 = vld [vmem:[#allocation48_spill] sm:$0xff] }
 0x2e8   :  { %v15548_v8 = vadd.f32 %v6676_v45, %v5873_v55  ;;  %v12309_v41 = vpop.f32.mrb[208].mxu0  ;;  %v5009_v12 = vmul.f32 %v10826_v18, %v14676_v15  ;;  %v5010_v1 = vmul.f32 %v10827_v49, %v16636_v19  ;;  %v6679_v61 = vmul.f32 %v11082_v21, %v16637_v7  ;;  %v11473_v18 = vld [vmem:[%s16491_s0 + $0x550] sm:$0xff]  }
 0x2e9   :  { %16634 = vst [vmem:[#allocation81_spill] sm:$0xff] %v15545_v24  ;;  %v5814_v25 = vmul.f32 %v12309_v41, %v10958_v11  ;;  %v5476_v35 = vpop.f32.mrb[209].mxu0  ;;  %v10839_v57 = vunpack.c.h.bf16 %v11442_v53  ;;  %v6682_v15 = vmul.f32 %v16638_v5, %v11087_v29  ;;  %v11505_v49 = vld [vmem:[%s16491_s0 + $0x650] sm:$0xff]   ;;  %v10835_v55 = vunpack.c.h.bf16 %v11441_v46  ;;  %v16639_v41 = vld [vmem:[#allocation49_spill] sm:$0xff]  ;;  %v16642_v5 = vld [vmem:[#allocation3_spill] sm:$0xff] }
 0x2ea   :  { %16635 = vst [vmem:[#allocation82_spill] sm:$0xff] %v15548_v8  ;;  %v5812_v42 = vmul.f32 %v10954_v23, %v5476_v35  ;;  %v12310_v50 = vpop.f32.mrb[210].mxu0  ;;  %v6680_v35 = vmul.f32 %v11083_v17, %v16639_v41  ;;  %v11090_v7 = vunpack.c.l.bf16 %v11505_v49  ;;  %v5015_v8 = vmul.f32 %v16642_v5, %v10838_v2  ;;  %v11444_v46 = vld [vmem:[%s16491_s0 + $0x468] sm:$0xff]   ;;  %v16646_v2 = vld [vmem:[#allocation5_spill] sm:$0xff]  ;;  %v16648_v41 = vld [vmem:[#allocation50_spill] sm:$0xff] }
 0x2eb   :  { %v5878_v45 = vadd.f32 %v5814_v25, %v5011_v39  ;;  %v5815_v33 = vmul.f32 %v12310_v50, %v10959_v56  ;;  %v5479_v11 = vpop.f32.mrb[211].mxu0  ;;  %v10966_v39 = vunpack.c.l.bf16 %v11474_v51  ;;  %v11094_v56 = vunpack.c.l.bf16 %v11506_v27 }
 0x2ec   :  { %v5876_v23 = vadd.f32 %v5812_v42, %v5009_v12  ;;  %v5813_v21 = vmul.f32 %v10955_v52, %v5479_v11  ;;  %v10962_v50 = vunpack.c.l.bf16 %v11473_v18  ;;  %v11095_v17 = vunpack.c.h.bf16 %v11506_v27  ;;  %v16647_v11 = vld [vmem:[#allocation6_spill] sm:$0xff] }
 0x2ed   :  { %v5879_v19 = vadd.f32 %v5815_v33, %v5012_v36  ;;  %v15571_v53 = vadd.f32 %v6681_v22, %v5878_v45  ;;  %12484 = vmatmul.mubr.msk.bf16.gmra.mrb[60].mxu0 %vm313_vm2, %v12819_v9  ;;  %v10967_v36 = vunpack.c.h.bf16 %v11474_v51  ;;  %v16644_v22 = vld [vmem:[#allocation4_spill] sm:$0xff]  ;;  %v11443_v9 = vld [vmem:[%s16491_s0 + $0x460] sm:$0xff]   ;;  %v11091_v45 = vunpack.c.h.bf16 %v11505_v49 }
 0x2ee   :  { %v5877_v29 = vadd.f32 %v5813_v21, %v5010_v1  ;;  %v15574_v25 = vadd.f32 %v6679_v61, %v5876_v23  ;;  %v5013_v12 = vmul.f32 %v10834_v34, %v16644_v22  ;;  %v10963_v61 = vunpack.c.h.bf16 %v11473_v18  ;;  %v16649_v22 = vld [vmem:[#allocation51_spill] sm:$0xff] }
 0x2ef   :  { %16640 = vst [vmem:[#allocation2_spill] sm:$0xff] %v15571_v53  ;;  %v15580_v52 = vadd.f32 %v6682_v15, %v5879_v19  ;;  %v5016_v33 = vmul.f32 %v16646_v2, %v10839_v57  ;;  %v5014_v23 = vmul.f32 %v10835_v55, %v16647_v11  ;;  %v6685_v51 = vmul.f32 %v16648_v41, %v11094_v56  ;;  %v11508_v57 = vld [vmem:[%s16491_s0 + $0x668] sm:$0xff]   ;;  %v16651_v11 = vld [vmem:[#allocation53_spill] sm:$0xff] }
 0x2f0   :  { %16641 = vst [vmem:[#allocation47_spill] sm:$0xff] %v15574_v25  ;;  %v15586_v1 = vadd.f32 %v6680_v35, %v5877_v29  ;;  %v12313_v42 = vpop.f32.mrb[212].mxu0  ;;  %v10846_v27 = vunpack.c.l.bf16 %v11444_v46  ;;  %v10847_v19 = vunpack.c.h.bf16 %v11444_v46  ;;  %v11476_v35 = vld [vmem:[%s16491_s0 + $0x568] sm:$0xff]   ;;  %v10842_v18 = vunpack.c.l.bf16 %v11443_v9  ;;  %v16650_v29 = vld [vmem:[#allocation52_spill] sm:$0xff] }
 0x2f1   :  { %16643 = vst [vmem:[#allocation48_spill] sm:$0xff] %v15580_v52  ;;  %v5818_v21 = vmul.f32 %v12313_v42, %v10966_v39  ;;  %v5492_v15 = vpop.f32.mrb[213].mxu0  ;;  %v6683_v52 = vmul.f32 %v11090_v7, %v16649_v22  ;;  %v6686_v56 = vmul.f32 %v16650_v29, %v11095_v17  ;;  %v11507_v7 = vld [vmem:[%s16491_s0 + $0x660] sm:$0xff]   ;;  %v10843_v46 = vunpack.c.h.bf16 %v11443_v9  ;;  %v11446_v17 = vld [vmem:[%s16491_s0 + $0x478] sm:$0xff]  }
 0x2f2   :  { %16645 = vst [vmem:[#allocation49_spill] sm:$0xff] %v15586_v1  ;;  %v5816_v34 = vmul.f32 %v10962_v50, %v5492_v15  ;;  %v12314_v5 = vpop.f32.mrb[214].mxu0  ;;  %v11475_v50 = vld [vmem:[%s16491_s0 + $0x560] sm:$0xff]   ;;  %v6684_v15 = vmul.f32 %v11091_v45, %v16651_v11  ;;  %v11098_v9 = vunpack.c.l.bf16 %v11507_v7  ;;  %v11099_v1 = vunpack.c.h.bf16 %v11507_v7 }
 0x2f3   :  { %v5882_v49 = vadd.f32 %v5818_v21, %v5015_v8  ;;  %v5819_v55 = vmul.f32 %v12314_v5, %v10967_v36  ;;  %v5495_v39 = vpop.f32.mrb[215].mxu0  ;;  %v10974_v8 = vunpack.c.l.bf16 %v11476_v35  ;;  %v11102_v36 = vunpack.c.l.bf16 %v11508_v57  ;;  %v11445_v21 = vld [vmem:[%s16491_s0 + $0x470] sm:$0xff]  }
 0x2f4   :  { %v5880_v42 = vadd.f32 %v5816_v34, %v5013_v12  ;;  %v5817_v2 = vmul.f32 %v10963_v61, %v5495_v39  ;;  %v10970_v12 = vunpack.c.l.bf16 %v11475_v50  ;;  %v16654_v61 = vld [vmem:[#allocation7_spill] sm:$0xff]  ;;  %v11103_v34 = vunpack.c.h.bf16 %v11508_v57 }
 0x2f5   :  { %v5883_v41 = vadd.f32 %v5819_v55, %v5016_v33  ;;  %v15606_v22 = vadd.f32 %v6685_v51, %v5882_v49  ;;  %v5019_v45 = vmul.f32 %v16654_v61, %v10846_v27  ;;  %v10975_v51 = vunpack.c.h.bf16 %v11476_v35  ;;  %v16656_v49 = vld [vmem:[#allocation9_spill] sm:$0xff]  ;;  %v16660_v27 = vld [vmem:[#allocation10_spill] sm:$0xff]  ;;  %v16661_v57 = vld [vmem:[#allocation55_spill] sm:$0xff] }
 0x2f6   :  { %v5881_v5 = vadd.f32 %v5817_v2, %v5014_v23  ;;  %v15614_v29 = vadd.f32 %v6683_v52, %v5880_v42  ;;  %v5020_v55 = vmul.f32 %v16656_v49, %v10847_v19  ;;  %v10854_v25 = vunpack.c.l.bf16 %v11446_v17  ;;  %v16658_v42 = vld [vmem:[#allocation54_spill] sm:$0xff]  ;;  %v11478_v19 = vld [vmem:[%s16491_s0 + $0x578] sm:$0xff]  }
 0x2f7   :  { %16652 = vst [vmem:[#allocation3_spill] sm:$0xff] %v15606_v22  ;;  %v15617_v33 = vadd.f32 %v6686_v56, %v5883_v41  ;;  %v10971_v22 = vunpack.c.h.bf16 %v11475_v50  ;;  %v10850_v53 = vunpack.c.l.bf16 %v11445_v21  ;;  %v6689_v2 = vmul.f32 %v16658_v42, %v11102_v36  ;;  %v11510_v50 = vld [vmem:[%s16491_s0 + $0x678] sm:$0xff]  }
 0x2f8   :  { %16653 = vst [vmem:[#allocation4_spill] sm:$0xff] %v15614_v29  ;;  %v15620_v39 = vadd.f32 %v6684_v15, %v5881_v5  ;;  %v12317_v11 = vpop.f32.mrb[216].mxu0  ;;  %v16659_v29 = vld [vmem:[#allocation8_spill] sm:$0xff]  ;;  %v5018_v56 = vmul.f32 %v10843_v46, %v16660_v27  ;;  %v6687_v61 = vmul.f32 %v11098_v9, %v16661_v57  ;;  %v10855_v7 = vunpack.c.h.bf16 %v11446_v17  ;;  %v16666_v57 = vld [vmem:[#allocation11_spill] sm:$0xff] }
 0x2f9   :  { %16655 = vst [vmem:[#allocation5_spill] sm:$0xff] %v15617_v33  ;;  %v5822_v23 = vmul.f32 %v12317_v11, %v10974_v8  ;;  %v5508_v52 = vpop.f32.mrb[217].mxu0  ;;  %v5017_v24 = vmul.f32 %v10842_v18, %v16659_v29  ;;  %v16662_v5 = vld [vmem:[#allocation56_spill] sm:$0xff]  ;;  %v16663_v11 = vld [vmem:[#allocation57_spill] sm:$0xff] }
 0x2fa   :  { %16657 = vst [vmem:[#allocation6_spill] sm:$0xff] %v15620_v39  ;;  %v5820_v41 = vmul.f32 %v10970_v12, %v5508_v52  ;;  %v12318_v35 = vpop.f32.mrb[218].mxu0  ;;  %v6690_v18 = vmul.f32 %v16662_v5, %v11103_v34  ;;  %v11477_v46 = vld [vmem:[%s16491_s0 + $0x570] sm:$0xff]   ;;  %v10851_v12 = vunpack.c.h.bf16 %v11445_v21  ;;  %v6688_v52 = vmul.f32 %v11099_v1, %v16663_v11  ;;  %v11448_v21 = vld [vmem:[%s16491_s0 + $0x488] sm:$0xff]  }
 0x2fb   :  { %v5886_v15 = vadd.f32 %v5822_v23, %v5019_v45  ;;  %v5823_v8 = vmul.f32 %v12318_v35, %v10975_v51  ;;  %v5511_v36 = vpop.f32.mrb[219].mxu0  ;;  %v11509_v29 = vld [vmem:[%s16491_s0 + $0x670] sm:$0xff]   ;;  %v10982_v45 = vunpack.c.l.bf16 %v11478_v19  ;;  %v11110_v51 = vunpack.c.l.bf16 %v11510_v50 }
 0x2fc   :  { %v5884_v9 = vadd.f32 %v5820_v41, %v5017_v24  ;;  %v5821_v49 = vmul.f32 %v10971_v22, %v5511_v36  ;;  %v10978_v27 = vunpack.c.l.bf16 %v11477_v46  ;;  %v11106_v35 = vunpack.c.l.bf16 %v11509_v29 }
 0x2fd   :  { %v5887_v42 = vadd.f32 %v5823_v8, %v5020_v55  ;;  %v15640_v17 = vadd.f32 %v6689_v2, %v5886_v15  ;;  %v5023_v5 = vmul.f32 %v16666_v57, %v10854_v25  ;;  %v10983_v22 = vunpack.c.h.bf16 %v11478_v19  ;;  %v16668_v55 = vld [vmem:[#allocation12_spill] sm:$0xff]  ;;  %v16670_v25 = vld [vmem:[#allocation13_spill] sm:$0xff] }
 0x2fe   :  { %v5885_v23 = vadd.f32 %v5821_v49, %v5018_v56  ;;  %v15642_v34 = vadd.f32 %v6687_v61, %v5884_v9  ;;  %v11111_v1 = vunpack.c.h.bf16 %v11510_v50  ;;  %v5021_v2 = vmul.f32 %v10850_v53, %v16668_v55  ;;  %v11447_v56 = vld [vmem:[%s16491_s0 + $0x480] sm:$0xff]  }
 0x2ff   :  { %16664 = vst [vmem:[#allocation50_spill] sm:$0xff] %v15640_v17  ;;  %v15648_v24 = vadd.f32 %v6690_v18, %v5887_v42  ;;  %v10979_v15 = vunpack.c.h.bf16 %v11477_v46  ;;  %v11107_v8 = vunpack.c.h.bf16 %v11509_v29  ;;  %v5024_v36 = vmul.f32 %v16670_v25, %v10855_v7  ;;  %v16671_v9 = vld [vmem:[#allocation14_spill] sm:$0xff]  ;;  %v11512_v7 = vld [vmem:[%s16491_s0 + $0x688] sm:$0xff]   ;;  %v16675_v25 = vld [vmem:[#allocation61_spill] sm:$0xff] }
 0x300   :  { %16665 = vst [vmem:[#allocation51_spill] sm:$0xff] %v15642_v34  ;;  %v15654_v41 = vadd.f32 %v6688_v52, %v5885_v23  ;;  %v12321_v61 = vpop.f32.mrb[220].mxu0  ;;  %v5022_v49 = vmul.f32 %v10851_v12, %v16671_v9  ;;  %v16672_v42 = vld [vmem:[#allocation58_spill] sm:$0xff]  ;;  %v10862_v50 = vunpack.c.l.bf16 %v11448_v21  ;;  %v10863_v57 = vunpack.c.h.bf16 %v11448_v21  ;;  %v11480_v52 = vld [vmem:[%s16491_s0 + $0x588] sm:$0xff]   ;;  %v16674_v23 = vld [vmem:[#allocation60_spill] sm:$0xff] }
 0x301   :  { %16667 = vst [vmem:[#allocation52_spill] sm:$0xff] %v15648_v24  ;;  %v5826_v11 = vmul.f32 %v12321_v61, %v10982_v45  ;;  %v5524_v18 = vpop.f32.mrb[221].mxu0  ;;  %v6693_v19 = vmul.f32 %v16672_v42, %v11110_v51  ;;  %v16673_v24 = vld [vmem:[#allocation59_spill] sm:$0xff]  ;;  %v10858_v46 = vunpack.c.l.bf16 %v11447_v56  ;;  %v6694_v51 = vmul.f32 %v16674_v23, %v11111_v1  ;;  %v11450_v1 = vld [vmem:[%s16491_s0 + $0x498] sm:$0xff]  }
 0x302   :  { %16669 = vst [vmem:[#allocation53_spill] sm:$0xff] %v15654_v41  ;;  %v5824_v53 = vmul.f32 %v10978_v27, %v5524_v18  ;;  %v12322_v55 = vpop.f32.mrb[222].mxu0  ;;  %v6691_v34 = vmul.f32 %v11106_v35, %v16673_v24  ;;  %v11479_v27 = vld [vmem:[%s16491_s0 + $0x580] sm:$0xff]   ;;  %v10859_v21 = vunpack.c.h.bf16 %v11447_v56  ;;  %v6692_v9 = vmul.f32 %v11107_v8, %v16675_v25 }
 0x303   :  { %v5890_v29 = vadd.f32 %v5826_v11, %v5023_v5  ;;  %v5827_v12 = vmul.f32 %v12322_v55, %v10983_v22  ;;  %v5527_v45 = vpop.f32.mrb[223].mxu0  ;;  %v11511_v35 = vld [vmem:[%s16491_s0 + $0x680] sm:$0xff]   ;;  %v10990_v5 = vunpack.c.l.bf16 %v11480_v52  ;;  %v11118_v22 = vunpack.c.l.bf16 %v11512_v7  ;;  %v11449_v11 = vld [vmem:[%s16491_s0 + $0x490] sm:$0xff]  }
 0x304   :  { %v5888_v24 = vadd.f32 %v5824_v53, %v5021_v2  ;;  %v5825_v61 = vmul.f32 %v10979_v15, %v5527_v45  ;;  %v10986_v2 = vunpack.c.l.bf16 %v11479_v27  ;;  %v11114_v56 = vunpack.c.l.bf16 %v11511_v35  ;;  %v16678_v15 = vld [vmem:[#allocation15_spill] sm:$0xff] }
 0x305   :  { %v5891_v18 = vadd.f32 %v5827_v12, %v5024_v36  ;;  %v15674_v42 = vadd.f32 %v6693_v19, %v5890_v29  ;;  %v5027_v8 = vmul.f32 %v16678_v15, %v10862_v50  ;;  %v10991_v19 = vunpack.c.h.bf16 %v11480_v52  ;;  %v16679_v29 = vld [vmem:[#allocation17_spill] sm:$0xff]  ;;  %v16683_v50 = vld [vmem:[#allocation18_spill] sm:$0xff] }
 0x306   :  { %v5889_v55 = vadd.f32 %v5825_v61, %v5022_v49  ;;  %v15682_v23 = vadd.f32 %v6691_v34, %v5888_v24  ;;  %v11119_v53 = vunpack.c.h.bf16 %v11512_v7  ;;  %v5028_v12 = vmul.f32 %v16679_v29, %v10863_v57  ;;  %v16681_v24 = vld [vmem:[#allocation62_spill] sm:$0xff]  ;;  %v16684_v7 = vld [vmem:[#allocation63_spill] sm:$0xff]  ;;  %v11482_v57 = vld [vmem:[%s16491_s0 + $0x598] sm:$0xff]  }
 0x307   :  { %16676 = vst [vmem:[#allocation7_spill] sm:$0xff] %v15674_v42  ;;  %v15685_v36 = vadd.f32 %v6694_v51, %v5891_v18  ;;  %v10987_v42 = vunpack.c.h.bf16 %v11479_v27  ;;  %v11115_v41 = vunpack.c.h.bf16 %v11511_v35  ;;  %v10870_v17 = vunpack.c.l.bf16 %v11450_v1  ;;  %v11514_v27 = vld [vmem:[%s16491_s0 + $0x698] sm:$0xff]  }
 0x308   :  { %16677 = vst [vmem:[#allocation9_spill] sm:$0xff] %v15682_v23  ;;  %v15688_v45 = vadd.f32 %v6692_v9, %v5889_v55  ;;  %v12325_v25 = vpop.f32.mrb[224].mxu0  ;;  %v10866_v39 = vunpack.c.l.bf16 %v11449_v11  ;;  %v6697_v61 = vmul.f32 %v16681_v24, %v11118_v22  ;;  %v16682_v23 = vld [vmem:[#allocation16_spill] sm:$0xff]  ;;  %v5026_v51 = vmul.f32 %v10859_v21, %v16683_v50 }
 0x309   :  { %v5830_v49 = vmul.f32 %v12325_v25, %v10990_v5  ;;  %v5540_v34 = vpop.f32.mrb[225].mxu0  ;;  %v5025_v33 = vmul.f32 %v10858_v46, %v16682_v23  ;;  %v6695_v15 = vmul.f32 %v11114_v56, %v16684_v7  ;;  %v10871_v35 = vunpack.c.h.bf16 %v11450_v1  ;;  %v16685_v55 = vld [vmem:[#allocation64_spill] sm:$0xff]  ;;  %v16686_v25 = vld [vmem:[#allocation65_spill] sm:$0xff] }
 0x30a   :  { %16680 = vst [vmem:[#allocation54_spill] sm:$0xff] %v15688_v45  ;;  %v5828_v18 = vmul.f32 %v10986_v2, %v5540_v34  ;;  %v12326_v52 = vpop.f32.mrb[226].mxu0  ;;  %v6698_v46 = vmul.f32 %v16685_v55, %v11119_v53  ;;  %v11481_v21 = vld [vmem:[%s16491_s0 + $0x590] sm:$0xff]   ;;  %v10867_v2 = vunpack.c.h.bf16 %v11449_v11  ;;  %v6696_v34 = vmul.f32 %v11115_v41, %v16686_v25 }
 0x30b   :  { %v5894_v9 = vadd.f32 %v5830_v49, %v5027_v8  ;;  %v5831_v5 = vmul.f32 %v12326_v52, %v10991_v19  ;;  %v5543_v22 = vpop.f32.mrb[227].mxu0  ;;  %v11513_v23 = vld [vmem:[%s16491_s0 + $0x690] sm:$0xff]   ;;  %v10998_v8 = vunpack.c.l.bf16 %v11482_v57  ;;  %v11126_v19 = vunpack.c.l.bf16 %v11514_v27 }
 0x30c   :  { %v5892_v56 = vadd.f32 %v5828_v18, %v5025_v33  ;;  %v5829_v29 = vmul.f32 %v10987_v42, %v5543_v22  ;;  %v10994_v50 = vunpack.c.l.bf16 %v11481_v21  ;;  %v11122_v52 = vunpack.c.l.bf16 %v11513_v23  ;;  %v11452_v33 = vld [vmem:[%s16491_s0 + $0x4a8] sm:$0xff]  }
 0x30d   :  { %v5895_v24 = vadd.f32 %v5831_v5, %v5028_v12  ;;  %v15708_v1 = vadd.f32 %v6697_v61, %v5894_v9  ;;  %v10999_v55 = vunpack.c.h.bf16 %v11482_v57  ;;  %v11127_v45 = vunpack.c.h.bf16 %v11514_v27  ;;  %v16690_v61 = vld [vmem:[#allocation19_spill] sm:$0xff]  ;;  %v11451_v9 = vld [vmem:[%s16491_s0 + $0x4a0] sm:$0xff]  }
 0x30e   :  { %v5893_v49 = vadd.f32 %v5829_v29, %v5026_v51  ;;  %v15710_v53 = vadd.f32 %v6695_v15, %v5892_v56  ;;  %v10995_v11 = vunpack.c.h.bf16 %v11481_v21  ;;  %v11123_v12 = vunpack.c.h.bf16 %v11513_v23  ;;  %v16691_v51 = vld [vmem:[#allocation20_spill] sm:$0xff]  ;;  %v16692_v27 = vld [vmem:[#allocation66_spill] sm:$0xff]  ;;  %v16695_v21 = vld [vmem:[#allocation67_spill] sm:$0xff] }
 0x30f   :  { %v15712_v7 = vadd.f32 %v6698_v46, %v5895_v24  ;;  %v5031_v18 = vmul.f32 %v16690_v61, %v10870_v17  ;;  %v5029_v15 = vmul.f32 %v10866_v39, %v16691_v51  ;;  %v6701_v22 = vmul.f32 %v16692_v27, %v11126_v19  ;;  %v16693_v46 = vld [vmem:[#allocation21_spill] sm:$0xff]  ;;  %v16694_v29 = vld [vmem:[#allocation22_spill] sm:$0xff]  ;;  %v11484_v39 = vld [vmem:[%s16491_s0 + $0x5a8] sm:$0xff]  }
 0x310   :  { %16687 = vst [vmem:[#allocation8_spill] sm:$0xff] %v15710_v53  ;;  %v15717_v42 = vadd.f32 %v6696_v34, %v5893_v49  ;;  %v12329_v41 = vpop.f32.mrb[228].mxu0  ;;  %v5032_v56 = vmul.f32 %v16693_v46, %v10871_v35  ;;  %v5030_v25 = vmul.f32 %v10867_v2, %v16694_v29  ;;  %v6699_v23 = vmul.f32 %v11122_v52, %v16695_v21  ;;  %v11516_v17 = vld [vmem:[%s16491_s0 + $0x6a8] sm:$0xff]   ;;  %v16696_v61 = vld [vmem:[#allocation68_spill] sm:$0xff]  ;;  %v11483_v2 = vld [vmem:[%s16491_s0 + $0x5a0] sm:$0xff]  }
 0x311   :  { %16688 = vst [vmem:[#allocation10_spill] sm:$0xff] %v15712_v7  ;;  %v5834_v5 = vmul.f32 %v12329_v41, %v10998_v8  ;;  %v5556_v57 = vpop.f32.mrb[229].mxu0  ;;  %v10878_v8 = vunpack.c.l.bf16 %v11452_v33  ;;  %v6702_v35 = vmul.f32 %v16696_v61, %v11127_v45  ;;  %v10874_v52 = vunpack.c.l.bf16 %v11451_v9  ;;  %v16697_v27 = vld [vmem:[#allocation69_spill] sm:$0xff] }
 0x312   :  { %16689 = vst [vmem:[#allocation55_spill] sm:$0xff] %v15717_v42  ;;  %v5832_v34 = vmul.f32 %v10994_v50, %v5556_v57  ;;  %v12330_v24 = vpop.f32.mrb[230].mxu0  ;;  %v11515_v50 = vld [vmem:[%s16491_s0 + $0x6a0] sm:$0xff]   ;;  %v6700_v46 = vmul.f32 %v11123_v12, %v16697_v27  ;;  %v15747_v45 = vld [vmem:[%s16491_s0 + $0x4b8] sm:$0xff]   ;;  %v11002_v61 = vunpack.c.l.bf16 %v11483_v2  ;;  %v10879_v7 = vunpack.c.h.bf16 %v11452_v33 }
 0x313   :  { %v5898_v49 = vadd.f32 %v5834_v5, %v5031_v18  ;;  %v5835_v41 = vmul.f32 %v12330_v24, %v10999_v55  ;;  %v5559_v19 = vpop.f32.mrb[231].mxu0  ;;  %v11006_v55 = vunpack.c.l.bf16 %v11484_v39  ;;  %v11134_v18 = vunpack.c.l.bf16 %v11516_v17  ;;  %v16703_v27 = vld [vmem:[#allocation70_spill] sm:$0xff] }
 0x314   :  { %v5896_v51 = vadd.f32 %v5832_v34, %v5029_v15  ;;  %v5833_v57 = vmul.f32 %v10995_v11, %v5559_v19  ;;  %v11130_v42 = vunpack.c.l.bf16 %v11515_v50  ;;  %v15754_v11 = vld [vmem:[%s16491_s0 + $0x4b0] sm:$0xff]   ;;  %v11007_v15 = vunpack.c.h.bf16 %v11484_v39 }
 0x315   :  { %v5899_v29 = vadd.f32 %v5835_v41, %v5032_v56  ;;  %v15742_v21 = vadd.f32 %v6701_v22, %v5898_v49  ;;  %v11135_v22 = vunpack.c.h.bf16 %v11516_v17  ;;  %v10875_v56 = vunpack.c.h.bf16 %v11451_v9  ;;  %v16705_v9 = vld [vmem:[#allocation71_spill] sm:$0xff] }
 0x316   :  { %v5897_v5 = vadd.f32 %v5833_v57, %v5030_v25  ;;  %v15749_v24 = vadd.f32 %v6699_v23, %v5896_v51  ;;  %v11003_v41 = vunpack.c.h.bf16 %v11483_v2  ;;  %v11131_v25 = vunpack.c.h.bf16 %v11515_v50  ;;  %v16702_v23 = vld [vmem:[#allocation23_spill] sm:$0xff]  ;;  %v11486_v2 = vld [vmem:[%s16491_s0 + $0x5b8] sm:$0xff]  }
 0x317   :  { %16698 = vst [vmem:[#allocation56_spill] sm:$0xff] %v15742_v21  ;;  %v15756_v12 = vadd.f32 %v6702_v35, %v5899_v29  ;;  %v5035_v19 = vmul.f32 %v16702_v23, %v10878_v8  ;;  %v10886_v51 = vunpack.c.l.bf16 %v15747_v45  ;;  %v16704_v21 = vld [vmem:[#allocation24_spill] sm:$0xff]  ;;  %v10882_v35 = vunpack.c.l.bf16 %v15754_v11  ;;  %v11518_v8 = vld [vmem:[%s16491_s0 + $0x6b8] sm:$0xff]  }
 0x318   :  { %16699 = vst [vmem:[#allocation57_spill] sm:$0xff] %v15749_v24  ;;  %v15758_v34 = vadd.f32 %v6700_v46, %v5897_v5  ;;  %v12333_v49 = vpop.f32.mrb[232].mxu0  ;;  %v6705_v24 = vmul.f32 %v16703_v27, %v11134_v18  ;;  %v5033_v53 = vmul.f32 %v10874_v52, %v16704_v21  ;;  %v6703_v46 = vmul.f32 %v11130_v42, %v16705_v9  ;;  %v16706_v50 = vld [vmem:[#allocation25_spill] sm:$0xff]  ;;  %v16707_v52 = vld [vmem:[#allocation72_spill] sm:$0xff] }
 0x319   :  { %16700 = vst [vmem:[#allocation11_spill] sm:$0xff] %v15756_v12  ;;  %v5838_v33 = vmul.f32 %v12333_v49, %v11006_v55  ;;  %v5572_v57 = vpop.f32.mrb[233].mxu0  ;;  %v5036_v29 = vmul.f32 %v16706_v50, %v10879_v7  ;;  %v6706_v21 = vmul.f32 %v16707_v52, %v11135_v22  ;;  %v11517_v42 = vld [vmem:[%s16491_s0 + $0x6b0] sm:$0xff]   ;;  %v16708_v49 = vld [vmem:[#allocation26_spill] sm:$0xff]  ;;  %v16709_v9 = vld [vmem:[#allocation73_spill] sm:$0xff] }
 0x31a   :  { %16701 = vst [vmem:[#allocation12_spill] sm:$0xff] %v15758_v34  ;;  %v5836_v39 = vmul.f32 %v11002_v61, %v5572_v57  ;;  %v12334_v17 = vpop.f32.mrb[234].mxu0  ;;  %v11485_v61 = vld [vmem:[%s16491_s0 + $0x5b0] sm:$0xff]   ;;  %v5034_v23 = vmul.f32 %v10875_v56, %v16708_v49  ;;  %v6704_v34 = vmul.f32 %v11131_v25, %v16709_v9  ;;  %v15787_v22 = vld [vmem:[%s16491_s0 + $0x4c8] sm:$0xff]   ;;  %v11138_v12 = vunpack.c.l.bf16 %v11517_v42  ;;  %v15795_v56 = vld [vmem:[%s16491_s0 + $0x4c0] sm:$0xff]  }
 0x31b   :  { %v5902_v55 = vadd.f32 %v5838_v33, %v5035_v19  ;;  %v5839_v18 = vmul.f32 %v12334_v17, %v11007_v15  ;;  %v5575_v5 = vpop.f32.mrb[235].mxu0  ;;  %v11014_v15 = vunpack.c.l.bf16 %v11486_v2  ;;  %v11142_v33 = vunpack.c.l.bf16 %v11518_v8 }
 0x31c   :  { %v5900_v57 = vadd.f32 %v5836_v39, %v5033_v53  ;;  %v5837_v27 = vmul.f32 %v11003_v41, %v5575_v5  ;;  %v11010_v52 = vunpack.c.l.bf16 %v11485_v61  ;;  %v10887_v53 = vunpack.c.h.bf16 %v15747_v45  ;;  %v16714_v5 = vld [vmem:[#allocation27_spill] sm:$0xff] }
 0x31d   :  { %v5903_v7 = vadd.f32 %v5839_v18, %v5036_v29  ;;  %v15782_v19 = vadd.f32 %v6705_v24, %v5902_v55  ;;  %v11015_v41 = vunpack.c.h.bf16 %v11486_v2  ;;  %v11143_v25 = vunpack.c.h.bf16 %v11518_v8 }
 0x31e   :  { %v5901_v17 = vadd.f32 %v5837_v27, %v5034_v23  ;;  %v15789_v50 = vadd.f32 %v6703_v46, %v5900_v57  ;;  %v10883_v39 = vunpack.c.h.bf16 %v15754_v11  ;;  %v11011_v46 = vunpack.c.h.bf16 %v11485_v61  ;;  %v16715_v27 = vld [vmem:[#allocation74_spill] sm:$0xff]  ;;  %v16717_v11 = vld [vmem:[#allocation75_spill] sm:$0xff] }
 0x31f   :  { %16710 = vst [vmem:[#allocation13_spill] sm:$0xff] %v15782_v19  ;;  %v15797_v24 = vadd.f32 %v6706_v21, %v5903_v7  ;;  %v11139_v18 = vunpack.c.h.bf16 %v11517_v42  ;;  %v5039_v49 = vmul.f32 %v16714_v5, %v10886_v51  ;;  %v10894_v45 = vunpack.c.l.bf16 %v15787_v22  ;;  %v11488_v61 = vld [vmem:[%s16491_s0 + $0x5c8] sm:$0xff]   ;;  %v16718_v42 = vld [vmem:[#allocation29_spill] sm:$0xff]  ;;  %v16720_v5 = vld [vmem:[#allocation30_spill] sm:$0xff] }
 0x320   :  { %16711 = vst [vmem:[#allocation14_spill] sm:$0xff] %v15789_v50  ;;  %v15800_v29 = vadd.f32 %v6704_v34, %v5901_v17  ;;  %v12337_v55 = vpop.f32.mrb[236].mxu0  ;;  %v6709_v9 = vmul.f32 %v16715_v27, %v11142_v33  ;;  %v16716_v50 = vld [vmem:[#allocation28_spill] sm:$0xff]  ;;  %v10890_v2 = vunpack.c.l.bf16 %v15795_v56  ;;  %v6707_v34 = vmul.f32 %v11138_v12, %v16717_v11  ;;  %v11520_v51 = vld [vmem:[%s16491_s0 + $0x6c8] sm:$0xff]   ;;  %v11519_v12 = vld [vmem:[%s16491_s0 + $0x6c0] sm:$0xff]  }
 0x321   :  { %16712 = vst [vmem:[#allocation58_spill] sm:$0xff] %v15797_v24  ;;  %v5842_v23 = vmul.f32 %v12337_v55, %v11014_v15  ;;  %v5588_v57 = vpop.f32.mrb[237].mxu0  ;;  %v5037_v21 = vmul.f32 %v10882_v35, %v16716_v50  ;;  %v5040_v15 = vmul.f32 %v16718_v42, %v10887_v53  ;;  %v16719_v35 = vld [vmem:[#allocation76_spill] sm:$0xff]  ;;  %v11146_v19 = vunpack.c.l.bf16 %v11519_v12 }
 0x322   :  { %16713 = vst [vmem:[#allocation59_spill] sm:$0xff] %v15800_v29  ;;  %v5840_v8 = vmul.f32 %v11010_v52, %v5588_v57  ;;  %v12338_v7 = vpop.f32.mrb[238].mxu0  ;;  %v6710_v50 = vmul.f32 %v16719_v35, %v11143_v25  ;;  %v11487_v52 = vld [vmem:[%s16491_s0 + $0x5c0] sm:$0xff]   ;;  %v5038_v57 = vmul.f32 %v10883_v39, %v16720_v5  ;;  %v16721_v29 = vld [vmem:[#allocation77_spill] sm:$0xff]  ;;  %v10895_v39 = vunpack.c.h.bf16 %v15787_v22 }
 0x323   :  { %v5906_v17 = vadd.f32 %v5842_v23, %v5039_v49  ;;  %v5843_v33 = vmul.f32 %v12338_v7, %v11015_v41  ;;  %v5591_v55 = vpop.f32.mrb[239].mxu0  ;;  %v6708_v24 = vmul.f32 %v11139_v18, %v16721_v29  ;;  %v11022_v41 = vunpack.c.l.bf16 %v11488_v61  ;;  %v15829_v25 = vld [vmem:[%s16491_s0 + $0x4d8] sm:$0xff]   ;;  %v15837_v29 = vld [vmem:[%s16491_s0 + $0x4d0] sm:$0xff]  }
 0x324   :  { %v5904_v27 = vadd.f32 %v5840_v8, %v5037_v21  ;;  %v5841_v11 = vmul.f32 %v11011_v46, %v5591_v55  ;;  %v11150_v23 = vunpack.c.l.bf16 %v11520_v51  ;;  %v11018_v35 = vunpack.c.l.bf16 %v11487_v52 }
 0x325   :  { %v5907_v53 = vadd.f32 %v5843_v33, %v5040_v15  ;;  %v15824_v49 = vadd.f32 %v6709_v9, %v5906_v17  ;;  %v11023_v18 = vunpack.c.h.bf16 %v11488_v61  ;;  %v11151_v9 = vunpack.c.h.bf16 %v11520_v51  ;;  %v16725_v33 = vld [vmem:[#allocation31_spill] sm:$0xff] }
 0x326   :  { %v5905_v7 = vadd.f32 %v5841_v11, %v5038_v57  ;;  %v15831_v42 = vadd.f32 %v6707_v34, %v5904_v27  ;;  %v10891_v21 = vunpack.c.h.bf16 %v15795_v56  ;;  %v11019_v34 = vunpack.c.h.bf16 %v11487_v52  ;;  %v16726_v27 = vld [vmem:[#allocation78_spill] sm:$0xff]  ;;  %v16728_v56 = vld [vmem:[#allocation79_spill] sm:$0xff]  ;;  %v11490_v52 = vld [vmem:[%s16491_s0 + $0x5d8] sm:$0xff]  }
 0x327   :  { %v15839_v46 = vadd.f32 %v6710_v50, %v5907_v53  ;;  %v11147_v17 = vunpack.c.h.bf16 %v11519_v12  ;;  %v5043_v55 = vmul.f32 %v16725_v33, %v10894_v45  ;;  %v10902_v22 = vunpack.c.l.bf16 %v15829_v25  ;;  %v11522_v45 = vld [vmem:[%s16491_s0 + $0x6d8] sm:$0xff]   ;;  %v16731_v33 = vld [vmem:[#allocation34_spill] sm:$0xff] }
 0x328   :  { %16722 = vst [vmem:[#allocation60_spill] sm:$0xff] %v15831_v42  ;;  %v15842_v8 = vadd.f32 %v6708_v24, %v5905_v7  ;;  %v12341_v15 = vpop.f32.mrb[240].mxu0  ;;  %v6713_v11 = vmul.f32 %v16726_v27, %v11150_v23  ;;  %v16727_v42 = vld [vmem:[#allocation32_spill] sm:$0xff]  ;;  %v10898_v61 = vunpack.c.l.bf16 %v15837_v29  ;;  %v6711_v24 = vmul.f32 %v11146_v19, %v16728_v56  ;;  %v16729_v12 = vld [vmem:[#allocation33_spill] sm:$0xff] }
 0x329   :  { %16723 = vst [vmem:[#allocation61_spill] sm:$0xff] %v15839_v46  ;;  %v5846_v5 = vmul.f32 %v12341_v15, %v11022_v41  ;;  %v5604_v57 = vpop.f32.mrb[241].mxu0  ;;  %v5041_v50 = vmul.f32 %v10890_v2, %v16727_v42  ;;  %v5044_v41 = vmul.f32 %v16729_v12, %v10895_v39  ;;  %v16730_v2 = vld [vmem:[#allocation80_spill] sm:$0xff] }
 0x32a   :  { %16724 = vst [vmem:[#allocation15_spill] sm:$0xff] %v15842_v8  ;;  %v5844_v51 = vmul.f32 %v11018_v35, %v5604_v57  ;;  %v12342_v53 = vpop.f32.mrb[242].mxu0  ;;  %v6714_v42 = vmul.f32 %v16730_v2, %v11151_v9  ;;  %v11489_v35 = vld [vmem:[%s16491_s0 + $0x5d0] sm:$0xff]   ;;  %v5042_v57 = vmul.f32 %v10891_v21, %v16731_v33  ;;  %v6712_v8 = vmul.f32 %v11147_v17, %v15362_v13  ;;  %v15871_v9 = vld [vmem:[%s16491_s0 + $0x4e8] sm:$0xff]   ;;  %v15879_v13 = vld [vmem:[%s16491_s0 + $0x4e0] sm:$0xff]  }
 0x32b   :  { %v5910_v7 = vadd.f32 %v5846_v5, %v5043_v55  ;;  %v5847_v23 = vmul.f32 %v12342_v53, %v11023_v18  ;;  %v5607_v15 = vpop.f32.mrb[243].mxu0  ;;  %v11521_v19 = vld [vmem:[%s16491_s0 + $0x6d0] sm:$0xff]   ;;  %v11030_v18 = vunpack.c.l.bf16 %v11490_v52  ;;  %v11158_v5 = vunpack.c.l.bf16 %v11522_v45 }
 0x32c   :  { %v5908_v27 = vadd.f32 %v5844_v51, %v5041_v50  ;;  %v5845_v56 = vmul.f32 %v11019_v34, %v5607_v15  ;;  %v11026_v2 = vunpack.c.l.bf16 %v11489_v35  ;;  %v11154_v46 = vunpack.c.l.bf16 %v11521_v19 }
 0x32d   :  { %v5911_v39 = vadd.f32 %v5847_v23, %v5044_v41  ;;  %v15866_v55 = vadd.f32 %v6713_v11, %v5910_v7  ;;  %v10903_v21 = vunpack.c.h.bf16 %v15829_v25  ;;  %v11031_v17 = vunpack.c.h.bf16 %v11490_v52  ;;  %v16732_v23 = vld [vmem:[#allocation35_spill] sm:$0xff] }
 0x32e   :  { %v5909_v53 = vadd.f32 %v5845_v56, %v5042_v57  ;;  %v15873_v12 = vadd.f32 %v6711_v24, %v5908_v27  ;;  %v11159_v11 = vunpack.c.h.bf16 %v11522_v45  ;;  %v10899_v50 = vunpack.c.h.bf16 %v15837_v29  ;;  %v16733_v56 = vld [vmem:[#allocation36_spill] sm:$0xff] }
 0x32f   :  { %v15881_v34 = vadd.f32 %v6714_v42, %v5911_v39  ;;  %v11027_v24 = vunpack.c.h.bf16 %v11489_v35  ;;  %v11155_v7 = vunpack.c.h.bf16 %v11521_v19  ;;  %v5047_v15 = vmul.f32 %v16732_v23, %v10902_v22  ;;  %v11524_v22 = vld [vmem:[%s16491_s0 + $0x6e8] sm:$0xff]   ;;  %v16734_v35 = vld [vmem:[#allocation37_spill] sm:$0xff] }
 0x330   :  { %v15884_v51 = vadd.f32 %v6712_v8, %v5909_v53  ;;  %v12345_v41 = vpop.f32.mrb[244].mxu0  ;;  %v10910_v25 = vunpack.c.l.bf16 %v15871_v9  ;;  %v6717_v27 = vmul.f32 %v15386_v48, %v11158_v5  ;;  %v5045_v42 = vmul.f32 %v10898_v61, %v16733_v56  ;;  %v11492_v8 = vld [vmem:[%s16491_s0 + $0x5e8] sm:$0xff]   ;;  %v11491_v53 = vld [vmem:[%s16491_s0 + $0x5e0] sm:$0xff]  }
 0x331   :  { %v5850_v33 = vmul.f32 %v12345_v41, %v11030_v18  ;;  %v5620_v57 = vpop.f32.mrb[245].mxu0  ;;  %v10906_v52 = vunpack.c.l.bf16 %v15879_v13  ;;  %v6715_v29 = vmul.f32 %v11154_v46, %v15394_v40  ;;  %v5048_v19 = vmul.f32 %v16734_v35, %v10903_v21  ;;  %v11523_v40 = vld [vmem:[%s16491_s0 + $0x6e0] sm:$0xff]  }
 0x332   :  { %v5848_v45 = vmul.f32 %v11026_v2, %v5620_v57  ;;  %v12346_v39 = vpop.f32.mrb[246].mxu0  ;;  %v6718_v61 = vmul.f32 %v15406_v26, %v11159_v11  ;;  %v16735_v46 = vld [vmem:[#allocation38_spill] sm:$0xff]  ;;  %v6716_v57 = vmul.f32 %v11155_v7, %v15416_v10  ;;  %v15913_v26 = vld [vmem:[%s16491_s0 + $0x4f8] sm:$0xff]   ;;  %v11162_v35 = vunpack.c.l.bf16 %v11523_v40  ;;  %v15921_v10 = vld [vmem:[%s16491_s0 + $0x4f0] sm:$0xff]  }
 0x333   :  { %v5914_v18 = vadd.f32 %v5850_v33, %v5047_v15  ;;  %v5851_v48 = vmul.f32 %v12346_v39, %v11031_v17  ;;  %v5623_v5 = vpop.f32.mrb[247].mxu0  ;;  %v5046_v2 = vmul.f32 %v10899_v50, %v16735_v46  ;;  %v11038_v17 = vunpack.c.l.bf16 %v11492_v8 }
 0x334   :  { %v5912_v41 = vadd.f32 %v5848_v45, %v5045_v42  ;;  %v5849_v23 = vmul.f32 %v11027_v24, %v5623_v5  ;;  %v11166_v33 = vunpack.c.l.bf16 %v11524_v22  ;;  %v11034_v39 = vunpack.c.l.bf16 %v11491_v53 }
 0x335   :  { %v5915_v21 = vadd.f32 %v5851_v48, %v5048_v19  ;;  %v15908_v15 = vadd.f32 %v6717_v27, %v5914_v18  ;;  %v10911_v50 = vunpack.c.h.bf16 %v15871_v9  ;;  %v11039_v7 = vunpack.c.h.bf16 %v11492_v8  ;;  %v16738_v48 = vld [vmem:[#allocation39_spill] sm:$0xff] }
 0x336   :  { %v5913_v11 = vadd.f32 %v5849_v23, %v5046_v2  ;;  %v15915_v56 = vadd.f32 %v6715_v29, %v5912_v41  ;;  %v11167_v27 = vunpack.c.h.bf16 %v11524_v22  ;;  %v10907_v42 = vunpack.c.h.bf16 %v15879_v13  ;;  %v16739_v23 = vld [vmem:[#allocation40_spill] sm:$0xff] }
 0x337   :  { %v15923_v24 = vadd.f32 %v6718_v61, %v5915_v21  ;;  %v11035_v29 = vunpack.c.h.bf16 %v11491_v53  ;;  %v11163_v18 = vunpack.c.h.bf16 %v11523_v40  ;;  %v5051_v5 = vmul.f32 %v16738_v48, %v10910_v25  ;;  %v11494_v53 = vld [vmem:[%s16491_s0 + $0x5f8] sm:$0xff]  }
 0x338   :  { %v15926_v45 = vadd.f32 %v6716_v57, %v5913_v11  ;;  %v12349_v19 = vpop.f32.mrb[248].mxu0  ;;  %v10918_v9 = vunpack.c.l.bf16 %v15913_v26  ;;  %v6721_v41 = vmul.f32 %v15442_v43, %v11166_v33  ;;  %v5049_v61 = vmul.f32 %v10906_v52, %v16739_v23  ;;  %v11526_v25 = vld [vmem:[%s16491_s0 + $0x6f8] sm:$0xff]   ;;  %v11493_v11 = vld [vmem:[%s16491_s0 + $0x5f0] sm:$0xff]  }
 0x339   :  { %16736 = vst [vmem:[#allocation17_spill] sm:$0xff] %v15923_v24  ;;  %v5854_v46 = vmul.f32 %v12349_v19, %v11038_v17  ;;  %v5636_v2 = vpop.f32.mrb[249].mxu0  ;;  %v10914_v8 = vunpack.c.l.bf16 %v15921_v10  ;;  %v6719_v13 = vmul.f32 %v11162_v35, %v15450_v3  ;;  %v16740_v40 = vld [vmem:[#allocation41_spill] sm:$0xff]  ;;  %v6722_v52 = vmul.f32 %v15464_v44, %v11167_v27  ;;  %v11525_v3 = vld [vmem:[%s16491_s0 + $0x6f0] sm:$0xff]  }
 0x33a   :  { %16737 = vst [vmem:[#allocation62_spill] sm:$0xff] %v15926_v45  ;;  %v5852_v22 = vmul.f32 %v11034_v39, %v5636_v2  ;;  %v12350_v21 = vpop.f32.mrb[250].mxu0  ;;  %v5052_v57 = vmul.f32 %v16740_v40, %v10911_v50  ;;  %v16741_v39 = vld [vmem:[#allocation42_spill] sm:$0xff]  ;;  %v6720_v2 = vmul.f32 %v11163_v18, %v15474_v58  ;;  %v11042_v23 = vunpack.c.l.bf16 %v11493_v11 }
 0x33b   :  { %v5918_v17 = vadd.f32 %v5854_v46, %v5051_v5  ;;  %v5855_v43 = vmul.f32 %v12350_v21, %v11039_v7  ;;  %v5639_v33 = vpop.f32.mrb[251].mxu0  ;;  %v5050_v35 = vmul.f32 %v10907_v42, %v16741_v39  ;;  %v11046_v7 = vunpack.c.l.bf16 %v11494_v53 }
 0x33c   :  { %v5916_v19 = vadd.f32 %v5852_v22, %v5049_v61  ;;  %v5853_v48 = vmul.f32 %v11035_v29, %v5639_v33  ;;  %v11174_v46 = vunpack.c.l.bf16 %v11526_v25  ;;  %v11170_v21 = vunpack.c.l.bf16 %v11525_v3  ;;  %v16742_v22 = vld [vmem:[#allocation43_spill] sm:$0xff]  ;;  %v16743_v33 = vld [vmem:[#allocation44_spill] sm:$0xff] }
 0x33d   :  { %v5919_v50 = vadd.f32 %v5855_v43, %v5052_v57  ;;  %v15950_v5 = vadd.f32 %v6721_v41, %v5918_v17  ;;  %v10919_v40 = vunpack.c.h.bf16 %v15913_v26  ;;  %v11047_v24 = vunpack.c.h.bf16 %v11494_v53 }
 0x33e   :  { %v5917_v44 = vadd.f32 %v5853_v48, %v5050_v35  ;;  %v15952_v27 = vadd.f32 %v6719_v13, %v5916_v19  ;;  %v11175_v42 = vunpack.c.h.bf16 %v11526_v25  ;;  %v10915_v29 = vunpack.c.h.bf16 %v15921_v10  ;;  %v11528_v10 = vld [vmem:[%s16491_s0 + $0x708] sm:$0xff]   ;;  %v16744_v25 = vld [vmem:[#allocation45_spill] sm:$0xff] }
 0x33f   :  { %v15955_v45 = vadd.f32 %v6722_v52, %v5919_v50  ;;  %v11043_v18 = vunpack.c.h.bf16 %v11493_v11  ;;  %v11171_v41 = vunpack.c.h.bf16 %v11525_v3  ;;  %v5055_v57 = vmul.f32 %v16742_v22, %v10918_v9 }
 0x340   :  { %v15958_v61 = vadd.f32 %v6720_v2, %v5917_v44  ;;  %v12353_v58 = vpop.f32.mrb[252].mxu0  ;;  %v6725_v43 = vmul.f32 %v15498_v47, %v11174_v46  ;;  %v5053_v39 = vmul.f32 %v10914_v8, %v16743_v33  ;;  %v6723_v53 = vmul.f32 %v11170_v21, %v15506_v28  ;;  %v11527_v47 = vld [vmem:[%s16491_s0 + $0x700] sm:$0xff]   ;;  %v11529_v33 = vld [vmem:[%s16491_s0 + $0x710] sm:$0xff]  }
 0x341   :  { %v5858_v17 = vmul.f32 %v12353_v58, %v11046_v7  ;;  %v5652_v13 = vpop.f32.mrb[253].mxu0  ;;  %v5056_v35 = vmul.f32 %v16744_v25, %v10919_v40  ;;  %v6726_v9 = vmul.f32 %v15518_v30, %v11175_v42  ;;  %v16745_v8 = vld [vmem:[#allocation46_spill] sm:$0xff]  ;;  %v6724_v28 = vmul.f32 %v11171_v41, %v15528_v63  ;;  %v11530_v63 = vld [vmem:[%s16491_s0 + $0x718] sm:$0xff]  }
 0x342   :  { %v5856_v26 = vmul.f32 %v11042_v23, %v5652_v13  ;;  %v12354_v52 = vpop.f32.mrb[254].mxu0  ;;  %v5054_v48 = vmul.f32 %v10915_v29, %v16745_v8  ;;  %v11182_v44 = vunpack.c.l.bf16 %v11528_v10  ;;  %v11183_v30 = vunpack.c.h.bf16 %v11528_v10 }
 0x343   :  { %v5922_v11 = vadd.f32 %v5858_v17, %v5055_v57  ;;  %v5859_v3 = vmul.f32 %v12354_v52, %v11047_v24  ;;  %v5655_v19 = vpop.f32.mrb[255].mxu0  ;;  %v11178_v24 = vunpack.c.l.bf16 %v11527_v47  ;;  %v11179_v22 = vunpack.c.h.bf16 %v11527_v47 }
 0x344   :  { %v5920_v2 = vadd.f32 %v5856_v26, %v5053_v39  ;;  %v5857_v50 = vmul.f32 %v11043_v18, %v5655_v19  ;;  %v11186_v25 = vunpack.c.l.bf16 %v11529_v33 }
 0x345   :  { %v5923_v7 = vadd.f32 %v5859_v3, %v5056_v35  ;;  %v15974_v46 = vadd.f32 %v6725_v43, %v5922_v11  ;;  %v11191_v11 = vunpack.c.h.bf16 %v11530_v63 }
 0x346   :  { %v5921_v23 = vadd.f32 %v5857_v50, %v5054_v48  ;;  %v15976_v21 = vadd.f32 %v6723_v53, %v5920_v2  ;;  %v11190_v53 = vunpack.c.l.bf16 %v11530_v63  ;;  %v11531_v50 = vld [vmem:[%s16491_s0 + $0x720] sm:$0xff]  }
 0x347   :  { %v15978_v40 = vadd.f32 %v6726_v9, %v5923_v7 }
 0x348   :  { %v15980_v42 = vadd.f32 %v6724_v28, %v5921_v23  ;;  %v12425_v58 = vpop.f32.mrb[0].mxu0 }
 0x349   :  { %v7532_v29 = vmul.f32 %v12425_v58, %v11182_v44  ;;  %v7146_v57 = vpop.f32.mrb[1].mxu0 }
 0x34a   :  { %v7530_v18 = vmul.f32 %v11178_v24, %v7146_v57  ;;  %v12426_v17 = vpop.f32.mrb[2].mxu0  ;;  %v11195_v57 = vunpack.c.h.bf16 %v11531_v50 }
 0x34b   :  { %v7596_v41 = vadd.f32 %v7532_v29, %v15366_v6  ;;  %v7533_v13 = vmul.f32 %v12426_v17, %v11183_v30  ;;  %v7149_v43 = vpop.f32.mrb[3].mxu0  ;;  %v11187_v6 = vunpack.c.h.bf16 %v11529_v33  ;;  %v11194_v30 = vunpack.c.l.bf16 %v11531_v50 }
 0x34c   :  { %v7594_v39 = vadd.f32 %v7530_v18, %v15369_v59  ;;  %v7531_v26 = vmul.f32 %v11179_v22, %v7149_v43  ;;  %v11532_v59 = vld [vmem:[%s16491_s0 + $0x728] sm:$0xff]   ;;  %v11533_v43 = vld [vmem:[%s16491_s0 + $0x730] sm:$0xff]  }
 0x34d   :  { %v7597_v52 = vadd.f32 %v7533_v13, %v15376_v4  ;;  %v11198_v23 = vunpack.c.l.bf16 %v11532_v59  ;;  %v11199_v22 = vunpack.c.h.bf16 %v11532_v59 }
 0x34e   :  { %v7595_v10 = vadd.f32 %v7531_v26, %v15384_v60 }
 0x34f   :  { %v7659_v35 = vpack.c.bf16 %v7597_v52, %v7596_v41 }
 0x350   :  { %v7658_v3 = vpack.c.bf16 %v7595_v10, %v7594_v39  ;;  %v12429_v19 = vpop.f32.mrb[4].mxu0  ;;  %v11202_v10 = vunpack.c.l.bf16 %v11533_v43 }
 0x351   :  { %v7536_v9 = vmul.f32 %v12429_v19, %v11190_v53  ;;  %v7162_v47 = vpop.f32.mrb[5].mxu0 }
 0x352   :  { %v7534_v8 = vmul.f32 %v11186_v25, %v7162_v47  ;;  %v12430_v48 = vpop.f32.mrb[6].mxu0  ;;  %12491 = vmatprep.mubr.msk.bf16.mxu1 %vm3543_vm4, %v7658_v3  ;;  %v11203_v3 = vunpack.c.h.bf16 %v11533_v43  ;;  %v16750_v43 = vld [vmem:[#allocation48_spill] sm:$0xff] }
 0x353   :  { %v7600_v4 = vadd.f32 %v7536_v9, %v15420_v54  ;;  %v7537_v2 = vmul.f32 %v12430_v48, %v11191_v11  ;;  %v7165_v60 = vpop.f32.mrb[7].mxu0  ;;  %12492 = vmatmul.mubr.msk.bf16.vlgmr.msra.gmra.mrb[0].mxu1 %vm3543_vm4, %v7659_v35  ;;  %v11535_v48 = vld [vmem:[%s16491_s0 + $0x740] sm:$0xff]  }
 0x354   :  { %v7598_v28 = vadd.f32 %v7534_v8, %v15433_v38  ;;  %v7535_v7 = vmul.f32 %v11187_v6, %v7165_v60  ;;  %v11534_v38 = vld [vmem:[%s16491_s0 + $0x738] sm:$0xff]  }
 0x355   :  { %v7601_v44 = vadd.f32 %v7537_v2, %v15437_v32  ;;  %v11206_v52 = vunpack.c.l.bf16 %v11534_v38  ;;  %v11207_v35 = vunpack.c.h.bf16 %v11534_v38  ;;  %v16746_v2 = vld [vmem:[#allocation81_spill] sm:$0xff]  ;;  %v11537_v38 = vld [vmem:[%s16491_s0 + $0x750] sm:$0xff]  }
 0x356   :  { %v7599_v24 = vadd.f32 %v7535_v7, %v15440_v0 }
 0x357   :  { %v7661_v58 = vpack.c.bf16 %v7601_v44, %v7600_v4  ;;  %v11210_v44 = vunpack.c.l.bf16 %v11535_v48 }
 0x358   :  { %v7660_v54 = vpack.c.bf16 %v7599_v24, %v7598_v28  ;;  %v12433_v29 = vpop.f32.mrb[8].mxu0  ;;  %v16747_v28 = vld [vmem:[#allocation82_spill] sm:$0xff] }
 0x359   :  { %v7540_v18 = vmul.f32 %v12433_v29, %v11198_v23  ;;  %v7178_v17 = vpop.f32.mrb[9].mxu0 }
 0x35a   :  { %v7538_v63 = vmul.f32 %v11194_v30, %v7178_v17  ;;  %v12434_v41 = vpop.f32.mrb[10].mxu0  ;;  %12495 = vmatprep.mubr.msk.bf16.mxu1 %vm3543_vm4, %v7660_v54 }
 0x35b   :  { %v7604_v32 = vadd.f32 %v7540_v18, %v15478_v14  ;;  %v7541_v13 = vmul.f32 %v12434_v41, %v11199_v22  ;;  %v7181_v0 = vpop.f32.mrb[11].mxu0  ;;  %12496 = vmatmul.mubr.msk.bf16.gmra.mrb[4].mxu1 %vm3543_vm4, %v7661_v58  ;;  %v11211_v58 = vunpack.c.h.bf16 %v11535_v48  ;;  %v16748_v18 = vld [vmem:[#allocation2_spill] sm:$0xff] }
 0x35c   :  { %v7602_v33 = vadd.f32 %v7538_v63, %v15481_v16  ;;  %v7539_v39 = vmul.f32 %v11195_v57, %v7181_v0  ;;  %v11536_v16 = vld [vmem:[%s16491_s0 + $0x748] sm:$0xff]   ;;  %v11539_v48 = vld [vmem:[%s16491_s0 + $0x760] sm:$0xff]  }
 0x35d   :  { %v7605_v26 = vadd.f32 %v7541_v13, %v15488_v37  ;;  %v11214_v50 = vunpack.c.l.bf16 %v11536_v16  ;;  %v11215_v24 = vunpack.c.h.bf16 %v11536_v16  ;;  %v16752_v16 = vld [vmem:[#allocation3_spill] sm:$0xff] }
 0x35e   :  { %v7603_v53 = vadd.f32 %v7539_v39, %v15496_v31 }
 0x35f   :  { %v7663_v25 = vpack.c.bf16 %v7605_v26, %v7604_v32  ;;  %v16749_v32 = vld [vmem:[#allocation47_spill] sm:$0xff]  ;;  %v16751_v26 = vld [vmem:[#allocation49_spill] sm:$0xff] }
 0x360   :  { %v7662_v14 = vpack.c.bf16 %v7603_v53, %v7602_v33  ;;  %v12437_v11 = vpop.f32.mrb[12].mxu0  ;;  %v11218_v53 = vunpack.c.l.bf16 %v11537_v38 }
 0x361   :  { %v7544_v19 = vmul.f32 %v12437_v11, %v11206_v52  ;;  %v7194_v6 = vpop.f32.mrb[13].mxu0  ;;  %v11219_v11 = vunpack.c.h.bf16 %v11537_v38 }
 0x362   :  { %v7542_v9 = vmul.f32 %v11202_v10, %v7194_v6  ;;  %v12438_v47 = vpop.f32.mrb[14].mxu0  ;;  %12499 = vmatprep.mubr.msk.bf16.mxu1 %vm3543_vm4, %v7662_v14 }
 0x363   :  { %v7608_v37 = vadd.f32 %v7544_v19, %v15532_v20  ;;  %v7545_v8 = vmul.f32 %v12438_v47, %v11207_v35  ;;  %v7197_v31 = vpop.f32.mrb[15].mxu0  ;;  %12500 = vmatmul.mubr.msk.bf16.gmra.mrb[8].mxu1 %vm3543_vm4, %v7663_v25  ;;  %v11540_v47 = vld [vmem:[%s16491_s0 + $0x768] sm:$0xff]  }
 0x364   :  { %v7606_v59 = vadd.f32 %v7542_v9, %v15541_v62  ;;  %v7543_v4 = vmul.f32 %v11203_v3, %v7197_v31  ;;  %v11538_v62 = vld [vmem:[%s16491_s0 + $0x758] sm:$0xff]  }
 0x365   :  { %v7609_v60 = vadd.f32 %v7545_v8, %v16746_v2  ;;  %v11222_v39 = vunpack.c.l.bf16 %v11538_v62  ;;  %v11223_v25 = vunpack.c.h.bf16 %v11538_v62 }
 0x366   :  { %v7607_v7 = vadd.f32 %v7543_v4, %v16747_v28  ;;  %v11230_v28 = vunpack.c.l.bf16 %v11540_v47 }
 0x367   :  { %v7665_v23 = vpack.c.bf16 %v7609_v60, %v7608_v37  ;;  %v16754_v60 = vld [vmem:[#allocation5_spill] sm:$0xff] }
 0x368   :  { %v7664_v20 = vpack.c.bf16 %v7607_v7, %v7606_v59  ;;  %v12441_v30 = vpop.f32.mrb[16].mxu0  ;;  %v16753_v59 = vld [vmem:[#allocation4_spill] sm:$0xff]  ;;  %v16755_v7 = vld [vmem:[#allocation6_spill] sm:$0xff] }
 0x369   :  { %v7548_v22 = vmul.f32 %v12441_v30, %v11214_v50  ;;  %v7210_v54 = vpop.f32.mrb[17].mxu0 }
 0x36a   :  { %v7546_v29 = vmul.f32 %v11210_v44, %v7210_v54  ;;  %v12442_v57 = vpop.f32.mrb[18].mxu0  ;;  %12503 = vmatprep.mubr.msk.bf16.mxu1 %vm3543_vm4, %v7664_v20  ;;  %v11231_v20 = vunpack.c.h.bf16 %v11540_v47 }
 0x36b   :  { %v7612_v17 = vadd.f32 %v7548_v22, %v16748_v18  ;;  %v7549_v63 = vmul.f32 %v12442_v57, %v11215_v24  ;;  %v7213_v41 = vpop.f32.mrb[19].mxu0  ;;  %12504 = vmatmul.mubr.msk.bf16.gmra.mrb[12].mxu1 %vm3543_vm4, %v7665_v23  ;;  %v11226_v23 = vunpack.c.l.bf16 %v11539_v48  ;;  %v11227_v22 = vunpack.c.h.bf16 %v11539_v48  ;;  %v11542_v18 = vld [vmem:[%s16491_s0 + $0x778] sm:$0xff]  }
 0x36c   :  { %v7610_v13 = vadd.f32 %v7546_v29, %v16749_v32  ;;  %v7547_v0 = vmul.f32 %v11211_v58, %v7213_v41  ;;  %v11541_v32 = vld [vmem:[%s16491_s0 + $0x770] sm:$0xff]  }
 0x36d   :  { %v7613_v33 = vadd.f32 %v7549_v63, %v16750_v43 }
 0x36e   :  { %v7611_v52 = vadd.f32 %v7547_v0, %v16751_v26  ;;  %v11238_v26 = vunpack.c.l.bf16 %v11542_v18 }
 0x36f   :  { %v7667_v10 = vpack.c.bf16 %v7613_v33, %v7612_v17  ;;  %v16756_v17 = vld [vmem:[#allocation50_spill] sm:$0xff]  ;;  %v16758_v33 = vld [vmem:[#allocation52_spill] sm:$0xff] }
 0x370   :  { %v7666_v35 = vpack.c.bf16 %v7611_v52, %v7610_v13  ;;  %v12445_v14 = vpop.f32.mrb[20].mxu0  ;;  %v16757_v13 = vld [vmem:[#allocation51_spill] sm:$0xff]  ;;  %v16759_v52 = vld [vmem:[#allocation53_spill] sm:$0xff] }
 0x371   :  { %v7552_v3 = vmul.f32 %v12445_v14, %v11222_v39  ;;  %v7226_v19 = vpop.f32.mrb[21].mxu0 }
 0x372   :  { %v7550_v6 = vmul.f32 %v11218_v53, %v7226_v19  ;;  %v12446_v9 = vpop.f32.mrb[22].mxu0  ;;  %12507 = vmatprep.mubr.msk.bf16.mxu1 %vm3543_vm4, %v7666_v35  ;;  %v11239_v35 = vunpack.c.h.bf16 %v11542_v18  ;;  %v11546_v18 = vld [vmem:[%s16491_s0 + $0x798] sm:$0xff]  }
 0x373   :  { %v7616_v37 = vadd.f32 %v7552_v3, %v16752_v16  ;;  %v7553_v8 = vmul.f32 %v12446_v9, %v11223_v25  ;;  %v7229_v31 = vpop.f32.mrb[23].mxu0  ;;  %12508 = vmatmul.mubr.msk.bf16.gmra.mrb[16].mxu1 %vm3543_vm4, %v7667_v10  ;;  %v11234_v10 = vunpack.c.l.bf16 %v11541_v32  ;;  %v11235_v3 = vunpack.c.h.bf16 %v11541_v32  ;;  %v11544_v16 = vld [vmem:[%s16491_s0 + $0x788] sm:$0xff]  }
 0x374   :  { %v7614_v4 = vadd.f32 %v7550_v6, %v16753_v59  ;;  %v7551_v2 = vmul.f32 %v11219_v11, %v7229_v31  ;;  %v11543_v59 = vld [vmem:[%s16491_s0 + $0x780] sm:$0xff]  }
 0x375   :  { %v7617_v50 = vadd.f32 %v7553_v8, %v16754_v60 }
 0x376   :  { %v7615_v44 = vadd.f32 %v7551_v2, %v16755_v7  ;;  %v16762_v7 = vld [vmem:[#allocation54_spill] sm:$0xff] }
 0x377   :  { %v7669_v24 = vpack.c.bf16 %v7617_v50, %v7616_v37  ;;  %v16760_v37 = vld [vmem:[#allocation7_spill] sm:$0xff] }
 0x378   :  { %v7668_v30 = vpack.c.bf16 %v7615_v44, %v7614_v4  ;;  %v12449_v58 = vpop.f32.mrb[24].mxu0  ;;  %v16761_v4 = vld [vmem:[#allocation9_spill] sm:$0xff] }
 0x379   :  { %v7556_v54 = vmul.f32 %v12449_v58, %v11230_v28  ;;  %v7242_v29 = vpop.f32.mrb[25].mxu0  ;;  %v11246_v28 = vunpack.c.l.bf16 %v11544_v16 }
 0x37a   :  { %v7554_v57 = vmul.f32 %v11226_v23, %v7242_v29  ;;  %v12450_v62 = vpop.f32.mrb[26].mxu0  ;;  %12511 = vmatprep.mubr.msk.bf16.mxu1 %vm3543_vm4, %v7668_v30  ;;  %v11242_v23 = vunpack.c.l.bf16 %v11543_v59 }
 0x37b   :  { %v7620_v63 = vadd.f32 %v7556_v54, %v16756_v17  ;;  %v7557_v41 = vmul.f32 %v12450_v62, %v11231_v20  ;;  %v7245_v38 = vpop.f32.mrb[27].mxu0  ;;  %12512 = vmatmul.mubr.msk.bf16.gmra.mrb[20].mxu1 %vm3543_vm4, %v7669_v24  ;;  %v11247_v20 = vunpack.c.h.bf16 %v11544_v16 }
 0x37c   :  { %v7618_v0 = vadd.f32 %v7554_v57, %v16757_v13  ;;  %v7555_v43 = vmul.f32 %v11227_v22, %v7245_v38  ;;  %v11243_v22 = vunpack.c.h.bf16 %v11543_v59  ;;  %v16763_v38 = vld [vmem:[#allocation8_spill] sm:$0xff] }
 0x37d   :  { %v7621_v39 = vadd.f32 %v7557_v41, %v16758_v33  ;;  %v11545_v41 = vld [vmem:[%s16491_s0 + $0x790] sm:$0xff]   ;;  %v11254_v33 = vunpack.c.l.bf16 %v11546_v18 }
 0x37e   :  { %v7619_v53 = vadd.f32 %v7555_v43, %v16759_v52  ;;  %v11250_v52 = vunpack.c.l.bf16 %v11545_v41 }
 0x37f   :  { %v7671_v25 = vpack.c.bf16 %v7621_v39, %v7620_v63  ;;  %v16765_v39 = vld [vmem:[#allocation55_spill] sm:$0xff] }
 0x380   :  { %v7670_v14 = vpack.c.bf16 %v7619_v53, %v7618_v0  ;;  %v12453_v11 = vpop.f32.mrb[28].mxu0  ;;  %v16764_v0 = vld [vmem:[#allocation10_spill] sm:$0xff] }
 0x381   :  { %v7560_v19 = vmul.f32 %v12453_v11, %v11238_v26  ;;  %v7258_v6 = vpop.f32.mrb[29].mxu0 }
 0x382   :  { %v7558_v9 = vmul.f32 %v11234_v10, %v7258_v6  ;;  %v12454_v47 = vpop.f32.mrb[30].mxu0  ;;  %12515 = vmatprep.mubr.msk.bf16.mxu1 %vm3543_vm4, %v7670_v14  ;;  %v11255_v10 = vunpack.c.h.bf16 %v11546_v18  ;;  %v11548_v6 = vld [vmem:[%s16491_s0 + $0x7a8] sm:$0xff]  }
 0x383   :  { %v7624_v8 = vadd.f32 %v7560_v19, %v16760_v37  ;;  %v7561_v31 = vmul.f32 %v12454_v47, %v11239_v35  ;;  %v7261_v48 = vpop.f32.mrb[31].mxu0  ;;  %12516 = vmatmul.mubr.msk.bf16.gmra.mrb[24].mxu1 %vm3543_vm4, %v7671_v25  ;;  %v11251_v35 = vunpack.c.h.bf16 %v11545_v41  ;;  %v16771_v41 = vld [vmem:[#allocation14_spill] sm:$0xff] }
 0x384   :  { %v7622_v2 = vadd.f32 %v7558_v9, %v16761_v4  ;;  %v7559_v60 = vmul.f32 %v11235_v3, %v7261_v48  ;;  %v16766_v9 = vld [vmem:[#allocation56_spill] sm:$0xff]  ;;  %v16768_v4 = vld [vmem:[#allocation11_spill] sm:$0xff] }
 0x385   :  { %v7625_v50 = vadd.f32 %v7561_v31, %v15685_v36  ;;  %v16767_v31 = vld [vmem:[#allocation57_spill] sm:$0xff] }
 0x386   :  { %v7623_v44 = vadd.f32 %v7559_v60, %v16762_v7  ;;  %v11262_v60 = vunpack.c.l.bf16 %v11548_v6 }
 0x387   :  { %v7673_v24 = vpack.c.bf16 %v7625_v50, %v7624_v8  ;;  %v11547_v8 = vld [vmem:[%s16491_s0 + $0x7a0] sm:$0xff]   ;;  %v16769_v50 = vld [vmem:[#allocation12_spill] sm:$0xff] }
 0x388   :  { %v7672_v30 = vpack.c.bf16 %v7623_v44, %v7622_v2  ;;  %v12457_v58 = vpop.f32.mrb[32].mxu0  ;;  %v11258_v7 = vunpack.c.l.bf16 %v11547_v8 }
 0x389   :  { %v7564_v54 = vmul.f32 %v12457_v58, %v11246_v28  ;;  %v7274_v29 = vpop.f32.mrb[33].mxu0 }
 0x38a   :  { %v7562_v57 = vmul.f32 %v11242_v23, %v7274_v29  ;;  %v12458_v62 = vpop.f32.mrb[34].mxu0  ;;  %12519 = vmatprep.mubr.msk.bf16.mxu1 %vm3543_vm4, %v7672_v30  ;;  %v11263_v23 = vunpack.c.h.bf16 %v11548_v6  ;;  %v11259_v30 = vunpack.c.h.bf16 %v11547_v8 }
 0x38b   :  { %v7628_v36 = vadd.f32 %v7564_v54, %v15708_v1  ;;  %v7565_v17 = vmul.f32 %v12458_v62, %v11247_v20  ;;  %v7277_v63 = vpop.f32.mrb[35].mxu0  ;;  %12520 = vmatmul.mubr.msk.bf16.gmra.mrb[28].mxu1 %vm3543_vm4, %v7673_v24  ;;  %v16770_v62 = vld [vmem:[#allocation13_spill] sm:$0xff] }
 0x38c   :  { %v7626_v32 = vadd.f32 %v7562_v57, %v16763_v38  ;;  %v7563_v13 = vmul.f32 %v11243_v22, %v7277_v63  ;;  %v11550_v57 = vld [vmem:[%s16491_s0 + $0x7b8] sm:$0xff]   ;;  %v11549_v63 = vld [vmem:[%s16491_s0 + $0x7b0] sm:$0xff]  }
 0x38d   :  { %v7629_v43 = vadd.f32 %v7565_v17, %v16764_v0 }
 0x38e   :  { %v7627_v26 = vadd.f32 %v7563_v13, %v16765_v39  ;;  %v16772_v13 = vld [vmem:[#allocation58_spill] sm:$0xff] }
 0x38f   :  { %v7675_v53 = vpack.c.bf16 %v7629_v43, %v7628_v36  ;;  %v11270_v43 = vunpack.c.l.bf16 %v11550_v57 }
 0x390   :  { %v7674_v1 = vpack.c.bf16 %v7627_v26, %v7626_v32  ;;  %v12461_v25 = vpop.f32.mrb[36].mxu0  ;;  %v11266_v26 = vunpack.c.l.bf16 %v11549_v63 }
 0x391   :  { %v7568_v14 = vmul.f32 %v12461_v25, %v11254_v33  ;;  %v7290_v11 = vpop.f32.mrb[37].mxu0  ;;  %v16773_v33 = vld [vmem:[#allocation59_spill] sm:$0xff]  ;;  %v11267_v25 = vunpack.c.h.bf16 %v11549_v63 }
 0x392   :  { %v7566_v3 = vmul.f32 %v11250_v52, %v7290_v11  ;;  %v12462_v19 = vpop.f32.mrb[38].mxu0  ;;  %12523 = vmatprep.mubr.msk.bf16.mxu1 %vm3543_vm4, %v7674_v1 }
 0x393   :  { %v7632_v47 = vadd.f32 %v7568_v14, %v16766_v9  ;;  %v7569_v16 = vmul.f32 %v12462_v19, %v11255_v10  ;;  %v7293_v37 = vpop.f32.mrb[39].mxu0  ;;  %12524 = vmatmul.mubr.msk.bf16.gmra.mrb[32].mxu1 %vm3543_vm4, %v7675_v53  ;;  %v11271_v53 = vunpack.c.h.bf16 %v11550_v57  ;;  %v11552_v19 = vld [vmem:[%s16491_s0 + $0x7c8] sm:$0xff]  }
 0x394   :  { %v7630_v48 = vadd.f32 %v7566_v3, %v16767_v31  ;;  %v7567_v59 = vmul.f32 %v11251_v35, %v7293_v37  ;;  %v16774_v37 = vld [vmem:[#allocation60_spill] sm:$0xff] }
 0x395   :  { %v7633_v2 = vadd.f32 %v7569_v16, %v16768_v4  ;;  %v11551_v16 = vld [vmem:[%s16491_s0 + $0x7c0] sm:$0xff]   ;;  %v11278_v4 = vunpack.c.l.bf16 %v11552_v19 }
 0x396   :  { %v7631_v28 = vadd.f32 %v7567_v59, %v16769_v50  ;;  %v11274_v50 = vunpack.c.l.bf16 %v11551_v16 }
 0x397   :  { %v7677_v44 = vpack.c.bf16 %v7633_v2, %v7632_v47  ;;  %v16776_v2 = vld [vmem:[#allocation15_spill] sm:$0xff] }
 0x398   :  { %v7676_v24 = vpack.c.bf16 %v7631_v28, %v7630_v48  ;;  %v12465_v20 = vpop.f32.mrb[40].mxu0  ;;  %v16775_v48 = vld [vmem:[#allocation61_spill] sm:$0xff] }
 0x399   :  { %v7572_v58 = vmul.f32 %v12465_v20, %v11262_v60  ;;  %v7306_v22 = vpop.f32.mrb[41].mxu0 }
 0x39a   :  { %v7570_v54 = vmul.f32 %v11258_v7, %v7306_v22  ;;  %v12466_v29 = vpop.f32.mrb[42].mxu0  ;;  %12527 = vmatprep.mubr.msk.bf16.mxu1 %vm3543_vm4, %v7676_v24  ;;  %v11279_v7 = vunpack.c.h.bf16 %v11552_v19  ;;  %v11554_v22 = vld [vmem:[%s16491_s0 + $0x7d8] sm:$0xff]  }
 0x39b   :  { %v7636_v18 = vadd.f32 %v7572_v58, %v16770_v62  ;;  %v7573_v36 = vmul.f32 %v12466_v29, %v11263_v23  ;;  %v7309_v17 = vpop.f32.mrb[43].mxu0  ;;  %12528 = vmatmul.mubr.msk.bf16.gmra.mrb[36].mxu1 %vm3543_vm4, %v7677_v44  ;;  %v11275_v23 = vunpack.c.h.bf16 %v11551_v16  ;;  %v11553_v62 = vld [vmem:[%s16491_s0 + $0x7d0] sm:$0xff]   ;;  %v11286_v63 = vunpack.c.l.bf16 %v11554_v22 }
 0x39c   :  { %v7634_v38 = vadd.f32 %v7570_v54, %v16771_v41  ;;  %v7571_v32 = vmul.f32 %v11259_v30, %v7309_v17 }
 0x39d   :  { %v7637_v0 = vadd.f32 %v7573_v36, %v16772_v13  ;;  %v11287_v13 = vunpack.c.h.bf16 %v11554_v22 }
 0x39e   :  { %v7635_v39 = vadd.f32 %v7571_v32, %v16773_v33 }
 0x39f   :  { %v7679_v52 = vpack.c.bf16 %v7637_v0, %v7636_v18 }
 0x3a0   :  { %v7678_v10 = vpack.c.bf16 %v7635_v39, %v7634_v38  ;;  %v12469_v1 = vpop.f32.mrb[44].mxu0  ;;  %v11282_v38 = vunpack.c.l.bf16 %v11553_v62 }
 0x3a1   :  { %v7576_v35 = vmul.f32 %v12469_v1, %v11270_v43  ;;  %v7322_v14 = vpop.f32.mrb[45].mxu0  ;;  %v11283_v43 = vunpack.c.h.bf16 %v11553_v62 }
 0x3a2   :  { %v7574_v11 = vmul.f32 %v11266_v26, %v7322_v14  ;;  %v12470_v3 = vpop.f32.mrb[46].mxu0  ;;  %12531 = vmatprep.mubr.msk.bf16.mxu1 %vm3543_vm4, %v7678_v10  ;;  %v11555_v10 = vld [vmem:[%s16491_s0 + $0x7e0] sm:$0xff]  }
 0x3a3   :  { %v7640_v6 = vadd.f32 %v7576_v35, %v15824_v49  ;;  %v7577_v9 = vmul.f32 %v12470_v3, %v11271_v53  ;;  %v7325_v47 = vpop.f32.mrb[47].mxu0  ;;  %12532 = vmatmul.mubr.msk.bf16.gmra.mrb[40].mxu1 %vm3543_vm4, %v7679_v52  ;;  %v16777_v35 = vld [vmem:[#allocation17_spill] sm:$0xff]  ;;  %v16778_v3 = vld [vmem:[#allocation62_spill] sm:$0xff] }
 0x3a4   :  { %v7638_v8 = vadd.f32 %v7574_v11, %v16774_v37  ;;  %v7575_v31 = vmul.f32 %v11267_v25, %v7325_v47  ;;  %v11291_v37 = vunpack.c.h.bf16 %v11555_v10 }
 0x3a5   :  { %v7641_v59 = vadd.f32 %v7577_v9, %v16775_v48 }
 0x3a6   :  { %v7639_v60 = vadd.f32 %v7575_v31, %v16776_v2 }
 0x3a7   :  { %v7681_v28 = vpack.c.bf16 %v7641_v59, %v7640_v6  ;;  %v11290_v6 = vunpack.c.l.bf16 %v11555_v10 }
 0x3a8   :  { %v7680_v49 = vpack.c.bf16 %v7639_v60, %v7638_v8  ;;  %v12473_v44 = vpop.f32.mrb[48].mxu0 }
 0x3a9   :  { %v7580_v24 = vmul.f32 %v12473_v44, %v11278_v4  ;;  %v7338_v20 = vpop.f32.mrb[49].mxu0 }
 0x3aa   :  { %v7578_v30 = vmul.f32 %v11274_v50, %v7338_v20  ;;  %v12474_v58 = vpop.f32.mrb[50].mxu0  ;;  %12535 = vmatprep.mubr.msk.bf16.mxu1 %vm3543_vm4, %v7680_v49  ;;  %v11557_v50 = vld [vmem:[%s16491_s0 + $0x7f0] sm:$0xff]  }
 0x3ab   :  { %v7644_v54 = vadd.f32 %v7580_v24, %v15866_v55  ;;  %v7581_v29 = vmul.f32 %v12474_v58, %v11279_v7  ;;  %v7341_v57 = vpop.f32.mrb[51].mxu0  ;;  %12536 = vmatmul.mubr.msk.bf16.gmra.mrb[44].mxu1 %vm3543_vm4, %v7681_v28  ;;  %v11298_v24 = vunpack.c.l.bf16 %v11557_v50  ;;  %v11299_v22 = vunpack.c.h.bf16 %v11557_v50 }
 0x3ac   :  { %v7642_v18 = vadd.f32 %v7578_v30, %v15873_v12  ;;  %v7579_v36 = vmul.f32 %v11275_v23, %v7341_v57  ;;  %v11556_v12 = vld [vmem:[%s16491_s0 + $0x7e8] sm:$0xff]  }
 0x3ad   :  { %v7645_v17 = vadd.f32 %v7581_v29, %v15881_v34  ;;  %v11294_v11 = vunpack.c.l.bf16 %v11556_v12  ;;  %v11295_v47 = vunpack.c.h.bf16 %v11556_v12 }
 0x3ae   :  { %v7643_v41 = vadd.f32 %v7579_v36, %v15884_v51 }
 0x3af   :  { %v7683_v32 = vpack.c.bf16 %v7645_v17, %v7644_v54 }
 0x3b0   :  { %v7682_v55 = vpack.c.bf16 %v7643_v41, %v7642_v18  ;;  %v12477_v0 = vpop.f32.mrb[52].mxu0 }
 0x3b1   :  { %v7584_v33 = vmul.f32 %v12477_v0, %v11286_v63  ;;  %v7354_v39 = vpop.f32.mrb[53].mxu0 }
 0x3b2   :  { %v7582_v26 = vmul.f32 %v11282_v38, %v7354_v39  ;;  %v12478_v52 = vpop.f32.mrb[54].mxu0  ;;  %12539 = vmatprep.mubr.msk.bf16.mxu1 %vm3543_vm4, %v7682_v55 }
 0x3b3   :  { %v7648_v34 = vadd.f32 %v7584_v33, %v15908_v15  ;;  %v7585_v53 = vmul.f32 %v12478_v52, %v11287_v13  ;;  %v7357_v51 = vpop.f32.mrb[55].mxu0  ;;  %12540 = vmatmul.mubr.msk.bf16.gmra.mrb[48].mxu1 %vm3543_vm4, %v7683_v32 }
 0x3b4   :  { %v7646_v1 = vadd.f32 %v7582_v26, %v15915_v56  ;;  %v7583_v25 = vmul.f32 %v11283_v43, %v7357_v51  ;;  %v11558_v56 = vld [vmem:[%s16491_s0 + $0x7f8] sm:$0xff]   ;;  %s12823_s0 = smov 2  }
 0x3b5   :  { %v7649_v14 = vadd.f32 %v7585_v53, %v16777_v35  ;;  %v11302_v44 = vunpack.c.l.bf16 %v11558_v56  ;;  %v11303_v30 = vunpack.c.h.bf16 %v11558_v56 }
 0x3b6   :  { %v7647_v19 = vadd.f32 %v7583_v25, %v16778_v3 }
 0x3b7   :  { %v7685_v9 = vpack.c.bf16 %v7649_v14, %v7648_v34 }
 0x3b8   :  { %v7684_v15 = vpack.c.bf16 %v7647_v19, %v7646_v1  ;;  %v12481_v16 = vpop.f32.mrb[56].mxu0 }
 0x3b9   :  { %v7588_v8 = vmul.f32 %v12481_v16, %v11294_v11  ;;  %v7370_v31 = vpop.f32.mrb[57].mxu0 }
 0x3ba   :  { %v7586_v48 = vmul.f32 %v11290_v6, %v7370_v31  ;;  %v12482_v59 = vpop.f32.mrb[58].mxu0  ;;  %12543 = vmatprep.mubr.msk.bf16.mxu1 %vm3543_vm4, %v7684_v15 }
 0x3bb   :  { %v7652_v4 = vadd.f32 %v7588_v8, %v15950_v5  ;;  %v7589_v2 = vmul.f32 %v12482_v59, %v11295_v47  ;;  %v7373_v60 = vpop.f32.mrb[59].mxu0  ;;  %12544 = vmatmul.mubr.msk.bf16.gmra.mrb[52].mxu1 %vm3543_vm4, %v7685_v9 }
 0x3bc   :  { %v7650_v28 = vadd.f32 %v7586_v48, %v15952_v27  ;;  %v7587_v7 = vmul.f32 %v11291_v37, %v7373_v60 }
 0x3bd   :  { %v7653_v49 = vadd.f32 %v7589_v2, %v15955_v45 }
 0x3be   :  { %v7651_v23 = vadd.f32 %v7587_v7, %v15958_v61 }
 0x3bf   :  { %v7687_v20 = vpack.c.bf16 %v7653_v49, %v7652_v4 }
 0x3c0   :  { %v7686_v5 = vpack.c.bf16 %v7651_v23, %v7650_v28  ;;  %v12485_v58 = vpop.f32.mrb[60].mxu0 }
 0x3c1   :  { %v7592_v54 = vmul.f32 %v12485_v58, %v11302_v44  ;;  %v7386_v29 = vpop.f32.mrb[61].mxu0 }
 0x3c2   :  { %v7590_v57 = vmul.f32 %v11298_v24, %v7386_v29  ;;  %v12486_v62 = vpop.f32.mrb[62].mxu0  ;;  %12547 = vmatprep.mubr.msk.bf16.mxu1 %vm3543_vm4, %v7686_v5 }
 0x3c3   :  { %v7656_v27 = vadd.f32 %v7592_v54, %v15974_v46  ;;  %v7593_v18 = vmul.f32 %v12486_v62, %v11303_v30  ;;  %v7389_v36 = vpop.f32.mrb[63].mxu0  ;;  %12548 = vmatmul.mubr.msk.bf16.gmra.mrb[56].mxu1 %vm3543_vm4, %v7687_v20 }
 0x3c4   :  { %v7654_v45 = vadd.f32 %v7590_v57, %v15976_v21  ;;  %v7591_v61 = vmul.f32 %v11299_v22, %v7389_v36 }
 0x3c5   :  { %v7657_v17 = vadd.f32 %v7593_v18, %v15978_v40 }
 0x3c6   :  { %v7655_v63 = vadd.f32 %v7591_v61, %v15980_v42 }
 0x3c7   :  { %v7689_v41 = vpack.c.bf16 %v7657_v17, %v7656_v27 }
 0x3c8   :  { %v7688_v38 = vpack.c.bf16 %v7655_v63, %v7654_v45 }
 0x3ca   :  { %12551 = vmatprep.mubr.msk.bf16.mxu1 %vm3543_vm4, %v7688_v38 }
 0x3cb   :  { %12552 = vmatmul.mubr.msk.bf16.gmra.mrb[60].mxu1 %vm3543_vm4, %v7689_v41 }
 0x426   :  { %v12493_v32 = vpop.f32.mrb[0].mxu1 }
 0x427   :  { %v10218_v13 = vpack.c.bf16 %v12493_v32, %v12493_v32  ;;  %v7836_v46 = vpop.f32.mrb[1].mxu1 }
 0x428   :  { %v10216_v55 = vpack.c.bf16 %v7836_v46, %v7836_v46  ;;  %v12494_v0 = vpop.f32.mrb[2].mxu1 }
 0x429   :  { %8287 = vrot.lane.b32.xlu1 %v10218_v13, %s12823_s0  ;;  %v7839_v21 = vpop.f32.mrb[3].mxu1  ;;  %v10219_v40 = vpack.c.bf16 %v12494_v0, %v12494_v0 }
 0x42a   :  { %8283 = vrot.lane.b32.xlu0 %v10216_v55, %s12823_s0  ;;  %v10217_v43 = vpack.c.bf16 %v7839_v21, %v7839_v21 }
 0x42d   :  { %8289 = vrot.lane.b32.xlu1 %v10219_v40, %s12823_s0 }
 0x42e   :  { %8285 = vrot.lane.b32.xlu0 %v10217_v43, %s12823_s0  ;;  %v12497_v42 = vpop.f32.mrb[4].mxu1 }
 0x42f   :  { %v10222_v33 = vpack.c.bf16 %v12497_v42, %v12497_v42  ;;  %v7852_v39 = vpop.f32.mrb[5].mxu1 }
 0x430   :  { %v12498_v26 = vpop.f32.mrb[6].mxu1  ;;  %v10220_v34 = vpack.c.bf16 %v7852_v39, %v7852_v39 }
 0x431   :  { %v10223_v52 = vpack.c.bf16 %v12498_v26, %v12498_v26  ;;  %v7855_v12 = vpop.f32.mrb[7].mxu1 }
 0x432   :  { %8295 = vrot.lane.b32.xlu0 %v10222_v33, %s12823_s0  ;;  %v10221_v53 = vpack.c.bf16 %v7855_v12, %v7855_v12 }
 0x433   :  { %8297 = vrot.lane.b32.xlu1 %v10223_v52, %s12823_s0 }
 0x436   :  { %8291 = vrot.lane.b32.xlu0 %v10220_v34, %s12823_s0  ;;  %v12501_v51 = vpop.f32.mrb[8].mxu1 }
 0x437   :  { %v10226_v10 = vpack.c.bf16 %v12501_v51, %v12501_v51  ;;  %8293 = vrot.lane.b32.xlu1 %v10221_v53, %s12823_s0  ;;  %v7868_v1 = vpop.f32.mrb[9].mxu1 }
 0x438   :  { %v12502_v25 = vpop.f32.mrb[10].mxu1  ;;  %v10224_v11 = vpack.c.bf16 %v7868_v1, %v7868_v1 }
 0x439   :  { %v10227_v35 = vpack.c.bf16 %v12502_v25, %v12502_v25  ;;  %v7871_v14 = vpop.f32.mrb[11].mxu1 }
 0x43a   :  { %8303 = vrot.lane.b32.xlu0 %v10226_v10, %s12823_s0  ;;  %v10225_v3 = vpack.c.bf16 %v7871_v14, %v7871_v14 }
 0x43b   :  { %8305 = vrot.lane.b32.xlu1 %v10227_v35, %s12823_s0 }
 0x43e   :  { %8299 = vrot.lane.b32.xlu0 %v10224_v11, %s12823_s0  ;;  %v12505_v19 = vpop.f32.mrb[12].mxu1 }
 0x43f   :  { %v10230_v6 = vpack.c.bf16 %v12505_v19, %v12505_v19  ;;  %8301 = vrot.lane.b32.xlu1 %v10225_v3, %s12823_s0  ;;  %v7884_v9 = vpop.f32.mrb[13].mxu1 }
 0x440   :  { %v12506_v47 = vpop.f32.mrb[14].mxu1  ;;  %v10228_v37 = vpack.c.bf16 %v7884_v9, %v7884_v9 }
 0x441   :  { %v10231_v15 = vpack.c.bf16 %v12506_v47, %v12506_v47  ;;  %v7887_v16 = vpop.f32.mrb[15].mxu1 }
 0x442   :  { %8311 = vrot.lane.b32.xlu0 %v10230_v6, %s12823_s0  ;;  %v10229_v8 = vpack.c.bf16 %v7887_v16, %v7887_v16 }
 0x443   :  { %8313 = vrot.lane.b32.xlu1 %v10231_v15, %s12823_s0 }
 0x446   :  { %8307 = vrot.lane.b32.xlu0 %v10228_v37, %s12823_s0  ;;  %v12509_v31 = vpop.f32.mrb[16].mxu1 }
 0x447   :  { %v10234_v48 = vpack.c.bf16 %v12509_v31, %v12509_v31  ;;  %8309 = vrot.lane.b32.xlu1 %v10229_v8, %s12823_s0  ;;  %v7900_v59 = vpop.f32.mrb[17].mxu1 }
 0x448   :  { %v12510_v56 = vpop.f32.mrb[18].mxu1  ;;  %v10232_v60 = vpack.c.bf16 %v7900_v59, %v7900_v59 }
 0x449   :  { %v10235_v4 = vpack.c.bf16 %v12510_v56, %v12510_v56  ;;  %v7903_v2 = vpop.f32.mrb[19].mxu1 }
 0x44a   :  { %8319 = vrot.lane.b32.xlu0 %v10234_v48, %s12823_s0  ;;  %v10233_v50 = vpack.c.bf16 %v7903_v2, %v7903_v2 }
 0x44b   :  { %8321 = vrot.lane.b32.xlu1 %v10235_v4, %s12823_s0 }
 0x44e   :  { %8315 = vrot.lane.b32.xlu0 %v10232_v60, %s12823_s0  ;;  %v12513_v28 = vpop.f32.mrb[20].mxu1 }
 0x44f   :  { %v10238_v7 = vpack.c.bf16 %v12513_v28, %v12513_v28  ;;  %8317 = vrot.lane.b32.xlu1 %v10233_v50, %s12823_s0  ;;  %v7916_v49 = vpop.f32.mrb[21].mxu1 }
 0x450   :  { %v12514_v44 = vpop.f32.mrb[22].mxu1  ;;  %v10236_v20 = vpack.c.bf16 %v7916_v49, %v7916_v49 }
 0x451   :  { %v10239_v23 = vpack.c.bf16 %v12514_v44, %v12514_v44  ;;  %v7919_v24 = vpop.f32.mrb[23].mxu1 }
 0x452   :  { %8327 = vrot.lane.b32.xlu0 %v10238_v7, %s12823_s0  ;;  %v10237_v30 = vpack.c.bf16 %v7919_v24, %v7919_v24 }
 0x453   :  { %8329 = vrot.lane.b32.xlu1 %v10239_v23, %s12823_s0 }
 0x456   :  { %8323 = vrot.lane.b32.xlu0 %v10236_v20, %s12823_s0  ;;  %v12517_v5 = vpop.f32.mrb[24].mxu1 }
 0x457   :  { %v10242_v58 = vpack.c.bf16 %v12517_v5, %v12517_v5  ;;  %8325 = vrot.lane.b32.xlu1 %v10237_v30, %s12823_s0  ;;  %v7932_v22 = vpop.f32.mrb[25].mxu1 }
 0x458   :  { %v12518_v54 = vpop.f32.mrb[26].mxu1  ;;  %v10240_v62 = vpack.c.bf16 %v7932_v22, %v7932_v22 }
 0x459   :  { %v10243_v29 = vpack.c.bf16 %v12518_v54, %v12518_v54  ;;  %v7935_v57 = vpop.f32.mrb[27].mxu1 }
 0x45a   :  { %8335 = vrot.lane.b32.xlu0 %v10242_v58, %s12823_s0  ;;  %v10241_v27 = vpack.c.bf16 %v7935_v57, %v7935_v57 }
 0x45b   :  { %8337 = vrot.lane.b32.xlu1 %v10243_v29, %s12823_s0 }
 0x45e   :  { %8331 = vrot.lane.b32.xlu0 %v10240_v62, %s12823_s0  ;;  %v12521_v18 = vpop.f32.mrb[28].mxu1 }
 0x45f   :  { %v10246_v36 = vpack.c.bf16 %v12521_v18, %v12521_v18  ;;  %8333 = vrot.lane.b32.xlu1 %v10241_v27, %s12823_s0  ;;  %v7948_v45 = vpop.f32.mrb[29].mxu1 }
 0x460   :  { %v12522_v61 = vpop.f32.mrb[30].mxu1  ;;  %v10244_v41 = vpack.c.bf16 %v7948_v45, %v7948_v45 }
 0x461   :  { %v10247_v17 = vpack.c.bf16 %v12522_v61, %v12522_v61  ;;  %v7951_v63 = vpop.f32.mrb[31].mxu1 }
 0x462   :  { %8343 = vrot.lane.b32.xlu0 %v10246_v36, %s12823_s0  ;;  %v10245_v38 = vpack.c.bf16 %v7951_v63, %v7951_v63 }
 0x463   :  { %8345 = vrot.lane.b32.xlu1 %v10247_v17, %s12823_s0 }
 0x466   :  { %8339 = vrot.lane.b32.xlu0 %v10244_v41, %s12823_s0  ;;  %v12525_v32 = vpop.f32.mrb[32].mxu1 }
 0x467   :  { %v10250_v13 = vpack.c.bf16 %v12525_v32, %v12525_v32  ;;  %8341 = vrot.lane.b32.xlu1 %v10245_v38, %s12823_s0  ;;  %v7964_v46 = vpop.f32.mrb[33].mxu1 }
 0x468   :  { %v12526_v55 = vpop.f32.mrb[34].mxu1  ;;  %v10248_v40 = vpack.c.bf16 %v7964_v46, %v7964_v46 }
 0x469   :  { %v10251_v0 = vpack.c.bf16 %v12526_v55, %v12526_v55  ;;  %v7967_v21 = vpop.f32.mrb[35].mxu1 }
 0x46a   :  { %8351 = vrot.lane.b32.xlu0 %v10250_v13, %s12823_s0  ;;  %v10249_v43 = vpack.c.bf16 %v7967_v21, %v7967_v21 }
 0x46b   :  { %8353 = vrot.lane.b32.xlu1 %v10251_v0, %s12823_s0 }
 0x46e   :  { %8347 = vrot.lane.b32.xlu0 %v10248_v40, %s12823_s0  ;;  %v12529_v42 = vpop.f32.mrb[36].mxu1 }
 0x46f   :  { %v10254_v33 = vpack.c.bf16 %v12529_v42, %v12529_v42  ;;  %8349 = vrot.lane.b32.xlu1 %v10249_v43, %s12823_s0  ;;  %v7980_v39 = vpop.f32.mrb[37].mxu1 }
 0x470   :  { %v12530_v26 = vpop.f32.mrb[38].mxu1  ;;  %v10252_v34 = vpack.c.bf16 %v7980_v39, %v7980_v39 }
 0x471   :  { %v10255_v52 = vpack.c.bf16 %v12530_v26, %v12530_v26  ;;  %v7983_v12 = vpop.f32.mrb[39].mxu1 }
 0x472   :  { %8359 = vrot.lane.b32.xlu0 %v10254_v33, %s12823_s0  ;;  %v10253_v53 = vpack.c.bf16 %v7983_v12, %v7983_v12 }
 0x473   :  { %8361 = vrot.lane.b32.xlu1 %v10255_v52, %s12823_s0 }
 0x476   :  { %8355 = vrot.lane.b32.xlu0 %v10252_v34, %s12823_s0  ;;  %v12533_v51 = vpop.f32.mrb[40].mxu1 }
 0x477   :  { %v10258_v10 = vpack.c.bf16 %v12533_v51, %v12533_v51  ;;  %8357 = vrot.lane.b32.xlu1 %v10253_v53, %s12823_s0  ;;  %v7996_v1 = vpop.f32.mrb[41].mxu1 }
 0x478   :  { %v12534_v25 = vpop.f32.mrb[42].mxu1  ;;  %v10256_v11 = vpack.c.bf16 %v7996_v1, %v7996_v1 }
 0x479   :  { %v10259_v35 = vpack.c.bf16 %v12534_v25, %v12534_v25  ;;  %v7999_v14 = vpop.f32.mrb[43].mxu1 }
 0x47a   :  { %8367 = vrot.lane.b32.xlu0 %v10258_v10, %s12823_s0  ;;  %v10257_v3 = vpack.c.bf16 %v7999_v14, %v7999_v14 }
 0x47b   :  { %8369 = vrot.lane.b32.xlu1 %v10259_v35, %s12823_s0 }
 0x47e   :  { %8363 = vrot.lane.b32.xlu0 %v10256_v11, %s12823_s0  ;;  %v12537_v19 = vpop.f32.mrb[44].mxu1 }
 0x47f   :  { %v10262_v6 = vpack.c.bf16 %v12537_v19, %v12537_v19  ;;  %8365 = vrot.lane.b32.xlu1 %v10257_v3, %s12823_s0  ;;  %v8012_v9 = vpop.f32.mrb[45].mxu1 }
 0x480   :  { %v12538_v47 = vpop.f32.mrb[46].mxu1  ;;  %v10260_v37 = vpack.c.bf16 %v8012_v9, %v8012_v9 }
 0x481   :  { %v10263_v15 = vpack.c.bf16 %v12538_v47, %v12538_v47  ;;  %v8015_v16 = vpop.f32.mrb[47].mxu1 }
 0x482   :  { %8375 = vrot.lane.b32.xlu0 %v10262_v6, %s12823_s0  ;;  %v10261_v8 = vpack.c.bf16 %v8015_v16, %v8015_v16 }
 0x483   :  { %8377 = vrot.lane.b32.xlu1 %v10263_v15, %s12823_s0 }
 0x486   :  { %8371 = vrot.lane.b32.xlu0 %v10260_v37, %s12823_s0  ;;  %v12541_v31 = vpop.f32.mrb[48].mxu1 }
 0x487   :  { %v10266_v48 = vpack.c.bf16 %v12541_v31, %v12541_v31  ;;  %8373 = vrot.lane.b32.xlu1 %v10261_v8, %s12823_s0  ;;  %v8028_v59 = vpop.f32.mrb[49].mxu1 }
 0x488   :  { %v12542_v56 = vpop.f32.mrb[50].mxu1  ;;  %v10264_v60 = vpack.c.bf16 %v8028_v59, %v8028_v59 }
 0x489   :  { %v10267_v4 = vpack.c.bf16 %v12542_v56, %v12542_v56  ;;  %v8031_v2 = vpop.f32.mrb[51].mxu1 }
 0x48a   :  { %8383 = vrot.lane.b32.xlu0 %v10266_v48, %s12823_s0  ;;  %v10265_v50 = vpack.c.bf16 %v8031_v2, %v8031_v2 }
 0x48b   :  { %8385 = vrot.lane.b32.xlu1 %v10267_v4, %s12823_s0 }
 0x48e   :  { %8379 = vrot.lane.b32.xlu0 %v10264_v60, %s12823_s0  ;;  %v12545_v28 = vpop.f32.mrb[52].mxu1 }
 0x48f   :  { %v10270_v7 = vpack.c.bf16 %v12545_v28, %v12545_v28  ;;  %8381 = vrot.lane.b32.xlu1 %v10265_v50, %s12823_s0  ;;  %v8044_v49 = vpop.f32.mrb[53].mxu1 }
 0x490   :  { %v12546_v44 = vpop.f32.mrb[54].mxu1  ;;  %v10268_v20 = vpack.c.bf16 %v8044_v49, %v8044_v49 }
 0x491   :  { %v10271_v23 = vpack.c.bf16 %v12546_v44, %v12546_v44  ;;  %v8047_v24 = vpop.f32.mrb[55].mxu1 }
 0x492   :  { %8391 = vrot.lane.b32.xlu0 %v10270_v7, %s12823_s0  ;;  %v10269_v30 = vpack.c.bf16 %v8047_v24, %v8047_v24 }
 0x493   :  { %8393 = vrot.lane.b32.xlu1 %v10271_v23, %s12823_s0 }
 0x496   :  { %8387 = vrot.lane.b32.xlu0 %v10268_v20, %s12823_s0  ;;  %v12549_v5 = vpop.f32.mrb[56].mxu1 }
 0x497   :  { %v10274_v58 = vpack.c.bf16 %v12549_v5, %v12549_v5  ;;  %8389 = vrot.lane.b32.xlu1 %v10269_v30, %s12823_s0  ;;  %v8060_v22 = vpop.f32.mrb[57].mxu1 }
 0x498   :  { %v12550_v54 = vpop.f32.mrb[58].mxu1  ;;  %v10272_v27 = vpack.c.bf16 %v8060_v22, %v8060_v22 }
 0x499   :  { %v10275_v29 = vpack.c.bf16 %v12550_v54, %v12550_v54  ;;  %v8063_v57 = vpop.f32.mrb[59].mxu1 }
 0x49a   :  { %8399 = vrot.lane.b32.xlu0 %v10274_v58, %s12823_s0  ;;  %v10273_v36 = vpack.c.bf16 %v8063_v57, %v8063_v57 }
 0x49b   :  { %v8288_v62 = vpop.permute.xlu1 %8287  ;;  %8401 = vrot.lane.b32.xlu1 %v10275_v29, %s12823_s0 }
 0x49c   :  { %8478 = vst.msk [vmem:[%s16492_s4 + $0x8] sm:$0xf] %vm8475_vm6, %v8288_v62  ;;  %v8284_v18 = vpop.permute.xlu0 %8283 }
 0x49d   :  { %8476 = vst.msk [vmem:[%s16492_s4] sm:$0xf] %vm8475_vm6, %v8284_v18 }
 0x49e   :  { %8395 = vrot.lane.b32.xlu0 %v10272_v27, %s12823_s0  ;;  %v12553_v45 = vpop.f32.mrb[60].mxu1 }
 0x49f   :  { %v8290_v61 = vpop.permute.xlu1 %8289  ;;  %8397 = vrot.lane.b32.xlu1 %v10273_v36, %s12823_s0  ;;  %v8076_v17 = vpop.f32.mrb[61].mxu1  ;;  %v10278_v46 = vpack.c.bf16 %v12553_v45, %v12553_v45 }
 0x4a0   :  { %8479 = vst.msk [vmem:[%s16492_s4 + $0xc] sm:$0xf] %vm8475_vm6, %v8290_v61  ;;  %v10276_v63 = vpack.c.bf16 %v8076_v17, %v8076_v17  ;;  %v8286_v41 = vpop.permute.xlu0 %8285  ;;  %v12554_v38 = vpop.f32.mrb[62].mxu1 }
 0x4a1   :  { %8477 = vst.msk [vmem:[%s16492_s4 + $0x4] sm:$0xf] %vm8475_vm6, %v8286_v41  ;;  %v8079_v32 = vpop.f32.mrb[63].mxu1  ;;  %v10279_v21 = vpack.c.bf16 %v12554_v38, %v12554_v38 }
 0x4a2   :  { %v10277_v13 = vpack.c.bf16 %v8079_v32, %v8079_v32  ;;  %8403 = vrot.lane.b32.xlu0 %v10276_v63, %s12823_s0 }
 0x4a4   :  { %v8296_v55 = vpop.permute.xlu0 %8295  ;;  %8405 = vrot.lane.b32.xlu1 %v10277_v13, %s12823_s0 }
 0x4a5   :  { %8482 = vst.msk [vmem:[%s16492_s4 + $0x18] sm:$0xf] %vm8475_vm6, %v8296_v55  ;;  %v8298_v0 = vpop.permute.xlu1 %8297 }
 0x4a6   :  { %8483 = vst.msk [vmem:[%s16492_s4 + $0x1c] sm:$0xf] %vm8475_vm6, %v8298_v0  ;;  %8407 = vrot.lane.b32.xlu0 %v10278_v46, %s12823_s0 }
 0x4a8   :  { %v8292_v40 = vpop.permute.xlu0 %8291  ;;  %8409 = vrot.lane.b32.xlu1 %v10279_v21, %s12823_s0 }
 0x4a9   :  { %8480 = vst.msk [vmem:[%s16492_s4 + $0x10] sm:$0xf] %vm8475_vm6, %v8292_v40  ;;  %v8294_v43 = vpop.permute.xlu1 %8293 }
 0x4aa   :  { %8481 = vst.msk [vmem:[%s16492_s4 + $0x14] sm:$0xf] %vm8475_vm6, %v8294_v43 }
 0x4ac   :  { %v8304_v42 = vpop.permute.xlu0 %8303 }
 0x4ad   :  { %8486 = vst.msk [vmem:[%s16492_s4 + $0x28] sm:$0xf] %vm8475_vm6, %v8304_v42  ;;  %v8306_v33 = vpop.permute.xlu1 %8305 }
 0x4ae   :  { %8487 = vst.msk [vmem:[%s16492_s4 + $0x2c] sm:$0xf] %vm8475_vm6, %v8306_v33 }
 0x4b0   :  { %v8300_v39 = vpop.permute.xlu0 %8299 }
 0x4b1   :  { %8484 = vst.msk [vmem:[%s16492_s4 + $0x20] sm:$0xf] %vm8475_vm6, %v8300_v39  ;;  %v8302_v26 = vpop.permute.xlu1 %8301 }
 0x4b2   :  { %8485 = vst.msk [vmem:[%s16492_s4 + $0x24] sm:$0xf] %vm8475_vm6, %v8302_v26 }
 0x4b4   :  { %v8312_v52 = vpop.permute.xlu0 %8311 }
 0x4b5   :  { %8490 = vst.msk [vmem:[%s16492_s4 + $0x38] sm:$0xf] %vm8475_vm6, %v8312_v52  ;;  %v8314_v12 = vpop.permute.xlu1 %8313 }
 0x4b6   :  { %8491 = vst.msk [vmem:[%s16492_s4 + $0x3c] sm:$0xf] %vm8475_vm6, %v8314_v12 }
 0x4b8   :  { %v8308_v34 = vpop.permute.xlu0 %8307 }
 0x4b9   :  { %8488 = vst.msk [vmem:[%s16492_s4 + $0x30] sm:$0xf] %vm8475_vm6, %v8308_v34  ;;  %v8310_v53 = vpop.permute.xlu1 %8309 }
 0x4ba   :  { %8489 = vst.msk [vmem:[%s16492_s4 + $0x34] sm:$0xf] %vm8475_vm6, %v8310_v53 }
 0x4bc   :  { %v8320_v51 = vpop.permute.xlu0 %8319 }
 0x4bd   :  { %8494 = vst.msk [vmem:[%s16492_s4 + $0x48] sm:$0xf] %vm8475_vm6, %v8320_v51  ;;  %v8322_v10 = vpop.permute.xlu1 %8321 }
 0x4be   :  { %8495 = vst.msk [vmem:[%s16492_s4 + $0x4c] sm:$0xf] %vm8475_vm6, %v8322_v10 }
 0x4c0   :  { %v8316_v1 = vpop.permute.xlu0 %8315 }
 0x4c1   :  { %8492 = vst.msk [vmem:[%s16492_s4 + $0x40] sm:$0xf] %vm8475_vm6, %v8316_v1  ;;  %v8318_v25 = vpop.permute.xlu1 %8317 }
 0x4c2   :  { %8493 = vst.msk [vmem:[%s16492_s4 + $0x44] sm:$0xf] %vm8475_vm6, %v8318_v25 }
 0x4c4   :  { %v8328_v35 = vpop.permute.xlu0 %8327 }
 0x4c5   :  { %8498 = vst.msk [vmem:[%s16492_s4 + $0x58] sm:$0xf] %vm8475_vm6, %v8328_v35  ;;  %v8330_v14 = vpop.permute.xlu1 %8329 }
 0x4c6   :  { %8499 = vst.msk [vmem:[%s16492_s4 + $0x5c] sm:$0xf] %vm8475_vm6, %v8330_v14 }
 0x4c8   :  { %v8324_v11 = vpop.permute.xlu0 %8323 }
 0x4c9   :  { %8496 = vst.msk [vmem:[%s16492_s4 + $0x50] sm:$0xf] %vm8475_vm6, %v8324_v11  ;;  %v8326_v3 = vpop.permute.xlu1 %8325 }
 0x4ca   :  { %8497 = vst.msk [vmem:[%s16492_s4 + $0x54] sm:$0xf] %vm8475_vm6, %v8326_v3 }
 0x4cc   :  { %v8336_v19 = vpop.permute.xlu0 %8335 }
 0x4cd   :  { %8502 = vst.msk [vmem:[%s16492_s4 + $0x68] sm:$0xf] %vm8475_vm6, %v8336_v19  ;;  %v8338_v6 = vpop.permute.xlu1 %8337 }
 0x4ce   :  { %8503 = vst.msk [vmem:[%s16492_s4 + $0x6c] sm:$0xf] %vm8475_vm6, %v8338_v6 }
 0x4d0   :  { %v8332_v9 = vpop.permute.xlu0 %8331 }
 0x4d1   :  { %8500 = vst.msk [vmem:[%s16492_s4 + $0x60] sm:$0xf] %vm8475_vm6, %v8332_v9  ;;  %v8334_v47 = vpop.permute.xlu1 %8333 }
 0x4d2   :  { %8501 = vst.msk [vmem:[%s16492_s4 + $0x64] sm:$0xf] %vm8475_vm6, %v8334_v47 }
 0x4d4   :  { %v8344_v15 = vpop.permute.xlu0 %8343 }
 0x4d5   :  { %8506 = vst.msk [vmem:[%s16492_s4 + $0x78] sm:$0xf] %vm8475_vm6, %v8344_v15  ;;  %v8346_v16 = vpop.permute.xlu1 %8345 }
 0x4d6   :  { %8507 = vst.msk [vmem:[%s16492_s4 + $0x7c] sm:$0xf] %vm8475_vm6, %v8346_v16 }
 0x4d8   :  { %v8340_v37 = vpop.permute.xlu0 %8339 }
 0x4d9   :  { %8504 = vst.msk [vmem:[%s16492_s4 + $0x70] sm:$0xf] %vm8475_vm6, %v8340_v37  ;;  %v8342_v8 = vpop.permute.xlu1 %8341 }
 0x4da   :  { %8505 = vst.msk [vmem:[%s16492_s4 + $0x74] sm:$0xf] %vm8475_vm6, %v8342_v8 }
 0x4dc   :  { %v8352_v31 = vpop.permute.xlu0 %8351 }
 0x4dd   :  { %8510 = vst.msk [vmem:[%s16492_s4 + $0x88] sm:$0xf] %vm8475_vm6, %v8352_v31  ;;  %v8354_v48 = vpop.permute.xlu1 %8353 }
 0x4de   :  { %8511 = vst.msk [vmem:[%s16492_s4 + $0x8c] sm:$0xf] %vm8475_vm6, %v8354_v48 }
 0x4e0   :  { %v8348_v59 = vpop.permute.xlu0 %8347 }
 0x4e1   :  { %8508 = vst.msk [vmem:[%s16492_s4 + $0x80] sm:$0xf] %vm8475_vm6, %v8348_v59  ;;  %v8350_v56 = vpop.permute.xlu1 %8349 }
 0x4e2   :  { %8509 = vst.msk [vmem:[%s16492_s4 + $0x84] sm:$0xf] %vm8475_vm6, %v8350_v56 }
 0x4e4   :  { %v8360_v4 = vpop.permute.xlu0 %8359 }
 0x4e5   :  { %8514 = vst.msk [vmem:[%s16492_s4 + $0x98] sm:$0xf] %vm8475_vm6, %v8360_v4  ;;  %v8362_v2 = vpop.permute.xlu1 %8361 }
 0x4e6   :  { %8515 = vst.msk [vmem:[%s16492_s4 + $0x9c] sm:$0xf] %vm8475_vm6, %v8362_v2 }
 0x4e8   :  { %v8356_v60 = vpop.permute.xlu0 %8355 }
 0x4e9   :  { %8512 = vst.msk [vmem:[%s16492_s4 + $0x90] sm:$0xf] %vm8475_vm6, %v8356_v60  ;;  %v8358_v50 = vpop.permute.xlu1 %8357 }
 0x4ea   :  { %8513 = vst.msk [vmem:[%s16492_s4 + $0x94] sm:$0xf] %vm8475_vm6, %v8358_v50 }
 0x4ec   :  { %v8368_v28 = vpop.permute.xlu0 %8367 }
 0x4ed   :  { %8518 = vst.msk [vmem:[%s16492_s4 + $0xa8] sm:$0xf] %vm8475_vm6, %v8368_v28  ;;  %v8370_v7 = vpop.permute.xlu1 %8369 }
 0x4ee   :  { %8519 = vst.msk [vmem:[%s16492_s4 + $0xac] sm:$0xf] %vm8475_vm6, %v8370_v7 }
 0x4f0   :  { %v8364_v49 = vpop.permute.xlu0 %8363 }
 0x4f1   :  { %8516 = vst.msk [vmem:[%s16492_s4 + $0xa0] sm:$0xf] %vm8475_vm6, %v8364_v49  ;;  %v8366_v44 = vpop.permute.xlu1 %8365 }
 0x4f2   :  { %8517 = vst.msk [vmem:[%s16492_s4 + $0xa4] sm:$0xf] %vm8475_vm6, %v8366_v44 }
 0x4f4   :  { %v8376_v23 = vpop.permute.xlu0 %8375 }
 0x4f5   :  { %8522 = vst.msk [vmem:[%s16492_s4 + $0xb8] sm:$0xf] %vm8475_vm6, %v8376_v23  ;;  %v8378_v24 = vpop.permute.xlu1 %8377 }
 0x4f6   :  { %8523 = vst.msk [vmem:[%s16492_s4 + $0xbc] sm:$0xf] %vm8475_vm6, %v8378_v24 }
 0x4f8   :  { %v8372_v20 = vpop.permute.xlu0 %8371 }
 0x4f9   :  { %8520 = vst.msk [vmem:[%s16492_s4 + $0xb0] sm:$0xf] %vm8475_vm6, %v8372_v20  ;;  %v8374_v30 = vpop.permute.xlu1 %8373 }
 0x4fa   :  { %8521 = vst.msk [vmem:[%s16492_s4 + $0xb4] sm:$0xf] %vm8475_vm6, %v8374_v30 }
 0x4fc   :  { %v8384_v5 = vpop.permute.xlu0 %8383 }
 0x4fd   :  { %8526 = vst.msk [vmem:[%s16492_s4 + $0xc8] sm:$0xf] %vm8475_vm6, %v8384_v5  ;;  %v8386_v58 = vpop.permute.xlu1 %8385 }
 0x4fe   :  { %8527 = vst.msk [vmem:[%s16492_s4 + $0xcc] sm:$0xf] %vm8475_vm6, %v8386_v58 }
 0x500   :  { %v8380_v22 = vpop.permute.xlu0 %8379 }
 0x501   :  { %8524 = vst.msk [vmem:[%s16492_s4 + $0xc0] sm:$0xf] %vm8475_vm6, %v8380_v22  ;;  %v8382_v54 = vpop.permute.xlu1 %8381 }
 0x502   :  { %8525 = vst.msk [vmem:[%s16492_s4 + $0xc4] sm:$0xf] %vm8475_vm6, %v8382_v54 }
 0x504   :  { %v8392_v29 = vpop.permute.xlu0 %8391 }
 0x505   :  { %8530 = vst.msk [vmem:[%s16492_s4 + $0xd8] sm:$0xf] %vm8475_vm6, %v8392_v29  ;;  %v8394_v57 = vpop.permute.xlu1 %8393 }
 0x506   :  { %8531 = vst.msk [vmem:[%s16492_s4 + $0xdc] sm:$0xf] %vm8475_vm6, %v8394_v57 }
 0x508   :  { %v8388_v62 = vpop.permute.xlu0 %8387 }
 0x509   :  { %8528 = vst.msk [vmem:[%s16492_s4 + $0xd0] sm:$0xf] %vm8475_vm6, %v8388_v62  ;;  %v8390_v27 = vpop.permute.xlu1 %8389 }
 0x50a   :  { %8529 = vst.msk [vmem:[%s16492_s4 + $0xd4] sm:$0xf] %vm8475_vm6, %v8390_v27 }
 0x50c   :  { %v8400_v18 = vpop.permute.xlu0 %8399 }
 0x50d   :  { %8534 = vst.msk [vmem:[%s16492_s4 + $0xe8] sm:$0xf] %vm8475_vm6, %v8400_v18  ;;  %v8402_v36 = vpop.permute.xlu1 %8401 }
 0x50e   :  { %8535 = vst.msk [vmem:[%s16492_s4 + $0xec] sm:$0xf] %vm8475_vm6, %v8402_v36 }
 0x510   :  { %v8396_v45 = vpop.permute.xlu0 %8395 }
 0x511   :  { %8532 = vst.msk [vmem:[%s16492_s4 + $0xe0] sm:$0xf] %vm8475_vm6, %v8396_v45  ;;  %v8398_v61 = vpop.permute.xlu1 %8397 }
 0x512   :  { %8533 = vst.msk [vmem:[%s16492_s4 + $0xe4] sm:$0xf] %vm8475_vm6, %v8398_v61 }
 0x514   :  { %v8404_v17 = vpop.permute.xlu0 %8403 }
 0x515   :  { %8536 = vst.msk [vmem:[%s16492_s4 + $0xf0] sm:$0xf] %vm8475_vm6, %v8404_v17 }
 0x516   :  { %v8406_v63 = vpop.permute.xlu1 %8405 }
 0x517   :  { %8537 = vst.msk [vmem:[%s16492_s4 + $0xf4] sm:$0xf] %vm8475_vm6, %v8406_v63 }
 0x518   :  { %v8408_v41 = vpop.permute.xlu0 %8407 }
 0x519   :  { %8538 = vst.msk [vmem:[%s16492_s4 + $0xf8] sm:$0xf] %vm8475_vm6, %v8408_v41 }
 0x51a   :  { %v8410_v38 = vpop.permute.xlu1 %8409 }
 0x51b   :  { %8539 = vst.msk [vmem:[%s16492_s4 + $0xfc] sm:$0xf] %vm8475_vm6, %v8410_v38 }

</bundles_post_ra>
